<compile_context>
chip_gen: v6e
topology: v6e:2x2x1
jax: 0.10.0
libtpu: 0.0.40
codegen_flags: <defaults>
</compile_context>

<pallas_src>
import numpy as np
import jax
import jax.numpy as jnp
from jax import lax
from jax.experimental import pallas as pl
from jax.experimental.pallas import tpu as pltpu

_TB = 8  # images per grid step (batch is zero-padded to a multiple of this)


# ------------------------------ fused Pallas kernel ------------------------------ #

def _mnist_fused_kernel(x_ref, m1_ref, cb1_ref, n2_ref, cb2_ref,
                        w1q_ref, fb1_ref, w2_ref, fb2_ref,
                        s1_ref, s2_ref, o_ref):
    """Whole MyNetwork forward for one tile of `tb` images.

    x_ref  : (tb, 28, 28)          input images (channel dim squeezed)
    m1_ref : (5, 28, 240)          conv1 as 5 GEMMs; out col = cc*120 + pw*10 + o
    cb1_ref: (1, 240)              conv1 bias tiled to that column order
    n2_ref : (5, 120, 160)         conv2 as 5 GEMMs; row = pw1*10 + cin,
                                   out col = cc*80 + pw2*20 + o
    cb2_ref: (1, 160)              conv2 bias tiled
    w1q_ref: (4, 80, 50)           fc1 weight split per pooled row qh
    fb1_ref: (1, 50)   w2_ref: (50, 10)   fb2_ref: (1, 10)
    s1_ref : (2*tb*16, tb*24)      stacked even/odd 0/1 row-selection for pool1
    s2_ref : (2*tb*8,  tb*8)       stacked even/odd 0/1 row-selection for pool2
    o_ref  : (tb, 10)              log-probabilities
    """
    f32 = jnp.float32
    tb = x_ref.shape[0]

    # ---- conv1 + bias + ReLU (lane-dense: 240 output lanes) ----------------- #
    # a1[(b, oh), cc*120 + pw*10 + o] == conv1(x)[b, o, oh, 2*pw + cc]
    xv = x_ref[...]                                             # (tb, 28, 28)
    a1 = jnp.dot(xv[:, 0:24, :].reshape(tb * 24, 28), m1_ref[0],
                 preferred_element_type=f32)
    for di in range(1, 5):
        lhs = xv[:, di:di + 24, :].reshape(tb * 24, 28)         # 24 % 8 == 0 -> relabel
        a1 = a1 + jnp.dot(lhs, m1_ref[di], preferred_element_type=f32)
    a1 = jnp.maximum(a1 + cb1_ref[...], 0.0)

    # ---- maxpool1 (2x2) ------------------------------------------------------ #
    # W direction: max over the two lane phases (conv column parity cc).
    b1 = jnp.maximum(a1[:, :120], a1[:, 120:])                  # (tb*24, 120)
    # H direction: one stacked even/odd selection GEMM + elementwise max of the
    # two 8-aligned row halves (rows 12..15 per image are zero padding).
    q1 = jnp.dot(s1_ref[...], b1, preferred_element_type=f32)   # (2*tb*16, 120)
    h1 = tb * 16
    p1 = jnp.maximum(q1[:h1], q1[h1:]).reshape(tb, 16, 120)

    # ---- conv2 + bias + ReLU (lane-dense: 160 output lanes) ------------------ #
    a2 = jnp.dot(p1[:, 0:8, :].reshape(tb * 8, 120), n2_ref[0],
                 preferred_element_type=f32)
    for di in range(1, 5):
        lhs = p1[:, di:di + 8, :].reshape(tb * 8, 120)          # 8-row blocks -> relabel
        a2 = a2 + jnp.dot(lhs, n2_ref[di], preferred_element_type=f32)
    a2 = jnp.maximum(a2 + cb2_ref[...], 0.0)

    # ---- maxpool2 (2x2) ------------------------------------------------------ #
    b2 = jnp.maximum(a2[:, :80], a2[:, 80:])                    # (tb*8, 80)
    q2 = jnp.dot(s2_ref[...], b2, preferred_element_type=f32)   # (2*tb*8, 80)
    h2 = tb * 8
    p2 = jnp.maximum(q2[:h2], q2[h2:]).reshape(tb, 8, 80)       # rows 4..7 are padding

    # Dropout(p=0.5) is identity at inference time.

    # ---- fc1 + ReLU (weight pre-permuted to the kernel's flatten order) ------ #
    z1 = jnp.dot(p2[:, 0, :], w1q_ref[0], preferred_element_type=f32)
    for qh in range(1, 4):
        z1 = z1 + jnp.dot(p2[:, qh, :], w1q_ref[qh], preferred_element_type=f32)
    z1 = jnp.maximum(z1 + fb1_ref[...], 0.0)

    # ---- fc2 + log_softmax --------------------------------------------------- #
    logits = jnp.dot(z1, w2_ref[...], preferred_element_type=f32) + fb2_ref[...]
    m = jnp.max(logits, axis=1, keepdims=True)
    z = logits - m
    lse = jnp.log(jnp.sum(jnp.exp(z), axis=1, keepdims=True))
    o_ref[...] = (z - lse).astype(o_ref.dtype)


# ------------------------- weight preprocessing (one-time) ------------------------ #

def _selection_matrix_np(tb, n_in, n_out_pad):
    """Stacked [even; odd] row-selection: kron(I_tb, S) where S picks even/odd
    rows of each n_in-row block and zero-pads to n_out_pad rows (multiple of 8),
    so all downstream kernel reshapes are pure relabels."""
    se = np.zeros((n_out_pad, n_in), np.float32)
    so = np.zeros((n_out_pad, n_in), np.float32)
    for r in range(n_in // 2):
        se[r, 2 * r] = 1.0
        so[r, 2 * r + 1] = 1.0
    ident = np.eye(tb, dtype=np.float32)
    return np.concatenate([np.kron(ident, se), np.kron(ident, so)], axis=0)


def prepare_params(params):
    """Fold every layout permutation of the network into small constant weights."""
    w1 = np.asarray(params["conv1_w"], np.float32)    # (10, 1, 5, 5)  (O, I, KH, KW)
    b1 = np.asarray(params["conv1_b"], np.float32)
    w2 = np.asarray(params["conv2_w"], np.float32)    # (20, 10, 5, 5)
    b2 = np.asarray(params["conv2_b"], np.float32)
    f1w = np.asarray(params["fc1_w"], np.float32)     # (50, 320)
    f1b = np.asarray(params["fc1_b"], np.float32)
    f2w = np.asarray(params["fc2_w"], np.float32)     # (10, 50)
    f2b = np.asarray(params["fc2_b"], np.float32)

    # conv1 GEMMs: M1[di, w_in, cc*120 + pw*10 + o] = w1[o, 0, di, w_in - (2*pw + cc)]
    M1 = np.zeros((5, 28, 240), np.float32)
    for di in range(5):
        for cc in range(2):
            for pw in range(12):
                for dj in range(5):
                    w_in = 2 * pw + cc + dj
                    col = cc * 120 + pw * 10
                    M1[di, w_in, col:col + 10] = w1[:, 0, di, dj]
    bias1 = np.tile(b1, 24).reshape(1, 240)

    # conv2 GEMMs: N2[di, pw1*10 + c, cc*80 + pw2*20 + o] = w2[o, c, di, pw1 - (2*pw2 + cc)]
    N2 = np.zeros((5, 120, 160), np.float32)
    for di in range(5):
        for cc in range(2):
            for pw2 in range(4):
                for dj in range(5):
                    pw1 = 2 * pw2 + cc + dj
                    col = cc * 80 + pw2 * 20
                    N2[di, pw1 * 10:pw1 * 10 + 10, col:col + 20] = w2[:, :, di, dj].T
    bias2 = np.tile(b2, 8).reshape(1, 160)

    # fc1: PyTorch flatten order is (o, qh, qw); our pooled layout is (qh, qw*20 + o).
    W1q = np.ascontiguousarray(
        f1w.reshape(50, 20, 4, 4).transpose(2, 3, 1, 0).reshape(4, 80, 50))

    return dict(
        M1=jnp.asarray(M1), bias1=jnp.asarray(bias1),
        N2=jnp.asarray(N2), bias2=jnp.asarray(bias2),
        W1q=jnp.asarray(W1q),
        fb1=jnp.asarray(f1b.reshape(1, 50)),
        W2=jnp.asarray(np.ascontiguousarray(f2w.T)),
        fb2=jnp.asarray(f2b.reshape(1, 10)),
        S1=jnp.asarray(_selection_matrix_np(_TB, 24, 16)),   # (2*tb*16, tb*24)
        S2=jnp.asarray(_selection_matrix_np(_TB, 8, 8)),     # (2*tb*8,  tb*8)
    )


# ------------------------------------ forward ------------------------------------ #

@jax.jit
def my_network_forward(x, prep):
    """x: (B, 1, 28, 28) float32 NCHW -> (B, 10) log-probabilities."""
    tb = _TB
    B = x.shape[0]
    x3 = x.reshape(B, 28, 28)                       # squeeze channel dim (C == 1)
    bp = ((B + tb - 1) // tb) * tb
    if bp != B:                                     # pad batch to a tile multiple
        x3 = jnp.pad(x3, ((0, bp - B), (0, 0), (0, 0)))

    out = pl.pallas_call(
        _mnist_fused_kernel,
        out_shape=jax.ShapeDtypeStruct((bp, 10), jnp.float32),
        grid=(bp // tb,),
        in_specs=[
            pl.BlockSpec((tb, 28, 28), lambda i: (i, 0, 0)),         # images (tiled)
            pl.BlockSpec((5, 28, 240), lambda i: (0, 0, 0)),         # conv1 GEMMs
            pl.BlockSpec((1, 240), lambda i: (0, 0)),                # conv1 bias
            pl.BlockSpec((5, 120, 160), lambda i: (0, 0, 0)),        # conv2 GEMMs
            pl.BlockSpec((1, 160), lambda i: (0, 0)),                # conv2 bias
            pl.BlockSpec((4, 80, 50), lambda i: (0, 0, 0)),          # fc1 weight
            pl.BlockSpec((1, 50), lambda i: (0, 0)),                 # fc1 bias
            pl.BlockSpec((50, 10), lambda i: (0, 0)),                # fc2 weight
            pl.BlockSpec((1, 10), lambda i: (0, 0)),                 # fc2 bias
            pl.BlockSpec((2 * tb * 16, tb * 24), lambda i: (0, 0)),  # pool1 even|odd sel
            pl.BlockSpec((2 * tb * 8, tb * 8), lambda i: (0, 0)),    # pool2 even|odd sel
        ],
        out_specs=pl.BlockSpec((tb, 10), lambda i: (i, 0)),
        compiler_params=pltpu.CompilerParams(
            dimension_semantics=("parallel",)),
    )(x3, prep["M1"], prep["bias1"], prep["N2"], prep["bias2"],
      prep["W1q"], prep["fb1"], prep["W2"], prep["fb2"],
      prep["S1"], prep["S2"])
    return out[:B]


# ------------------------------ init + pure-JAX reference ------------------------------ #

def init_params(key):
    """Deterministic init mimicking PyTorch default uniform(-1/sqrt(fan_in), ...)."""
    ks = jax.random.split(key, 8)

    def u(k, shape, fan_in):
        bound = 1.0 / jnp.sqrt(float(fan_in))
        return jax.random.uniform(k, shape, jnp.float32, -bound, bound)

    return dict(
        conv1_w=u(ks[0], (10, 1, 5, 5), 1 * 5 * 5),
        conv1_b=u(ks[1], (10,), 1 * 5 * 5),
        conv2_w=u(ks[2], (20, 10, 5, 5), 10 * 5 * 5),
        conv2_b=u(ks[3], (20,), 10 * 5 * 5),
        fc1_w=u(ks[4], (50, 320), 320),
        fc1_b=u(ks[5], (50,), 320),
        fc2_w=u(ks[6], (10, 50), 50),
        fc2_b=u(ks[7], (10,), 50),
    )


def reference_forward(x, p):
    dn = ("NCHW", "OIHW", "NCHW")
    y = lax.conv_general_dilated(x, p["conv1_w"], (1, 1), "VALID",
                                 dimension_numbers=dn) + p["conv1_b"][None, :, None, None]
    y = jax.nn.relu(y)
    y = lax.reduce_window(y, -jnp.inf, lax.max, (1, 1, 2, 2), (1, 1, 2, 2), "VALID")
    y = lax.conv_general_dilated(y, p["conv2_w"], (1, 1), "VALID",
                                 dimension_numbers=dn) + p["conv2_b"][None, :, None, None]
    y = jax.nn.relu(y)
    y = lax.reduce_window(y, -jnp.inf, lax.max, (1, 1, 2, 2), (1, 1, 2, 2), "VALID")
    y = y.reshape(y.shape[0], -1)
    y = jax.nn.relu(y @ p["fc1_w"].T + p["fc1_b"])
    y = y @ p["fc2_w"].T + p["fc2_b"]
    return jax.nn.log_softmax(y, axis=1)


if __name__ == "__main__":
    key = jax.random.PRNGKey(0)
    k_params, k_x = jax.random.split(key)
    params = init_params(k_params)
    prep = prepare_params(params)

    # MNIST geometry is implied by fc1 (320 = 20*4*4): input must be (B, 1, 28, 28).
    x = jax.random.normal(k_x, (2, 1, 28, 28), dtype=jnp.float32)

    out = jax.block_until_ready(my_network_forward(x, prep))
    assert out.shape == (2, 10), out.shape

    ref = reference_forward(x, params)
    err = float(jnp.max(jnp.abs(out - ref)))
    assert err < 1e-4, f"max abs err vs pure-JAX reference: {err}"
    # log_softmax rows must normalize: logsumexp == 0.
    assert jnp.allclose(jax.scipy.special.logsumexp(out, axis=1), 0.0, atol=1e-4)

    print("KERNEL_OK")
</pallas_src>

<mosaic_0001>
module attributes {stable_mosaic.version = 11 : i64} {
  func.func @_mnist_fused_kernel(%arg0: i32, %arg1: memref<8x28x28xf32, #tpu.memory_space<vmem>>, %arg2: memref<5x28x240xf32, #tpu.memory_space<vmem>>, %arg3: memref<1x240xf32, #tpu.memory_space<vmem>>, %arg4: memref<5x120x160xf32, #tpu.memory_space<vmem>>, %arg5: memref<1x160xf32, #tpu.memory_space<vmem>>, %arg6: memref<4x80x50xf32, #tpu.memory_space<vmem>>, %arg7: memref<1x50xf32, #tpu.memory_space<vmem>>, %arg8: memref<50x10xf32, #tpu.memory_space<vmem>>, %arg9: memref<1x10xf32, #tpu.memory_space<vmem>>, %arg10: memref<256x192xf32, #tpu.memory_space<vmem>>, %arg11: memref<128x64xf32, #tpu.memory_space<vmem>>, %arg12: memref<8x10xf32, #tpu.memory_space<vmem>>) attributes {dimension_semantics = [#tpu.dimension_semantics<parallel>], iteration_bounds = array<i64: 1>, scalar_prefetch = 0 : i64, scratch_operands = 0 : i64, tpu.core_type = #tpu.core_type<tc>, window_params = [{transform_indices = @transform_0, window_bounds = array<i64: 8, 28, 28>}, {pipeline_mode = #tpu.pipeline_mode<synchronous>, transform_indices = @transform_1, window_bounds = array<i64: 5, 28, 240>}, {pipeline_mode = #tpu.pipeline_mode<synchronous>, transform_indices = @transform_2, window_bounds = array<i64: 1, 240>}, {pipeline_mode = #tpu.pipeline_mode<synchronous>, transform_indices = @transform_3, window_bounds = array<i64: 5, 120, 160>}, {pipeline_mode = #tpu.pipeline_mode<synchronous>, transform_indices = @transform_4, window_bounds = array<i64: 1, 160>}, {pipeline_mode = #tpu.pipeline_mode<synchronous>, transform_indices = @transform_5, window_bounds = array<i64: 4, 80, 50>}, {pipeline_mode = #tpu.pipeline_mode<synchronous>, transform_indices = @transform_6, window_bounds = array<i64: 1, 50>}, {pipeline_mode = #tpu.pipeline_mode<synchronous>, transform_indices = @transform_7, window_bounds = array<i64: 50, 10>}, {pipeline_mode = #tpu.pipeline_mode<synchronous>, transform_indices = @transform_8, window_bounds = array<i64: 1, 10>}, {pipeline_mode = #tpu.pipeline_mode<synchronous>, transform_indices = @transform_9, window_bounds = array<i64: 256, 192>}, {pipeline_mode = #tpu.pipeline_mode<synchronous>, transform_indices = @transform_10, window_bounds = array<i64: 128, 64>}, {transform_indices = @transform_11, window_bounds = array<i64: 8, 10>}]} {
    %c0 = arith.constant 0 : index
    %c0_0 = arith.constant 0 : index
    %c0_1 = arith.constant 0 : index
    %0 = vector.load %arg1[%c0, %c0_0, %c0_1] : memref<8x28x28xf32, #tpu.memory_space<vmem>>, vector<8x28x28xf32>
    %1 = vector.extract_strided_slice %0 {offsets = [0, 0, 0], sizes = [8, 24, 28], strides = [1, 1, 1]} : vector<8x28x28xf32> to vector<8x24x28xf32>
    %2 = vector.shape_cast %1 : vector<8x24x28xf32> to vector<192x28xf32>
    %c0_2 = arith.constant 0 : index
    %c0_3 = arith.constant 0 : index
    %c0_4 = arith.constant 0 : index
    %3 = vector.load %arg2[%c0_2, %c0_3, %c0_4] : memref<5x28x240xf32, #tpu.memory_space<vmem>>, vector<1x28x240xf32>
    %4 = vector.shape_cast %3 : vector<1x28x240xf32> to vector<28x240xf32>
    %cst = arith.constant dense<0.000000e+00> : vector<192x240xf32>
    %5 = tpu.matmul %2, %4, %cst {dimension_numbers = #tpu.dot_dimension_numbers<[1], [0], [0], [1], [0, 0, 1, 1], [], []>} : vector<192x28xf32>, vector<28x240xf32>, vector<192x240xf32> -> vector<192x240xf32>
    %6 = vector.extract_strided_slice %0 {offsets = [0, 1, 0], sizes = [8, 24, 28], strides = [1, 1, 1]} : vector<8x28x28xf32> to vector<8x24x28xf32>
    %7 = vector.shape_cast %6 : vector<8x24x28xf32> to vector<192x28xf32>
    %c1 = arith.constant 1 : index
    %c0_5 = arith.constant 0 : index
    %c0_6 = arith.constant 0 : index
    %8 = vector.load %arg2[%c1, %c0_5, %c0_6] : memref<5x28x240xf32, #tpu.memory_space<vmem>>, vector<1x28x240xf32>
    %9 = vector.shape_cast %8 : vector<1x28x240xf32> to vector<28x240xf32>
    %cst_7 = arith.constant dense<0.000000e+00> : vector<192x240xf32>
    %10 = tpu.matmul %7, %9, %cst_7 {dimension_numbers = #tpu.dot_dimension_numbers<[1], [0], [0], [1], [0, 0, 1, 1], [], []>} : vector<192x28xf32>, vector<28x240xf32>, vector<192x240xf32> -> vector<192x240xf32>
    %11 = arith.addf %5, %10 : vector<192x240xf32>
    %12 = vector.extract_strided_slice %0 {offsets = [0, 2, 0], sizes = [8, 24, 28], strides = [1, 1, 1]} : vector<8x28x28xf32> to vector<8x24x28xf32>
    %13 = vector.shape_cast %12 : vector<8x24x28xf32> to vector<192x28xf32>
    %c2 = arith.constant 2 : index
    %c0_8 = arith.constant 0 : index
    %c0_9 = arith.constant 0 : index
    %14 = vector.load %arg2[%c2, %c0_8, %c0_9] : memref<5x28x240xf32, #tpu.memory_space<vmem>>, vector<1x28x240xf32>
    %15 = vector.shape_cast %14 : vector<1x28x240xf32> to vector<28x240xf32>
    %cst_10 = arith.constant dense<0.000000e+00> : vector<192x240xf32>
    %16 = tpu.matmul %13, %15, %cst_10 {dimension_numbers = #tpu.dot_dimension_numbers<[1], [0], [0], [1], [0, 0, 1, 1], [], []>} : vector<192x28xf32>, vector<28x240xf32>, vector<192x240xf32> -> vector<192x240xf32>
    %17 = arith.addf %11, %16 : vector<192x240xf32>
    %18 = vector.extract_strided_slice %0 {offsets = [0, 3, 0], sizes = [8, 24, 28], strides = [1, 1, 1]} : vector<8x28x28xf32> to vector<8x24x28xf32>
    %19 = vector.shape_cast %18 : vector<8x24x28xf32> to vector<192x28xf32>
    %c3 = arith.constant 3 : index
    %c0_11 = arith.constant 0 : index
    %c0_12 = arith.constant 0 : index
    %20 = vector.load %arg2[%c3, %c0_11, %c0_12] : memref<5x28x240xf32, #tpu.memory_space<vmem>>, vector<1x28x240xf32>
    %21 = vector.shape_cast %20 : vector<1x28x240xf32> to vector<28x240xf32>
    %cst_13 = arith.constant dense<0.000000e+00> : vector<192x240xf32>
    %22 = tpu.matmul %19, %21, %cst_13 {dimension_numbers = #tpu.dot_dimension_numbers<[1], [0], [0], [1], [0, 0, 1, 1], [], []>} : vector<192x28xf32>, vector<28x240xf32>, vector<192x240xf32> -> vector<192x240xf32>
    %23 = arith.addf %17, %22 : vector<192x240xf32>
    %24 = vector.extract_strided_slice %0 {offsets = [0, 4, 0], sizes = [8, 24, 28], strides = [1, 1, 1]} : vector<8x28x28xf32> to vector<8x24x28xf32>
    %25 = vector.shape_cast %24 : vector<8x24x28xf32> to vector<192x28xf32>
    %c4 = arith.constant 4 : index
    %c0_14 = arith.constant 0 : index
    %c0_15 = arith.constant 0 : index
    %26 = vector.load %arg2[%c4, %c0_14, %c0_15] : memref<5x28x240xf32, #tpu.memory_space<vmem>>, vector<1x28x240xf32>
    %27 = vector.shape_cast %26 : vector<1x28x240xf32> to vector<28x240xf32>
    %cst_16 = arith.constant dense<0.000000e+00> : vector<192x240xf32>
    %28 = tpu.matmul %25, %27, %cst_16 {dimension_numbers = #tpu.dot_dimension_numbers<[1], [0], [0], [1], [0, 0, 1, 1], [], []>} : vector<192x28xf32>, vector<28x240xf32>, vector<192x240xf32> -> vector<192x240xf32>
    %29 = arith.addf %23, %28 : vector<192x240xf32>
    %c0_17 = arith.constant 0 : index
    %c0_18 = arith.constant 0 : index
    %30 = vector.load %arg3[%c0_17, %c0_18] : memref<1x240xf32, #tpu.memory_space<vmem>>, vector<1x240xf32>
    %31 = vector.broadcast %30 : vector<1x240xf32> to vector<192x240xf32>
    %32 = arith.addf %29, %31 : vector<192x240xf32>
    %cst_19 = arith.constant 0.000000e+00 : f32
    %33 = vector.broadcast %cst_19 : f32 to vector<192x240xf32>
    %34 = arith.maximumf %32, %33 : vector<192x240xf32>
    %35 = vector.extract_strided_slice %34 {offsets = [0, 0], sizes = [192, 120], strides = [1, 1]} : vector<192x240xf32> to vector<192x120xf32>
    %36 = vector.extract_strided_slice %34 {offsets = [0, 120], sizes = [192, 120], strides = [1, 1]} : vector<192x240xf32> to vector<192x120xf32>
    %37 = arith.maximumf %35, %36 : vector<192x120xf32>
    %c0_20 = arith.constant 0 : index
    %c0_21 = arith.constant 0 : index
    %38 = vector.load %arg10[%c0_20, %c0_21] : memref<256x192xf32, #tpu.memory_space<vmem>>, vector<256x192xf32>
    %cst_22 = arith.constant dense<0.000000e+00> : vector<256x120xf32>
    %39 = tpu.matmul %38, %37, %cst_22 {dimension_numbers = #tpu.dot_dimension_numbers<[1], [0], [0], [1], [0, 0, 1, 1], [], []>} : vector<256x192xf32>, vector<192x120xf32>, vector<256x120xf32> -> vector<256x120xf32>
    %40 = vector.extract_strided_slice %39 {offsets = [0, 0], sizes = [128, 120], strides = [1, 1]} : vector<256x120xf32> to vector<128x120xf32>
    %41 = vector.extract_strided_slice %39 {offsets = [128, 0], sizes = [128, 120], strides = [1, 1]} : vector<256x120xf32> to vector<128x120xf32>
    %42 = arith.maximumf %40, %41 : vector<128x120xf32>
    %43 = vector.shape_cast %42 : vector<128x120xf32> to vector<8x16x120xf32>
    %44 = vector.extract_strided_slice %43 {offsets = [0, 0, 0], sizes = [8, 8, 120], strides = [1, 1, 1]} : vector<8x16x120xf32> to vector<8x8x120xf32>
    %45 = vector.shape_cast %44 : vector<8x8x120xf32> to vector<64x120xf32>
    %c0_23 = arith.constant 0 : index
    %c0_24 = arith.constant 0 : index
    %c0_25 = arith.constant 0 : index
    %46 = vector.load %arg4[%c0_23, %c0_24, %c0_25] : memref<5x120x160xf32, #tpu.memory_space<vmem>>, vector<1x120x160xf32>
    %47 = vector.shape_cast %46 : vector<1x120x160xf32> to vector<120x160xf32>
    %cst_26 = arith.constant dense<0.000000e+00> : vector<64x160xf32>
    %48 = tpu.matmul %45, %47, %cst_26 {dimension_numbers = #tpu.dot_dimension_numbers<[1], [0], [0], [1], [0, 0, 1, 1], [], []>} : vector<64x120xf32>, vector<120x160xf32>, vector<64x160xf32> -> vector<64x160xf32>
    %49 = vector.extract_strided_slice %43 {offsets = [0, 1, 0], sizes = [8, 8, 120], strides = [1, 1, 1]} : vector<8x16x120xf32> to vector<8x8x120xf32>
    %50 = vector.shape_cast %49 : vector<8x8x120xf32> to vector<64x120xf32>
    %c1_27 = arith.constant 1 : index
    %c0_28 = arith.constant 0 : index
    %c0_29 = arith.constant 0 : index
    %51 = vector.load %arg4[%c1_27, %c0_28, %c0_29] : memref<5x120x160xf32, #tpu.memory_space<vmem>>, vector<1x120x160xf32>
    %52 = vector.shape_cast %51 : vector<1x120x160xf32> to vector<120x160xf32>
    %cst_30 = arith.constant dense<0.000000e+00> : vector<64x160xf32>
    %53 = tpu.matmul %50, %52, %cst_30 {dimension_numbers = #tpu.dot_dimension_numbers<[1], [0], [0], [1], [0, 0, 1, 1], [], []>} : vector<64x120xf32>, vector<120x160xf32>, vector<64x160xf32> -> vector<64x160xf32>
    %54 = arith.addf %48, %53 : vector<64x160xf32>
    %55 = vector.extract_strided_slice %43 {offsets = [0, 2, 0], sizes = [8, 8, 120], strides = [1, 1, 1]} : vector<8x16x120xf32> to vector<8x8x120xf32>
    %56 = vector.shape_cast %55 : vector<8x8x120xf32> to vector<64x120xf32>
    %c2_31 = arith.constant 2 : index
    %c0_32 = arith.constant 0 : index
    %c0_33 = arith.constant 0 : index
    %57 = vector.load %arg4[%c2_31, %c0_32, %c0_33] : memref<5x120x160xf32, #tpu.memory_space<vmem>>, vector<1x120x160xf32>
    %58 = vector.shape_cast %57 : vector<1x120x160xf32> to vector<120x160xf32>
    %cst_34 = arith.constant dense<0.000000e+00> : vector<64x160xf32>
    %59 = tpu.matmul %56, %58, %cst_34 {dimension_numbers = #tpu.dot_dimension_numbers<[1], [0], [0], [1], [0, 0, 1, 1], [], []>} : vector<64x120xf32>, vector<120x160xf32>, vector<64x160xf32> -> vector<64x160xf32>
    %60 = arith.addf %54, %59 : vector<64x160xf32>
    %61 = vector.extract_strided_slice %43 {offsets = [0, 3, 0], sizes = [8, 8, 120], strides = [1, 1, 1]} : vector<8x16x120xf32> to vector<8x8x120xf32>
    %62 = vector.shape_cast %61 : vector<8x8x120xf32> to vector<64x120xf32>
    %c3_35 = arith.constant 3 : index
    %c0_36 = arith.constant 0 : index
    %c0_37 = arith.constant 0 : index
    %63 = vector.load %arg4[%c3_35, %c0_36, %c0_37] : memref<5x120x160xf32, #tpu.memory_space<vmem>>, vector<1x120x160xf32>
    %64 = vector.shape_cast %63 : vector<1x120x160xf32> to vector<120x160xf32>
    %cst_38 = arith.constant dense<0.000000e+00> : vector<64x160xf32>
    %65 = tpu.matmul %62, %64, %cst_38 {dimension_numbers = #tpu.dot_dimension_numbers<[1], [0], [0], [1], [0, 0, 1, 1], [], []>} : vector<64x120xf32>, vector<120x160xf32>, vector<64x160xf32> -> vector<64x160xf32>
    %66 = arith.addf %60, %65 : vector<64x160xf32>
    %67 = vector.extract_strided_slice %43 {offsets = [0, 4, 0], sizes = [8, 8, 120], strides = [1, 1, 1]} : vector<8x16x120xf32> to vector<8x8x120xf32>
    %68 = vector.shape_cast %67 : vector<8x8x120xf32> to vector<64x120xf32>
    %c4_39 = arith.constant 4 : index
    %c0_40 = arith.constant 0 : index
    %c0_41 = arith.constant 0 : index
    %69 = vector.load %arg4[%c4_39, %c0_40, %c0_41] : memref<5x120x160xf32, #tpu.memory_space<vmem>>, vector<1x120x160xf32>
    %70 = vector.shape_cast %69 : vector<1x120x160xf32> to vector<120x160xf32>
    %cst_42 = arith.constant dense<0.000000e+00> : vector<64x160xf32>
    %71 = tpu.matmul %68, %70, %cst_42 {dimension_numbers = #tpu.dot_dimension_numbers<[1], [0], [0], [1], [0, 0, 1, 1], [], []>} : vector<64x120xf32>, vector<120x160xf32>, vector<64x160xf32> -> vector<64x160xf32>
    %72 = arith.addf %66, %71 : vector<64x160xf32>
    %c0_43 = arith.constant 0 : index
    %c0_44 = arith.constant 0 : index
    %73 = vector.load %arg5[%c0_43, %c0_44] : memref<1x160xf32, #tpu.memory_space<vmem>>, vector<1x160xf32>
    %74 = vector.broadcast %73 : vector<1x160xf32> to vector<64x160xf32>
    %75 = arith.addf %72, %74 : vector<64x160xf32>
    %cst_45 = arith.constant 0.000000e+00 : f32
    %76 = vector.broadcast %cst_45 : f32 to vector<64x160xf32>
    %77 = arith.maximumf %75, %76 : vector<64x160xf32>
    %78 = vector.extract_strided_slice %77 {offsets = [0, 0], sizes = [64, 80], strides = [1, 1]} : vector<64x160xf32> to vector<64x80xf32>
    %79 = vector.extract_strided_slice %77 {offsets = [0, 80], sizes = [64, 80], strides = [1, 1]} : vector<64x160xf32> to vector<64x80xf32>
    %80 = arith.maximumf %78, %79 : vector<64x80xf32>
    %c0_46 = arith.constant 0 : index
    %c0_47 = arith.constant 0 : index
    %81 = vector.load %arg11[%c0_46, %c0_47] : memref<128x64xf32, #tpu.memory_space<vmem>>, vector<128x64xf32>
    %cst_48 = arith.constant dense<0.000000e+00> : vector<128x80xf32>
    %82 = tpu.matmul %81, %80, %cst_48 {dimension_numbers = #tpu.dot_dimension_numbers<[1], [0], [0], [1], [0, 0, 1, 1], [], []>} : vector<128x64xf32>, vector<64x80xf32>, vector<128x80xf32> -> vector<128x80xf32>
    %83 = vector.extract_strided_slice %82 {offsets = [0, 0], sizes = [64, 80], strides = [1, 1]} : vector<128x80xf32> to vector<64x80xf32>
    %84 = vector.extract_strided_slice %82 {offsets = [64, 0], sizes = [64, 80], strides = [1, 1]} : vector<128x80xf32> to vector<64x80xf32>
    %85 = arith.maximumf %83, %84 : vector<64x80xf32>
    %86 = vector.shape_cast %85 : vector<64x80xf32> to vector<8x8x80xf32>
    %87 = vector.extract_strided_slice %86 {offsets = [0, 0, 0], sizes = [8, 1, 80], strides = [1, 1, 1]} : vector<8x8x80xf32> to vector<8x1x80xf32>
    %88 = vector.shape_cast %87 : vector<8x1x80xf32> to vector<8x80xf32>
    %c0_49 = arith.constant 0 : index
    %c0_50 = arith.constant 0 : index
    %c0_51 = arith.constant 0 : index
    %89 = vector.load %arg6[%c0_49, %c0_50, %c0_51] : memref<4x80x50xf32, #tpu.memory_space<vmem>>, vector<1x80x50xf32>
    %90 = vector.shape_cast %89 : vector<1x80x50xf32> to vector<80x50xf32>
    %cst_52 = arith.constant dense<0.000000e+00> : vector<8x50xf32>
    %91 = tpu.matmul %88, %90, %cst_52 {dimension_numbers = #tpu.dot_dimension_numbers<[1], [0], [0], [1], [0, 0, 1, 1], [], []>} : vector<8x80xf32>, vector<80x50xf32>, vector<8x50xf32> -> vector<8x50xf32>
    %92 = vector.extract_strided_slice %86 {offsets = [0, 1, 0], sizes = [8, 1, 80], strides = [1, 1, 1]} : vector<8x8x80xf32> to vector<8x1x80xf32>
    %93 = vector.shape_cast %92 : vector<8x1x80xf32> to vector<8x80xf32>
    %c1_53 = arith.constant 1 : index
    %c0_54 = arith.constant 0 : index
    %c0_55 = arith.constant 0 : index
    %94 = vector.load %arg6[%c1_53, %c0_54, %c0_55] : memref<4x80x50xf32, #tpu.memory_space<vmem>>, vector<1x80x50xf32>
    %95 = vector.shape_cast %94 : vector<1x80x50xf32> to vector<80x50xf32>
    %cst_56 = arith.constant dense<0.000000e+00> : vector<8x50xf32>
    %96 = tpu.matmul %93, %95, %cst_56 {dimension_numbers = #tpu.dot_dimension_numbers<[1], [0], [0], [1], [0, 0, 1, 1], [], []>} : vector<8x80xf32>, vector<80x50xf32>, vector<8x50xf32> -> vector<8x50xf32>
    %97 = arith.addf %91, %96 : vector<8x50xf32>
    %98 = vector.extract_strided_slice %86 {offsets = [0, 2, 0], sizes = [8, 1, 80], strides = [1, 1, 1]} : vector<8x8x80xf32> to vector<8x1x80xf32>
    %99 = vector.shape_cast %98 : vector<8x1x80xf32> to vector<8x80xf32>
    %c2_57 = arith.constant 2 : index
    %c0_58 = arith.constant 0 : index
    %c0_59 = arith.constant 0 : index
    %100 = vector.load %arg6[%c2_57, %c0_58, %c0_59] : memref<4x80x50xf32, #tpu.memory_space<vmem>>, vector<1x80x50xf32>
    %101 = vector.shape_cast %100 : vector<1x80x50xf32> to vector<80x50xf32>
    %cst_60 = arith.constant dense<0.000000e+00> : vector<8x50xf32>
    %102 = tpu.matmul %99, %101, %cst_60 {dimension_numbers = #tpu.dot_dimension_numbers<[1], [0], [0], [1], [0, 0, 1, 1], [], []>} : vector<8x80xf32>, vector<80x50xf32>, vector<8x50xf32> -> vector<8x50xf32>
    %103 = arith.addf %97, %102 : vector<8x50xf32>
    %104 = vector.extract_strided_slice %86 {offsets = [0, 3, 0], sizes = [8, 1, 80], strides = [1, 1, 1]} : vector<8x8x80xf32> to vector<8x1x80xf32>
    %105 = vector.shape_cast %104 : vector<8x1x80xf32> to vector<8x80xf32>
    %c3_61 = arith.constant 3 : index
    %c0_62 = arith.constant 0 : index
    %c0_63 = arith.constant 0 : index
    %106 = vector.load %arg6[%c3_61, %c0_62, %c0_63] : memref<4x80x50xf32, #tpu.memory_space<vmem>>, vector<1x80x50xf32>
    %107 = vector.shape_cast %106 : vector<1x80x50xf32> to vector<80x50xf32>
    %cst_64 = arith.constant dense<0.000000e+00> : vector<8x50xf32>
    %108 = tpu.matmul %105, %107, %cst_64 {dimension_numbers = #tpu.dot_dimension_numbers<[1], [0], [0], [1], [0, 0, 1, 1], [], []>} : vector<8x80xf32>, vector<80x50xf32>, vector<8x50xf32> -> vector<8x50xf32>
    %109 = arith.addf %103, %108 : vector<8x50xf32>
    %c0_65 = arith.constant 0 : index
    %c0_66 = arith.constant 0 : index
    %110 = vector.load %arg7[%c0_65, %c0_66] : memref<1x50xf32, #tpu.memory_space<vmem>>, vector<1x50xf32>
    %111 = vector.broadcast %110 : vector<1x50xf32> to vector<8x50xf32>
    %112 = arith.addf %109, %111 : vector<8x50xf32>
    %cst_67 = arith.constant 0.000000e+00 : f32
    %113 = vector.broadcast %cst_67 : f32 to vector<8x50xf32>
    %114 = arith.maximumf %112, %113 : vector<8x50xf32>
    %c0_68 = arith.constant 0 : index
    %c0_69 = arith.constant 0 : index
    %115 = vector.load %arg8[%c0_68, %c0_69] : memref<50x10xf32, #tpu.memory_space<vmem>>, vector<50x10xf32>
    %cst_70 = arith.constant dense<0.000000e+00> : vector<8x10xf32>
    %116 = tpu.matmul %114, %115, %cst_70 {dimension_numbers = #tpu.dot_dimension_numbers<[1], [0], [0], [1], [0, 0, 1, 1], [], []>} : vector<8x50xf32>, vector<50x10xf32>, vector<8x10xf32> -> vector<8x10xf32>
    %c0_71 = arith.constant 0 : index
    %c0_72 = arith.constant 0 : index
    %117 = vector.load %arg9[%c0_71, %c0_72] : memref<1x10xf32, #tpu.memory_space<vmem>>, vector<1x10xf32>
    %118 = vector.broadcast %117 : vector<1x10xf32> to vector<8x10xf32>
    %119 = arith.addf %116, %118 : vector<8x10xf32>
    %cst_73 = arith.constant dense<0xFF800000> : vector<8xf32>
    %120 = vector.multi_reduction <maximumf>, %119, %cst_73 [1] : vector<8x10xf32> to vector<8xf32>
    %121 = vector.shape_cast %120 : vector<8xf32> to vector<8x1xf32>
    %122 = vector.broadcast %121 : vector<8x1xf32> to vector<8x10xf32>
    %123 = arith.subf %119, %122 : vector<8x10xf32>
    %124 = math.exp %123 : vector<8x10xf32>
    %cst_74 = arith.constant dense<0.000000e+00> : vector<8xf32>
    %125 = vector.multi_reduction <add>, %124, %cst_74 [1] : vector<8x10xf32> to vector<8xf32>
    %126 = vector.shape_cast %125 : vector<8xf32> to vector<8x1xf32>
    %127 = math.log %126 : vector<8x1xf32>
    %128 = vector.broadcast %127 : vector<8x1xf32> to vector<8x10xf32>
    %129 = arith.subf %123, %128 : vector<8x10xf32>
    %c0_75 = arith.constant 0 : index
    %c0_76 = arith.constant 0 : index
    %130 = vector.load %arg12[%c0_75, %c0_76] : memref<8x10xf32, #tpu.memory_space<vmem>>, vector<8x10xf32>
    tpu.vector_store %arg12[%c0_75, %c0_76], %129 {strides = array<i32>} : memref<8x10xf32, #tpu.memory_space<vmem>>, vector<8x10xf32>,
    return
  }
  func.func @transform_0(%arg0: i32) -> (i32, i32, i32) {
    %c0_i32 = arith.constant 0 : i32
    %c0_i32_0 = arith.constant 0 : i32
    %c0_i32_1 = arith.constant 0 : i32
    return %arg0, %c0_i32, %c0_i32_0 : i32, i32, i32
  }
  func.func @transform_1(%arg0: i32) -> (i32, i32, i32) {
    %c0_i32 = arith.constant 0 : i32
    %c0_i32_0 = arith.constant 0 : i32
    %c0_i32_1 = arith.constant 0 : i32
    %c0_i32_2 = arith.constant 0 : i32
    return %c0_i32, %c0_i32_0, %c0_i32_1 : i32, i32, i32
  }
  func.func @transform_2(%arg0: i32) -> (i32, i32) {
    %c0_i32 = arith.constant 0 : i32
    %c0_i32_0 = arith.constant 0 : i32
    %c0_i32_1 = arith.constant 0 : i32
    return %c0_i32, %c0_i32_0 : i32, i32
  }
  func.func @transform_3(%arg0: i32) -> (i32, i32, i32) {
    %c0_i32 = arith.constant 0 : i32
    %c0_i32_0 = arith.constant 0 : i32
    %c0_i32_1 = arith.constant 0 : i32
    %c0_i32_2 = arith.constant 0 : i32
    return %c0_i32, %c0_i32_0, %c0_i32_1 : i32, i32, i32
  }
  func.func @transform_4(%arg0: i32) -> (i32, i32) {
    %c0_i32 = arith.constant 0 : i32
    %c0_i32_0 = arith.constant 0 : i32
    %c0_i32_1 = arith.constant 0 : i32
    return %c0_i32, %c0_i32_0 : i32, i32
  }
  func.func @transform_5(%arg0: i32) -> (i32, i32, i32) {
    %c0_i32 = arith.constant 0 : i32
    %c0_i32_0 = arith.constant 0 : i32
    %c0_i32_1 = arith.constant 0 : i32
    %c0_i32_2 = arith.constant 0 : i32
    return %c0_i32, %c0_i32_0, %c0_i32_1 : i32, i32, i32
  }
  func.func @transform_6(%arg0: i32) -> (i32, i32) {
    %c0_i32 = arith.constant 0 : i32
    %c0_i32_0 = arith.constant 0 : i32
    %c0_i32_1 = arith.constant 0 : i32
    return %c0_i32, %c0_i32_0 : i32, i32
  }
  func.func @transform_7(%arg0: i32) -> (i32, i32) {
    %c0_i32 = arith.constant 0 : i32
    %c0_i32_0 = arith.constant 0 : i32
    %c0_i32_1 = arith.constant 0 : i32
    return %c0_i32, %c0_i32_0 : i32, i32
  }
  func.func @transform_8(%arg0: i32) -> (i32, i32) {
    %c0_i32 = arith.constant 0 : i32
    %c0_i32_0 = arith.constant 0 : i32
    %c0_i32_1 = arith.constant 0 : i32
    return %c0_i32, %c0_i32_0 : i32, i32
  }
  func.func @transform_9(%arg0: i32) -> (i32, i32) {
    %c0_i32 = arith.constant 0 : i32
    %c0_i32_0 = arith.constant 0 : i32
    %c0_i32_1 = arith.constant 0 : i32
    return %c0_i32, %c0_i32_0 : i32, i32
  }
  func.func @transform_10(%arg0: i32) -> (i32, i32) {
    %c0_i32 = arith.constant 0 : i32
    %c0_i32_0 = arith.constant 0 : i32
    %c0_i32_1 = arith.constant 0 : i32
    return %c0_i32, %c0_i32_0 : i32, i32
  }
  func.func @transform_11(%arg0: i32) -> (i32, i32) {
    %c0_i32 = arith.constant 0 : i32
    %c0_i32_0 = arith.constant 0 : i32
    return %arg0, %c0_i32 : i32, i32
  }
}

</mosaic_0001>

<bundles_post_ra>
// kernel: my_network_forward.1
= control target key start
LH: loop header
LB: loop body
LE: loop exit
PB: predicated region body
PF: predicated region fallthrough
CT: control target
= control target key end

     0   :  { %vm225_vm0 = vcmask 1043456   ;;  %v8219_v3 = vmov 0.0   ;;  %vm110_vm1 = vcmask 1046528   ;;  %vm176_vm2 = vcmask 228352   ;;  %s8207_s1 = inlined_call_operand.vmem [shape: f32[5,28,240], index: 1, kind: input, shape index: {}]   ;;  %s8208_s0 = inlined_call_operand.vmem [shape: f32[8,28,28], index: 0, kind: input, shape index: {}]   ;;  %s8209_s2 = inlined_call_operand.vmem [shape: f32[1,240], index: 2, kind: input, shape index: {}]   ;;  %s8210_s9 = inlined_call_operand.vmem [shape: f32[256,192], index: 9, kind: input, shape index: {}]   ;;  %s8211_s3 = inlined_call_operand.vmem [shape: f32[5,120,160], index: 3, kind: input, shape index: {}]   ;;  %s8212_s4 = inlined_call_operand.vmem [shape: f32[1,160], index: 4, kind: input, shape index: {}]   ;;  %s8213_s10 = inlined_call_operand.vmem [shape: f32[128,64], index: 10, kind: input, shape index: {}]   ;;  %s8214_s5 = inlined_call_operand.vmem [shape: f32[4,80,50], index: 5, kind: input, shape index: {}]   ;;  %s8215_s7 = inlined_call_operand.vmem [shape: f32[50,10], index: 7, kind: input, shape index: {}]   ;;  %s8216_s6 = inlined_call_operand.vmem [shape: f32[1,50], index: 6, kind: input, shape index: {}]   ;;  %s8217_s8 = inlined_call_operand.vmem [shape: f32[1,10], index: 8, kind: input, shape index: {}]   ;;  %s8218_s11 = inlined_call_operand.vmem [shape: f32[8,10], index: 11, kind: output, shape index: {}]  }
   0x1   :  { %v4386_v0 = vld [vmem:[%s8207_s1 + $0x78] sm:$0xf]  ;;  %v4385_v2 = vld [vmem:[%s8207_s1 + $0x70] sm:$0xf]  ;;  %296 = vmatprep.mubr.f32.mxu0 %v8219_v3  ;;  %559 = vmatprep.mubr.f32.mxu1 %v8219_v3  ;;  %v4384_v5 = vld [vmem:[%s8207_s1 + $0x68] sm:$0xff]  ;;  %vm704_vm3 = vcmask 1045504  }
   0x2   :  { %v77_v1 = vld [vmem:[%s8207_s1 + $0x38] sm:$0xf]  ;;  %4387 = vmatprep.subr.msk.mxu0 %vm225_vm0, %v4386_v0  ;;  %v76_v4 = vld [vmem:[%s8207_s1 + $0x30] sm:$0xf]  ;;  %v75_v6 = vld [vmem:[%s8207_s1 + $0x28] sm:$0xff]  ;;  %vm1081_vm4 = vcmask 1044480  }
   0x3   :  { %4413 = vmatprep.subr.msk.mxu1 %vm225_vm0, %v77_v1  ;;  %4388 = vmatpush1.msk.msra.mxu0 %vm225_vm0, %v4385_v2  ;;  %v4383_v7 = vld [vmem:[%s8207_s1 + $0x60] sm:$0xff]  ;;  %v4382_v9 = vld [vmem:[%s8207_s1 + $0x58] sm:$0xff]  ;;  %v4381_v11 = vld [vmem:[%s8207_s1 + $0x50] sm:$0xff]  ;;  %vm2223_vm5 = vcmask 523264   ;;  %vm2086_vm6 = vcmask 64512   ;;  %vm2662_vm7 = vcmask 982016  }
   0x4   :  { %4414 = vmatpush1.msk.msra.mxu1 %vm225_vm0, %v76_v4  ;;  %v74_v8 = vld [vmem:[%s8207_s1 + $0x20] sm:$0xff]  ;;  %258 = vmatprep.subr.mxu0 %v4384_v5  ;;  %v73_v10 = vld [vmem:[%s8207_s1 + $0x18] sm:$0xff]  ;;  %v72_v12 = vld [vmem:[%s8207_s1 + $0x10] sm:$0xff]  ;;  %vm3613_vm8 = vcmask 392192   ;;  %vm5023_vm9 = vmmov 0   ;;  %vm3885_vm10 = vcmask 1041409  }
   0x5   :  { %521 = vmatprep.subr.mxu1 %v75_v6  ;;  %259 = vmatpush1.msra.mxu0 %v4383_v7  ;;  %v4380_v13 = vld [vmem:[%s8207_s1 + $0x48] sm:$0xff]  ;;  %v4379_v15 = vld [vmem:[%s8207_s1 + $0x40] sm:$0xff]  ;;  %v5153_v21 = vld [vmem:[%s8208_s0 + $0x10] sm:$0xff]  ;;  %vm3888_vm11 = vcmask 1042434   ;;  %vm3891_vm12 = vcmask 1043459   ;;  %vm3894_vm13 = vcmask 1044484  }
   0x6   :  { %522 = vmatpush1.msra.mxu1 %v74_v8  ;;  %v71_v14 = vld [vmem:[%s8207_s1 + $0x8] sm:$0xff]  ;;  %260 = vmatprep.subr.mxu0 %v4382_v9  ;;  %v70_v16 = vld [vmem:[%s8207_s1] sm:$0xff]  ;;  %v114_v22 = vrot.slane %v5153_v21, 1  ;;  %v5159_v23 = vld [vmem:[%s8208_s0 + $0x18] sm:$0xf]  ;;  %vm3897_vm14 = vcmask 1045509  }
   0x7   :  { %523 = vmatprep.subr.mxu1 %v73_v10  ;;  %v5141_v17 = vld [vmem:[%s8208_s0] sm:$0xff]  ;;  %v5146_v18 = vld [vmem:[%s8208_s0 + $0x8] sm:$0xff]  ;;  %261 = vmatpush1.msra.mxu0 %v4381_v11  ;;  %v116_v26 = vrot.slane %v5159_v23, 1  ;;  %v4446_v29 = vld [vmem:[%s8207_s1 + $0xb8] sm:$0xf]  ;;  %vm3900_vm15 = vcmask 1046534  }
   0x8   :  { %524 = vmatpush1.msra.mxu1 %v72_v12  ;;  %v111_v19 = vrot.slane %v5141_v17, 1  ;;  %v112_v20 = vrot.slane %v5146_v18, 1  ;;  %262 = vmatprep.subr.mxu0 %v4380_v13  ;;  %v5172_v27 = vld [vmem:[%s8208_s0 + $0x20] sm:$0xff]  ;;  %v5177_v28 = vld [vmem:[%s8208_s0 + $0x28] sm:$0xff]  ;;  %v4445_v30 = vld [vmem:[%s8207_s1 + $0xb0] sm:$0xf] }
   0x9   :  { %525 = vmatprep.subr.mxu1 %v71_v14  ;;  %263 = vmatpush1.msra.mxu0 %v4379_v15  ;;  %v117_v31 = vsel %vm110_vm1, %v114_v22, %v116_v26  ;;  %v118_v32 = vrot.slane %v5172_v27, 1  ;;  %v119_v33 = vrot.slane %v5177_v28, 1  ;;  %v5197_v34 = vld [vmem:[%s8208_s0 + $0x30] sm:$0xff]  ;;  %v4444_v35 = vld [vmem:[%s8207_s1 + $0xa8] sm:$0xff]  ;;  %v4443_v36 = vld [vmem:[%s8207_s1 + $0xa0] sm:$0xff]  ;;  %v705_v45 = vrot.slane %v5141_v17, 2 }
   0xa   :  { %526 = vmatpush1.msra.mxu1 %v70_v16  ;;  %v113_v24 = vsel %vm110_vm1, %v111_v19, %v112_v20  ;;  %v115_v25 = vsel %vm110_vm1, %v112_v20, %v114_v22  ;;  %4447 = vmatprep.subr.msk.mxu0 %vm225_vm0, %v4446_v29  ;;  %v121_v38 = vrot.slane %v5197_v34, 1  ;;  %v4480_v39 = vld [vmem:[%s8207_s1 + $0xf8] sm:$0xf]  ;;  %v4479_v42 = vld [vmem:[%s8207_s1 + $0xf0] sm:$0xf]  ;;  %v4478_v43 = vld [vmem:[%s8207_s1 + $0xe8] sm:$0xff] }
   0xb   :  { %4389 = vmatmul.mubr.msk.f32.vlgmr.msra.gmra.mxu0 %vm176_vm2, %v113_v24  ;;  %4415 = vmatmul.mubr.msk.f32.vlgmr.msra.gmra.mxu1 %vm176_vm2, %v5141_v17  ;;  %v120_v37 = vsel %vm110_vm1, %v118_v32, %v119_v33  ;;  %v4442_v40 = vld [vmem:[%s8207_s1 + $0x98] sm:$0xff]  ;;  %v4441_v44 = vld [vmem:[%s8207_s1 + $0x90] sm:$0xff]  ;;  %v4477_v46 = vld [vmem:[%s8207_s1 + $0xe0] sm:$0xff]  ;;  %v706_v48 = vrot.slane %v5146_v18, 2  ;;  %v1082_v49 = vrot.slane %v5141_v17, 3  ;;  %v1083_v50 = vrot.slane %v5146_v18, 3 }
   0xc   :  { %302 = vmatprep.mubr.f32.mxu0 %v8219_v3  ;;  %565 = vmatprep.mubr.f32.mxu1 %v8219_v3  ;;  %v5222_v41 = vld [vmem:[%s8208_s0 + $0x38] sm:$0xf]  ;;  %v4440_v47 = vld [vmem:[%s8207_s1 + $0x88] sm:$0xff]  ;;  %v122_v51 = vsel %vm110_vm1, %v119_v33, %v121_v38  ;;  %v5255_v53 = vld [vmem:[%s8208_s0 + $0x40] sm:$0xff] }
   0xd   :  { %4448 = vmatpush1.msk.msra.mxu0 %vm225_vm0, %v4445_v30  ;;  %4481 = vmatprep.subr.msk.mxu1 %vm225_vm0, %v4480_v39  ;;  %v123_v52 = vrot.slane %v5222_v41, 1  ;;  %v5260_v54 = vld [vmem:[%s8208_s0 + $0x48] sm:$0xff]  ;;  %v5265_v55 = vsel %vm704_vm3, %v705_v45, %v706_v48  ;;  %v5270_v56 = vsel %vm1081_vm4, %v1082_v49, %v1083_v50  ;;  %v4476_v57 = vld [vmem:[%s8207_s1 + $0xd8] sm:$0xff]  ;;  %v4439_v58 = vld [vmem:[%s8207_s1 + $0x80] sm:$0xff]  ;;  %v125_v62 = vrot.slane %v5255_v53, 1 }
   0xe   :  { %850 = vmatprep.subr.mxu0 %v4444_v35  ;;  %4482 = vmatpush1.msk.msra.mxu1 %vm225_vm0, %v4479_v42  ;;  %v4475_v59 = vld [vmem:[%s8207_s1 + $0xd0] sm:$0xff]  ;;  %v4514_v60 = vld [vmem:[%s8207_s1 + $0x138] sm:$0xf]  ;;  %v126_v63 = vrot.slane %v5260_v54, 1  ;;  %v4474_v1 = vld [vmem:[%s8207_s1 + $0xc8] sm:$0xff] }
   0xf   :  { %4390 = vmatmul.mubr.msk.f32.gmra.mxu0 %vm176_vm2, %v115_v25  ;;  %4416 = vmatmul.mubr.msk.f32.gmra.mxu1 %vm176_vm2, %v5146_v18  ;;  %v124_v61 = vsel %vm110_vm1, %v121_v38, %v123_v52  ;;  %v5295_v0 = vld [vmem:[%s8208_s0 + $0x50] sm:$0xff]  ;;  %v4473_v2 = vld [vmem:[%s8207_s1 + $0xc0] sm:$0xff]  ;;  %v5314_v6 = vld [vmem:[%s8208_s0 + $0x58] sm:$0xf]  ;;  %v1458_v52 = vrot.slane %v5141_v17, 4 }
  0x10   :  { %308 = vmatprep.mubr.f32.mxu0 %v8219_v3  ;;  %571 = vmatprep.mubr.f32.mxu1 %v8219_v3  ;;  %v127_v4 = vsel %vm110_vm1, %v125_v62, %v126_v63  ;;  %v128_v5 = vrot.slane %v5295_v0, 1  ;;  %v130_v8 = vrot.slane %v5314_v6, 1  ;;  %v5326_v9 = vld [vmem:[%s8208_s0 + $0x60] sm:$0xff]  ;;  %v5331_v10 = vld [vmem:[%s8208_s0 + $0x68] sm:$0xff]  ;;  %v5345_v14 = vld [vmem:[%s8208_s0 + $0x70] sm:$0xff] }
  0x11   :  { %851 = vmatpush1.msra.mxu0 %v4443_v36  ;;  %1227 = vmatprep.subr.mxu1 %v4478_v43  ;;  %v132_v12 = vrot.slane %v5326_v9, 1  ;;  %v133_v13 = vrot.slane %v5331_v10, 1  ;;  %v135_v16 = vrot.slane %v5345_v14, 1  ;;  %v5357_v19 = vld [vmem:[%s8208_s0 + $0x78] sm:$0xf]  ;;  %v5369_v24 = vld [vmem:[%s8208_s0 + $0x80] sm:$0xff] }
  0x12   :  { %852 = vmatprep.subr.mxu0 %v4442_v40  ;;  %1228 = vmatpush1.msra.mxu1 %v4477_v46  ;;  %v129_v7 = vsel %vm110_vm1, %v126_v63, %v128_v5  ;;  %v131_v11 = vsel %vm110_vm1, %v128_v5, %v130_v8  ;;  %v137_v22 = vrot.slane %v5357_v19, 1  ;;  %v5374_v25 = vld [vmem:[%s8208_s0 + $0x88] sm:$0xff]  ;;  %v139_v29 = vrot.slane %v5369_v24, 1  ;;  %v5399_v35 = vld [vmem:[%s8208_s0 + $0x98] sm:$0xf]  ;;  %v5411_v38 = vld [vmem:[%s8208_s0 + $0xa0] sm:$0xff] }
  0x13   :  { %4391 = vmatmul.mubr.msk.f32.gmra.mxu0 %vm176_vm2, %v117_v31  ;;  %4417 = vmatmul.mubr.msk.f32.gmra.mxu1 %vm176_vm2, %v5153_v21  ;;  %v134_v15 = vsel %vm110_vm1, %v132_v12, %v133_v13  ;;  %v136_v20 = vsel %vm110_vm1, %v133_v13, %v135_v16  ;;  %v140_v30 = vrot.slane %v5374_v25, 1  ;;  %v5387_v31 = vld [vmem:[%s8208_s0 + $0x90] sm:$0xff]  ;;  %v5416_v39 = vld [vmem:[%s8208_s0 + $0xa8] sm:$0xff]  ;;  %v146_v42 = vrot.slane %v5411_v38, 1  ;;  %v5502_v8 = vld [vmem:[%s8208_s0 + $0xe0] sm:$0xff] }
  0x14   :  { %314 = vmatprep.mubr.f32.mxu0 %v8219_v3  ;;  %577 = vmatprep.mubr.f32.mxu1 %v8219_v3  ;;  %v138_v26 = vsel %vm110_vm1, %v135_v16, %v137_v22  ;;  %v142_v33 = vrot.slane %v5387_v31, 1  ;;  %v147_v43 = vrot.slane %v5416_v39, 1  ;;  %v5478_v63 = vld [vmem:[%s8208_s0 + $0xd0] sm:$0xff]  ;;  %v160_v13 = vrot.slane %v5502_v8, 1 }
  0x15   :  { %853 = vmatpush1.msra.mxu0 %v4441_v44  ;;  %1229 = vmatprep.subr.mxu1 %v4476_v57  ;;  %v141_v32 = vsel %vm110_vm1, %v139_v29, %v140_v30  ;;  %v5429_v44 = vld [vmem:[%s8208_s0 + $0xb0] sm:$0xff]  ;;  %v1459_v57 = vrot.slane %v5146_v18, 4  ;;  %v1465_v18 = vrot.slane %v5172_v27, 4 }
  0x16   :  { %854 = vmatprep.subr.mxu0 %v4440_v47  ;;  %1230 = vmatpush1.msra.mxu1 %v4475_v59  ;;  %v143_v36 = vsel %vm110_vm1, %v140_v30, %v142_v33  ;;  %v148_v45 = vsel %vm110_vm1, %v146_v42, %v147_v43  ;;  %v149_v46 = vrot.slane %v5429_v44, 1  ;;  %v5441_v47 = vld [vmem:[%s8208_s0 + $0xb8] sm:$0xf]  ;;  %v5460_v59 = vld [vmem:[%s8208_s0 + $0xc8] sm:$0xff]  ;;  %v5520_v16 = vld [vmem:[%s8208_s0 + $0xf0] sm:$0xff] }
  0x17   :  { %4392 = vmatmul.mubr.msk.f32.gmra.mxu0 %vm176_vm2, %v120_v37  ;;  %4418 = vmatmul.mubr.msk.f32.gmra.mxu1 %vm176_vm2, %v5172_v27  ;;  %v144_v37 = vrot.slane %v5399_v35, 1  ;;  %v154_v62 = vrot.slane %v5460_v59, 1  ;;  %v163_v22 = vrot.slane %v5520_v16, 1  ;;  %v4512_v42 = vld [vmem:[%s8207_s1 + $0x128] sm:$0xff] }
  0x18   :  { %320 = vmatprep.mubr.f32.mxu0 %v8219_v3  ;;  %583 = vmatprep.mubr.f32.mxu1 %v8219_v3  ;;  %v150_v49 = vsel %vm110_vm1, %v147_v43, %v149_v46 }
  0x19   :  { %855 = vmatpush1.msra.mxu0 %v4439_v58  ;;  %1231 = vmatprep.subr.mxu1 %v4474_v1  ;;  %v145_v40 = vsel %vm110_vm1, %v142_v33, %v144_v37  ;;  %v5455_v58 = vld [vmem:[%s8208_s0 + $0xc0] sm:$0xff]  ;;  %v708_v33 = vrot.slane %v5153_v21, 2  ;;  %v4513_v37 = vld [vmem:[%s8207_s1 + $0x130] sm:$0xf] }
  0x1a   :  { %4515 = vmatprep.subr.msk.mxu0 %vm225_vm0, %v4514_v60  ;;  %1232 = vmatpush1.msra.mxu1 %v4473_v2  ;;  %v5465_v60 = vsel %vm225_vm0, %v1458_v52, %v1459_v57  ;;  %v156_v2 = vrot.slane %v5478_v63, 1  ;;  %v1089_v52 = vrot.slane %v5172_v27, 3 }
  0x1b   :  { %4393 = vmatmul.mubr.msk.f32.gmra.mxu0 %vm176_vm2, %v122_v51  ;;  %4419 = vmatmul.mubr.msk.f32.gmra.mxu1 %vm176_vm2, %v5177_v28  ;;  %v151_v51 = vrot.slane %v5441_v47, 1  ;;  %v709_v43 = vsel %vm704_vm3, %v706_v48, %v708_v33 }
  0x1c   :  { %326 = vmatprep.mubr.f32.mxu0 %v8219_v3  ;;  %589 = vmatprep.mubr.f32.mxu1 %v8219_v3  ;;  %v157_v5 = vsel %vm110_vm1, %v154_v62, %v156_v2 }
  0x1d   :  { %2320 = vmatprep.subr.mxu1 %v8219_v3  ;;  %v152_v17 = vsel %vm110_vm1, %v149_v46, %v151_v51  ;;  %v712_v46 = vrot.slane %v5172_v27, 2  ;;  %v713_v51 = vrot.slane %v5177_v28, 2 }
  0x1f   :  { %4394 = vmatmul.mubr.msk.f32.gmra.mxu0 %vm176_vm2, %v124_v61  ;;  %4420 = vmatmul.mubr.msk.f32.gmra.mxu1 %vm176_vm2, %v5197_v34  ;;  %v153_v61 = vrot.slane %v5455_v58, 1 }
  0x20   :  { %332 = vmatprep.mubr.f32.mxu0 %v8219_v3  ;;  %595 = vmatprep.mubr.f32.mxu1 %v8219_v3 }
  0x21   :  { %v155_v1 = vsel %vm110_vm1, %v153_v61, %v154_v62  ;;  %v4509_v61 = vld [vmem:[%s8207_s1 + $0x110] sm:$0xff]  ;;  %v4508_v62 = vld [vmem:[%s8207_s1 + $0x108] sm:$0xff] }
  0x23   :  { %4395 = vmatmul.mubr.msk.f32.gmra.mxu0 %vm176_vm2, %v127_v4  ;;  %4421 = vmatmul.mubr.msk.f32.gmra.mxu1 %vm176_vm2, %v5255_v53  ;;  %v5490_v4 = vld [vmem:[%s8208_s0 + $0xd8] sm:$0xf] }
  0x24   :  { %338 = vmatprep.mubr.f32.mxu0 %v8219_v3  ;;  %601 = vmatprep.mubr.f32.mxu1 %v8219_v3 }
  0x27   :  { %4396 = vmatmul.mubr.msk.f32.gmra.mxu0 %vm176_vm2, %v129_v7  ;;  %4422 = vmatmul.mubr.msk.f32.gmra.mxu1 %vm176_vm2, %v5260_v54  ;;  %v158_v7 = vrot.slane %v5490_v4, 1 }
  0x28   :  { %344 = vmatprep.mubr.f32.mxu0 %v8219_v3  ;;  %607 = vmatprep.mubr.f32.mxu1 %v8219_v3 }
  0x29   :  { %v159_v12 = vsel %vm110_vm1, %v156_v2, %v158_v7  ;;  %v1092_v7 = vrot.slane %v5197_v34, 3 }
  0x2b   :  { %4397 = vmatmul.mubr.msk.f32.gmra.mxu0 %vm176_vm2, %v131_v11  ;;  %4423 = vmatmul.mubr.msk.f32.gmra.mxu1 %vm176_vm2, %v5295_v0  ;;  %v5507_v11 = vld [vmem:[%s8208_s0 + $0xe8] sm:$0xff] }
  0x2c   :  { %350 = vmatprep.mubr.f32.mxu0 %v8219_v3  ;;  %613 = vmatprep.mubr.f32.mxu1 %v8219_v3 }
  0x2f   :  { %4398 = vmatmul.mubr.msk.f32.gmra.mxu0 %vm176_vm2, %v134_v15  ;;  %4424 = vmatmul.mubr.msk.f32.gmra.mxu1 %vm176_vm2, %v5326_v9  ;;  %v161_v15 = vrot.slane %v5507_v11, 1 }
  0x30   :  { %356 = vmatprep.mubr.f32.mxu0 %v8219_v3  ;;  %619 = vmatprep.mubr.f32.mxu1 %v8219_v3 }
  0x31   :  { %v164_v29 = vsel %vm110_vm1, %v161_v15, %v163_v22 }
  0x33   :  { %4399 = vmatmul.mubr.msk.f32.gmra.mxu0 %vm176_vm2, %v136_v20  ;;  %4425 = vmatmul.mubr.msk.f32.gmra.mxu1 %vm176_vm2, %v5331_v10  ;;  %v162_v20 = vsel %vm110_vm1, %v160_v13, %v161_v15 }
  0x34   :  { %362 = vmatprep.mubr.f32.mxu0 %v8219_v3  ;;  %625 = vmatprep.mubr.f32.mxu1 %v8219_v3 }
  0x37   :  { %4400 = vmatmul.mubr.msk.f32.gmra.mxu0 %vm176_vm2, %v138_v26  ;;  %4426 = vmatmul.mubr.msk.f32.gmra.mxu1 %vm176_vm2, %v5345_v14  ;;  %v5532_v26 = vld [vmem:[%s8208_s0 + $0xf8] sm:$0xf] }
  0x38   :  { %368 = vmatprep.mubr.f32.mxu0 %v8219_v3  ;;  %631 = vmatprep.mubr.f32.mxu1 %v8219_v3  ;;  %v165_v30 = vrot.slane %v5532_v26, 1 }
  0x3b   :  { %4401 = vmatmul.mubr.msk.f32.gmra.mxu0 %vm176_vm2, %v141_v32  ;;  %4427 = vmatmul.mubr.msk.f32.gmra.mxu1 %vm176_vm2, %v5369_v24  ;;  %v166_v32 = vsel %vm110_vm1, %v163_v22, %v165_v30  ;;  %v1094_v22 = vrot.slane %v5222_v41, 3  ;;  %v720_v30 = vrot.slane %v5260_v54, 2 }
  0x3c   :  { %374 = vmatprep.mubr.f32.mxu0 %v8219_v3  ;;  %637 = vmatprep.mubr.f32.mxu1 %v8219_v3 }
  0x3f   :  { %4402 = vmatmul.mubr.msk.f32.gmra.mxu0 %vm176_vm2, %v143_v36  ;;  %4428 = vmatmul.mubr.msk.f32.gmra.mxu1 %vm176_vm2, %v5374_v25  ;;  %v1085_v36 = vrot.slane %v5153_v21, 3 }
  0x40   :  { %380 = vmatprep.mubr.f32.mxu0 %v8219_v3  ;;  %643 = vmatprep.mubr.f32.mxu1 %v8219_v3 }
  0x43   :  { %4403 = vmatmul.mubr.msk.f32.gmra.mxu0 %vm176_vm2, %v145_v40  ;;  %4429 = vmatmul.mubr.msk.f32.gmra.mxu1 %vm176_vm2, %v5387_v31  ;;  %v710_v40 = vrot.slane %v5159_v23, 2 }
  0x44   :  { %386 = vmatprep.mubr.f32.mxu0 %v8219_v3  ;;  %649 = vmatprep.mubr.f32.mxu1 %v8219_v3 }
  0x45   :  { %v711_v48 = vsel %vm704_vm3, %v708_v33, %v710_v40  ;;  %v1095_v33 = vsel %vm1081_vm4, %v1092_v7, %v1094_v22  ;;  %v734_v22 = vrot.slane %v5374_v25, 2 }
  0x47   :  { %4404 = vmatmul.mubr.msk.f32.gmra.mxu0 %vm176_vm2, %v148_v45  ;;  %4430 = vmatmul.mubr.msk.f32.gmra.mxu1 %vm176_vm2, %v5411_v38  ;;  %v4511_v45 = vld [vmem:[%s8207_s1 + $0x120] sm:$0xff] }
  0x48   :  { %392 = vmatprep.mubr.f32.mxu0 %v8219_v3  ;;  %655 = vmatprep.mubr.f32.mxu1 %v8219_v3 }
  0x4b   :  { %4405 = vmatmul.mubr.msk.f32.gmra.mxu0 %vm176_vm2, %v150_v49  ;;  %4431 = vmatmul.mubr.msk.f32.gmra.mxu1 %vm176_vm2, %v5416_v39 }
  0x4c   :  { %398 = vmatprep.mubr.f32.mxu0 %v8219_v3  ;;  %661 = vmatprep.mubr.f32.mxu1 %v8219_v3 }
  0x4f   :  { %4406 = vmatmul.mubr.msk.f32.gmra.mxu0 %vm176_vm2, %v152_v17  ;;  %4432 = vmatmul.mubr.msk.f32.gmra.mxu1 %vm176_vm2, %v5429_v44  ;;  %v1090_v17 = vrot.slane %v5177_v28, 3 }
  0x50   :  { %404 = vmatprep.mubr.f32.mxu0 %v8219_v3  ;;  %667 = vmatprep.mubr.f32.mxu1 %v8219_v3 }
  0x51   :  { %v1091_v2 = vsel %vm1081_vm4, %v1089_v52, %v1090_v17  ;;  %v1093_v15 = vsel %vm1081_vm4, %v1090_v17, %v1092_v7  ;;  %v1103_v17 = vrot.slane %v5326_v9, 3 }
  0x53   :  { %4407 = vmatmul.mubr.msk.f32.gmra.mxu0 %vm176_vm2, %v155_v1  ;;  %4433 = vmatmul.mubr.msk.f32.gmra.mxu1 %vm176_vm2, %v5455_v58  ;;  %v714_v1 = vsel %vm704_vm3, %v712_v46, %v713_v51  ;;  %v1101_v46 = vrot.slane %v5314_v6, 3 }
  0x54   :  { %410 = vmatprep.mubr.f32.mxu0 %v8219_v3  ;;  %673 = vmatprep.mubr.f32.mxu1 %v8219_v3 }
  0x57   :  { %4408 = vmatmul.mubr.msk.f32.gmra.mxu0 %vm176_vm2, %v157_v5  ;;  %4434 = vmatmul.mubr.msk.f32.gmra.mxu1 %vm176_vm2, %v5460_v59  ;;  %v715_v5 = vrot.slane %v5197_v34, 2 }
  0x58   :  { %416 = vmatprep.mubr.f32.mxu0 %v8219_v3  ;;  %679 = vmatprep.mubr.f32.mxu1 %v8219_v3 }
  0x59   :  { %v716_v13 = vsel %vm704_vm3, %v713_v51, %v715_v5 }
  0x5b   :  { %4409 = vmatmul.mubr.msk.f32.gmra.mxu0 %vm176_vm2, %v159_v12  ;;  %4435 = vmatmul.mubr.msk.f32.gmra.mxu1 %vm176_vm2, %v5478_v63  ;;  %v4507_v12 = vld [vmem:[%s8207_s1 + $0x100] sm:$0xff] }
  0x5c   :  { %422 = vmatprep.mubr.f32.mxu0 %v8219_v3  ;;  %685 = vmatprep.mubr.f32.mxu1 %v8219_v3 }
  0x5f   :  { %4410 = vmatmul.mubr.msk.f32.gmra.mxu0 %vm176_vm2, %v162_v20  ;;  %4436 = vmatmul.mubr.msk.f32.gmra.mxu1 %vm176_vm2, %v5502_v8  ;;  %v717_v20 = vrot.slane %v5222_v41, 2 }
  0x60   :  { %428 = vmatprep.mubr.f32.mxu0 %v8219_v3  ;;  %691 = vmatprep.mubr.f32.mxu1 %v8219_v3 }
  0x63   :  { %4411 = vmatmul.mubr.msk.f32.gmra.mxu0 %vm176_vm2, %v164_v29  ;;  %4437 = vmatmul.mubr.msk.f32.gmra.mxu1 %vm176_vm2, %v5507_v11  ;;  %v719_v29 = vrot.slane %v5255_v53, 2 }
  0x64   :  { %434 = vmatprep.mubr.f32.mxu0 %v8219_v3  ;;  %697 = vmatprep.mubr.f32.mxu1 %v8219_v3 }
  0x65   :  { %v721_v40 = vsel %vm704_vm3, %v719_v29, %v720_v30 }
  0x67   :  { %4412 = vmatmul.mubr.msk.f32.gmra.mxu0 %vm176_vm2, %v166_v32  ;;  %4438 = vmatmul.mubr.msk.f32.gmra.mxu1 %vm176_vm2, %v5520_v16  ;;  %v718_v32 = vsel %vm704_vm3, %v715_v5, %v717_v20  ;;  %v1106_v5 = vrot.slane %v5345_v14, 3  ;;  %v733_v20 = vrot.slane %v5369_v24, 2 }
  0x68   :  { %888 = vmatprep.mubr.f32.mxu0 %v8219_v3  ;;  %1265 = vmatprep.mubr.f32.mxu1 %v8219_v3 }
  0x6b   :  { %4449 = vmatmul.mubr.msk.f32.vlgmr.msra.gmra.mxu0 %vm176_vm2, %v5265_v55  ;;  %4483 = vmatmul.mubr.msk.f32.vlgmr.msra.gmra.mxu1 %vm176_vm2, %v5270_v56  ;;  %v1086_v55 = vsel %vm1081_vm4, %v1083_v50, %v1085_v36  ;;  %v1087_v56 = vrot.slane %v5159_v23, 3  ;;  %v4510_v50 = vld [vmem:[%s8207_s1 + $0x118] sm:$0xff] }
  0x6c   :  { %894 = vmatprep.mubr.f32.mxu0 %v8219_v3  ;;  %1271 = vmatprep.mubr.f32.mxu1 %v8219_v3 }
  0x6d   :  { %4516 = vmatpush1.msk.msra.mxu0 %vm225_vm0, %v4513_v37  ;;  %v1088_v49 = vsel %vm1081_vm4, %v1085_v36, %v1087_v56  ;;  %v1096_v36 = vrot.slane %v5255_v53, 3  ;;  %v1097_v37 = vrot.slane %v5260_v54, 3 }
  0x6e   :  { %1603 = vmatprep.subr.mxu0 %v4512_v42 }
  0x6f   :  { %4450 = vmatmul.mubr.msk.f32.gmra.mxu0 %vm176_vm2, %v709_v43  ;;  %4484 = vmatmul.mubr.msk.f32.gmra.mxu1 %vm176_vm2, %v1086_v55  ;;  %v1098_v42 = vsel %vm1081_vm4, %v1096_v36, %v1097_v37  ;;  %v722_v43 = vrot.slane %v5295_v0, 2  ;;  %v1099_v55 = vrot.slane %v5295_v0, 3  ;;  %v735_v36 = vsel %vm704_vm3, %v733_v20, %v734_v22 }
  0x70   :  { %900 = vmatprep.mubr.f32.mxu0 %v8219_v3  ;;  %1277 = vmatprep.mubr.f32.mxu1 %v8219_v3  ;;  %v747_v20 = vrot.slane %v5455_v58, 2 }
  0x71   :  { %1604 = vmatpush1.msra.mxu0 %v4511_v45  ;;  %v723_v56 = vsel %vm704_vm3, %v720_v30, %v722_v43  ;;  %v1100_v45 = vsel %vm1081_vm4, %v1097_v37, %v1099_v55  ;;  %v1102_v52 = vsel %vm1081_vm4, %v1099_v55, %v1101_v46  ;;  %v741_v46 = vrot.slane %v5416_v39, 2 }
  0x72   :  { %1605 = vmatprep.subr.mxu0 %v4510_v50  ;;  %v726_v50 = vrot.slane %v5326_v9, 2 }
  0x73   :  { %4451 = vmatmul.mubr.msk.f32.gmra.mxu0 %vm176_vm2, %v711_v48  ;;  %4485 = vmatmul.mubr.msk.f32.gmra.mxu1 %vm176_vm2, %v1088_v49  ;;  %v724_v48 = vrot.slane %v5314_v6, 2  ;;  %v727_v49 = vrot.slane %v5331_v10, 2 }
  0x74   :  { %906 = vmatprep.mubr.f32.mxu0 %v8219_v3  ;;  %1283 = vmatprep.mubr.f32.mxu1 %v8219_v3 }
  0x75   :  { %1606 = vmatpush1.msra.mxu0 %v4509_v61  ;;  %v725_v51 = vsel %vm704_vm3, %v722_v43, %v724_v48  ;;  %v1104_v61 = vrot.slane %v5331_v10, 3  ;;  %v740_v48 = vrot.slane %v5411_v38, 2 }
  0x76   :  { %1607 = vmatprep.subr.mxu0 %v4508_v62  ;;  %v728_v62 = vsel %vm704_vm3, %v726_v50, %v727_v49 }
  0x77   :  { %4452 = vmatmul.mubr.msk.f32.gmra.mxu0 %vm176_vm2, %v714_v1  ;;  %4486 = vmatmul.mubr.msk.f32.gmra.mxu1 %vm176_vm2, %v1091_v2  ;;  %v1105_v1 = vsel %vm1081_vm4, %v1103_v17, %v1104_v61  ;;  %v729_v2 = vrot.slane %v5345_v14, 2  ;;  %v742_v17 = vsel %vm704_vm3, %v740_v48, %v741_v46  ;;  %v754_v48 = vrot.slane %v5502_v8, 2 }
  0x78   :  { %912 = vmatprep.mubr.f32.mxu0 %v8219_v3  ;;  %1289 = vmatprep.mubr.f32.mxu1 %v8219_v3 }
  0x79   :  { %1608 = vmatpush1.msra.mxu0 %v4507_v12  ;;  %v730_v7 = vsel %vm704_vm3, %v727_v49, %v729_v2  ;;  %v1107_v12 = vsel %vm1081_vm4, %v1104_v61, %v1106_v5 }
  0x7b   :  { %4453 = vmatmul.mubr.msk.f32.gmra.mxu0 %vm176_vm2, %v716_v13  ;;  %4487 = vmatmul.mubr.msk.f32.gmra.mxu1 %vm176_vm2, %v1093_v15  ;;  %v731_v13 = vrot.slane %v5357_v19, 2  ;;  %v1108_v15 = vrot.slane %v5357_v19, 3 }
  0x7c   :  { %918 = vmatprep.mubr.f32.mxu0 %v8219_v3  ;;  %1295 = vmatprep.mubr.f32.mxu1 %v8219_v3 }
  0x7d   :  { %v732_v29 = vsel %vm704_vm3, %v729_v2, %v731_v13  ;;  %v1109_v30 = vsel %vm1081_vm4, %v1106_v5, %v1108_v15  ;;  %v745_v2 = vrot.slane %v5441_v47, 2  ;;  %v1122_v5 = vrot.slane %v5441_v47, 3 }
  0x7f   :  { %4454 = vmatmul.mubr.msk.f32.gmra.mxu0 %vm176_vm2, %v718_v32  ;;  %4488 = vmatmul.mubr.msk.f32.gmra.mxu1 %vm176_vm2, %v1095_v33  ;;  %v1110_v32 = vrot.slane %v5369_v24, 3  ;;  %v1111_v33 = vrot.slane %v5374_v25, 3 }
  0x80   :  { %924 = vmatprep.mubr.f32.mxu0 %v8219_v3  ;;  %1301 = vmatprep.mubr.f32.mxu1 %v8219_v3 }
  0x81   :  { %v1112_v37 = vsel %vm1081_vm4, %v1110_v32, %v1111_v33 }
  0x83   :  { %4455 = vmatmul.mubr.msk.f32.gmra.mxu0 %vm176_vm2, %v721_v40  ;;  %4489 = vmatmul.mubr.msk.f32.gmra.mxu1 %vm176_vm2, %v1098_v42  ;;  %v736_v40 = vrot.slane %v5387_v31, 2  ;;  %v1113_v42 = vrot.slane %v5387_v31, 3 }
  0x84   :  { %930 = vmatprep.mubr.f32.mxu0 %v8219_v3  ;;  %1307 = vmatprep.mubr.f32.mxu1 %v8219_v3 }
  0x85   :  { %v737_v43 = vsel %vm704_vm3, %v734_v22, %v736_v40  ;;  %v1114_v55 = vsel %vm1081_vm4, %v1111_v33, %v1113_v42  ;;  %v748_v22 = vrot.slane %v5460_v59, 2 }
  0x87   :  { %4456 = vmatmul.mubr.msk.f32.gmra.mxu0 %vm176_vm2, %v723_v56  ;;  %4490 = vmatmul.mubr.msk.f32.gmra.mxu1 %vm176_vm2, %v1100_v45  ;;  %v738_v56 = vrot.slane %v5399_v35, 2  ;;  %v1115_v45 = vrot.slane %v5399_v35, 3  ;;  %v749_v32 = vsel %vm704_vm3, %v747_v20, %v748_v22 }
  0x88   :  { %936 = vmatprep.mubr.f32.mxu0 %v8219_v3  ;;  %1313 = vmatprep.mubr.f32.mxu1 %v8219_v3 }
  0x89   :  { %v739_v50 = vsel %vm704_vm3, %v736_v40, %v738_v56  ;;  %v1116_v49 = vsel %vm1081_vm4, %v1113_v42, %v1115_v45  ;;  %v752_v40 = vrot.slane %v5490_v4, 2  ;;  %v1129_v42 = vrot.slane %v5490_v4, 3 }
  0x8b   :  { %4457 = vmatmul.mubr.msk.f32.gmra.mxu0 %vm176_vm2, %v725_v51  ;;  %4491 = vmatmul.mubr.msk.f32.gmra.mxu1 %vm176_vm2, %v1102_v52  ;;  %v1117_v51 = vrot.slane %v5411_v38, 3  ;;  %v1118_v52 = vrot.slane %v5416_v39, 3 }
  0x8c   :  { %942 = vmatprep.mubr.f32.mxu0 %v8219_v3  ;;  %1319 = vmatprep.mubr.f32.mxu1 %v8219_v3 }
  0x8d   :  { %v1119_v61 = vsel %vm1081_vm4, %v1117_v51, %v1118_v52 }
  0x8f   :  { %4458 = vmatmul.mubr.msk.f32.gmra.mxu0 %vm176_vm2, %v728_v62  ;;  %4492 = vmatmul.mubr.msk.f32.gmra.mxu1 %vm176_vm2, %v1105_v1  ;;  %v743_v62 = vrot.slane %v5429_v44, 2  ;;  %v1120_v1 = vrot.slane %v5429_v44, 3 }
  0x90   :  { %948 = vmatprep.mubr.f32.mxu0 %v8219_v3  ;;  %1325 = vmatprep.mubr.f32.mxu1 %v8219_v3 }
  0x91   :  { %v746_v13 = vsel %vm704_vm3, %v743_v62, %v745_v2  ;;  %v1123_v15 = vsel %vm1081_vm4, %v1120_v1, %v1122_v5  ;;  %v759_v2 = vrot.slane %v5532_v26, 2  ;;  %v1136_v5 = vrot.slane %v5532_v26, 3 }
  0x93   :  { %4459 = vmatmul.mubr.msk.f32.gmra.mxu0 %vm176_vm2, %v730_v7  ;;  %4493 = vmatmul.mubr.msk.f32.gmra.mxu1 %vm176_vm2, %v1107_v12  ;;  %v744_v7 = vsel %vm704_vm3, %v741_v46, %v743_v62  ;;  %v1121_v12 = vsel %vm1081_vm4, %v1118_v52, %v1120_v1  ;;  %v755_v46 = vrot.slane %v5507_v11, 2 }
  0x94   :  { %954 = vmatprep.mubr.f32.mxu0 %v8219_v3  ;;  %1331 = vmatprep.mubr.f32.mxu1 %v8219_v3 }
  0x95   :  { %v756_v51 = vsel %vm704_vm3, %v754_v48, %v755_v46 }
  0x97   :  { %4460 = vmatmul.mubr.msk.f32.gmra.mxu0 %vm176_vm2, %v732_v29  ;;  %4494 = vmatmul.mubr.msk.f32.gmra.mxu1 %vm176_vm2, %v1109_v30  ;;  %v1124_v29 = vrot.slane %v5455_v58, 3  ;;  %v1125_v30 = vrot.slane %v5460_v59, 3 }
  0x98   :  { %960 = vmatprep.mubr.f32.mxu0 %v8219_v3  ;;  %1337 = vmatprep.mubr.f32.mxu1 %v8219_v3 }
  0x99   :  { %v1126_v33 = vsel %vm1081_vm4, %v1124_v29, %v1125_v30 }
  0x9b   :  { %4461 = vmatmul.mubr.msk.f32.gmra.mxu0 %vm176_vm2, %v735_v36  ;;  %4495 = vmatmul.mubr.msk.f32.gmra.mxu1 %vm176_vm2, %v1112_v37  ;;  %v750_v36 = vrot.slane %v5478_v63, 2  ;;  %v1127_v37 = vrot.slane %v5478_v63, 3 }
  0x9c   :  { %966 = vmatprep.mubr.f32.mxu0 %v8219_v3  ;;  %1343 = vmatprep.mubr.f32.mxu1 %v8219_v3 }
  0x9d   :  { %v753_v56 = vsel %vm704_vm3, %v750_v36, %v752_v40  ;;  %v1130_v45 = vsel %vm1081_vm4, %v1127_v37, %v1129_v42 }
  0x9f   :  { %4462 = vmatmul.mubr.msk.f32.gmra.mxu0 %vm176_vm2, %v737_v43  ;;  %4496 = vmatmul.mubr.msk.f32.gmra.mxu1 %vm176_vm2, %v1114_v55  ;;  %v751_v43 = vsel %vm704_vm3, %v748_v22, %v750_v36  ;;  %v1128_v55 = vsel %vm1081_vm4, %v1125_v30, %v1127_v37  ;;  %v1463_v30 = vrot.slane %v5159_v23, 4 }
  0xa0   :  { %972 = vmatprep.mubr.f32.mxu0 %v8219_v3  ;;  %1349 = vmatprep.mubr.f32.mxu1 %v8219_v3 }
  0xa3   :  { %4463 = vmatmul.mubr.msk.f32.gmra.mxu0 %vm176_vm2, %v739_v50  ;;  %4497 = vmatmul.mubr.msk.f32.gmra.mxu1 %vm176_vm2, %v1116_v49  ;;  %v1131_v50 = vrot.slane %v5502_v8, 3  ;;  %v1132_v49 = vrot.slane %v5507_v11, 3 }
  0xa4   :  { %978 = vmatprep.mubr.f32.mxu0 %v8219_v3  ;;  %1355 = vmatprep.mubr.f32.mxu1 %v8219_v3 }
  0xa5   :  { %v1133_v52 = vsel %vm1081_vm4, %v1131_v50, %v1132_v49 }
  0xa7   :  { %4464 = vmatmul.mubr.msk.f32.gmra.mxu0 %vm176_vm2, %v742_v17  ;;  %4498 = vmatmul.mubr.msk.f32.gmra.mxu1 %vm176_vm2, %v1119_v61  ;;  %v757_v17 = vrot.slane %v5520_v16, 2  ;;  %v1134_v61 = vrot.slane %v5520_v16, 3 }
  0xa8   :  { %984 = vmatprep.mubr.f32.mxu0 %v8219_v3  ;;  %1361 = vmatprep.mubr.f32.mxu1 %v8219_v3 }
  0xa9   :  { %v758_v62 = vsel %vm704_vm3, %v755_v46, %v757_v17  ;;  %v1135_v1 = vsel %vm1081_vm4, %v1132_v49, %v1134_v61 }
  0xab   :  { %4465 = vmatmul.mubr.msk.f32.gmra.mxu0 %vm176_vm2, %v744_v7  ;;  %4499 = vmatmul.mubr.msk.f32.gmra.mxu1 %vm176_vm2, %v1121_v12  ;;  %v760_v7 = vsel %vm704_vm3, %v757_v17, %v759_v2  ;;  %v1137_v12 = vsel %vm1081_vm4, %v1134_v61, %v1136_v5  ;;  %v1472_v2 = vrot.slane %v5255_v53, 4  ;;  %v1473_v5 = vrot.slane %v5260_v54, 4 }
  0xac   :  { %990 = vmatprep.mubr.f32.mxu0 %v8219_v3  ;;  %1367 = vmatprep.mubr.f32.mxu1 %v8219_v3 }
  0xaf   :  { %4466 = vmatmul.mubr.msk.f32.gmra.mxu0 %vm176_vm2, %v746_v13  ;;  %4500 = vmatmul.mubr.msk.f32.gmra.mxu1 %vm176_vm2, %v1123_v15  ;;  %v1461_v13 = vrot.slane %v5153_v21, 4 }
  0xb0   :  { %996 = vmatprep.mubr.f32.mxu0 %v8219_v3  ;;  %1373 = vmatprep.mubr.f32.mxu1 %v8219_v3 }
  0xb1   :  { %v1462_v29 = vsel %vm225_vm0, %v1459_v57, %v1461_v13  ;;  %v1466_v57 = vrot.slane %v5177_v28, 4 }
  0xb3   :  { %4467 = vmatmul.mubr.msk.f32.gmra.mxu0 %vm176_vm2, %v749_v32  ;;  %4501 = vmatmul.mubr.msk.f32.gmra.mxu1 %vm176_vm2, %v1126_v33 }
  0xb4   :  { %1002 = vmatprep.mubr.f32.mxu0 %v8219_v3  ;;  %1379 = vmatprep.mubr.f32.mxu1 %v8219_v3 }
  0xb7   :  { %4468 = vmatmul.mubr.msk.f32.gmra.mxu0 %vm176_vm2, %v751_v43  ;;  %4502 = vmatmul.mubr.msk.f32.gmra.mxu1 %vm176_vm2, %v1128_v55 }
  0xb8   :  { %1008 = vmatprep.mubr.f32.mxu0 %v8219_v3  ;;  %1385 = vmatprep.mubr.f32.mxu1 %v8219_v3 }
  0xbb   :  { %4469 = vmatmul.mubr.msk.f32.gmra.mxu0 %vm176_vm2, %v753_v56  ;;  %4503 = vmatmul.mubr.msk.f32.gmra.mxu1 %vm176_vm2, %v1130_v45  ;;  %v1467_v56 = vsel %vm225_vm0, %v1465_v18, %v1466_v57  ;;  %v1468_v45 = vrot.slane %v5197_v34, 4  ;;  %v1477_v18 = vrot.slane %v5314_v6, 4 }
  0xbc   :  { %1014 = vmatprep.mubr.f32.mxu0 %v8219_v3  ;;  %1391 = vmatprep.mubr.f32.mxu1 %v8219_v3 }
  0xbd   :  { %v1469_v49 = vsel %vm225_vm0, %v1466_v57, %v1468_v45 }
  0xbf   :  { %4470 = vmatmul.mubr.msk.f32.gmra.mxu0 %vm176_vm2, %v756_v51  ;;  %4504 = vmatmul.mubr.msk.f32.gmra.mxu1 %vm176_vm2, %v1133_v52  ;;  %v1470_v51 = vrot.slane %v5222_v41, 4 }
  0xc0   :  { %1020 = vmatprep.mubr.f32.mxu0 %v8219_v3  ;;  %1397 = vmatprep.mubr.f32.mxu1 %v8219_v3 }
  0xc3   :  { %4471 = vmatmul.mubr.msk.f32.gmra.mxu0 %vm176_vm2, %v758_v62  ;;  %4505 = vmatmul.mubr.msk.f32.gmra.mxu1 %vm176_vm2, %v1135_v1  ;;  %v1471_v1 = vsel %vm225_vm0, %v1468_v45, %v1470_v51 }
  0xc4   :  { %1026 = vmatprep.mubr.f32.mxu0 %v8219_v3  ;;  %1403 = vmatprep.mubr.f32.mxu1 %v8219_v3 }
  0xc7   :  { %4472 = vmatmul.mubr.msk.f32.gmra.mxu0 %vm176_vm2, %v760_v7  ;;  %4506 = vmatmul.mubr.msk.f32.gmra.mxu1 %vm176_vm2, %v1137_v12 }
  0xc8   :  { %1641 = vmatprep.mubr.f32.mxu0 %v8219_v3 }
  0xcb   :  { %v298_v15 = vpop.f32.mrf.mxu0  ;;  %v561_v20 = vpop.f32.mrf.mxu1  ;;  %4517 = vmatmul.mubr.msk.f32.vlgmr.msra.gmra.mxu0 %vm176_vm2, %v5465_v60  ;;  %v1464_v60 = vsel %vm225_vm0, %v1461_v13, %v1463_v30 }
  0xcc   :  { %v5784_v22 = vadd.f32 %v561_v20, %v298_v15  ;;  %1647 = vmatprep.mubr.f32.mxu0 %v8219_v3  ;;  %v1474_v20 = vsel %vm225_vm0, %v1472_v2, %v1473_v5  ;;  %v1482_v2 = vrot.slane %v5345_v14, 4 }
  0xcd   :  { %v5791_v32 = vpop.f32.mrf.mxu0  ;;  %v5793_v33 = vpop.f32.mrf.mxu1 }
  0xce   :  { %8241 = vst [vmem:[#allocation2_spill] sm:$0xff] %v5791_v32  ;;  %8242 = vst [vmem:[#allocation3_spill] sm:$0xff] %v5793_v33 }
  0xcf   :  { %v304_v21 = vpop.f32.mrf.mxu0  ;;  %v567_v36 = vpop.f32.mrf.mxu1  ;;  %4518 = vmatmul.mubr.msk.f32.gmra.mxu0 %vm176_vm2, %v1462_v29  ;;  %v1475_v29 = vrot.slane %v5295_v0, 4 }
  0xd0   :  { %v5796_v37 = vadd.f32 %v567_v36, %v304_v21  ;;  %1653 = vmatprep.mubr.f32.mxu0 %v8219_v3 }
  0xd1   :  { %v5802_v40 = vpop.f32.mrf.mxu0  ;;  %v5804_v23 = vpop.f32.mrf.mxu1  ;;  %v1478_v45 = vsel %vm225_vm0, %v1475_v29, %v1477_v18 }
  0xd2   :  { %8243 = vst [vmem:[#allocation4_spill] sm:$0xff] %v5802_v40  ;;  %8244 = vst [vmem:[#allocation5_spill] sm:$0xff] %v5804_v23 }
  0xd3   :  { %v310_v42 = vpop.f32.mrf.mxu0  ;;  %v573_v43 = vpop.f32.mrf.mxu1  ;;  %4519 = vmatmul.mubr.msk.f32.gmra.mxu0 %vm176_vm2, %v1464_v60  ;;  %v1476_v60 = vsel %vm225_vm0, %v1473_v5, %v1475_v29  ;;  %v1484_v29 = vrot.slane %v5357_v19, 4 }
  0xd4   :  { %v5807_v55 = vadd.f32 %v573_v43, %v310_v42  ;;  %1659 = vmatprep.mubr.f32.mxu0 %v8219_v3 }
  0xd5   :  { %v5812_v48 = vpop.f32.mrf.mxu0  ;;  %v5814_v27 = vpop.f32.mrf.mxu1 }
  0xd6   :  { %8245 = vst [vmem:[#allocation6_spill] sm:$0xff] %v5812_v48  ;;  %8246 = vst [vmem:[#allocation7_spill] sm:$0xff] %v5814_v27 }
  0xd7   :  { %v316_v28 = vpop.f32.mrf.mxu0  ;;  %v579_v46 = vpop.f32.mrf.mxu1  ;;  %4520 = vmatmul.mubr.msk.f32.gmra.mxu0 %vm176_vm2, %v1467_v56 }
  0xd8   :  { %v5817_v50 = vadd.f32 %v579_v46, %v316_v28  ;;  %1665 = vmatprep.mubr.f32.mxu0 %v8219_v3  ;;  %v1479_v28 = vrot.slane %v5326_v9, 4  ;;  %v1480_v46 = vrot.slane %v5331_v10, 4 }
  0xd9   :  { %v5822_v52 = vpop.f32.mrf.mxu0  ;;  %v5824_v17 = vpop.f32.mrf.mxu1 }
  0xda   :  { %8247 = vst [vmem:[#allocation8_spill] sm:$0xff] %v5822_v52  ;;  %8248 = vst [vmem:[#allocation9_spill] sm:$0xff] %v5824_v17 }
  0xdb   :  { %v322_v34 = vpop.f32.mrf.mxu0  ;;  %v585_v61 = vpop.f32.mrf.mxu1  ;;  %4521 = vmatmul.mubr.msk.f32.gmra.mxu0 %vm176_vm2, %v1469_v49 }
  0xdc   :  { %v5827_v62 = vadd.f32 %v585_v61, %v322_v34  ;;  %1671 = vmatprep.mubr.f32.mxu0 %v8219_v3 }
  0xdd   :  { %v5833_v7 = vpop.f32.mrf.mxu0  ;;  %v5835_v41 = vpop.f32.mrf.mxu1 }
  0xdf   :  { %v328_v12 = vpop.f32.mrf.mxu0  ;;  %v591_v13 = vpop.f32.mrf.mxu1  ;;  %4522 = vmatmul.mubr.msk.f32.gmra.mxu0 %vm176_vm2, %v1471_v1  ;;  %v1481_v1 = vsel %vm225_vm0, %v1479_v28, %v1480_v46 }
  0xe0   :  { %v5838_v15 = vadd.f32 %v591_v13, %v328_v12  ;;  %1677 = vmatprep.mubr.f32.mxu0 %v8219_v3 }
  0xe1   :  { %v5843_v30 = vpop.f32.mrf.mxu0  ;;  %v5845_v53 = vpop.f32.mrf.mxu1 }
  0xe3   :  { %v334_v54 = vpop.f32.mrf.mxu0  ;;  %v597_v21 = vpop.f32.mrf.mxu1  ;;  %4523 = vmatmul.mubr.msk.f32.gmra.mxu0 %vm176_vm2, %v1474_v20  ;;  %v1483_v20 = vsel %vm225_vm0, %v1480_v46, %v1482_v2 }
  0xe4   :  { %v5848_v36 = vadd.f32 %v597_v21, %v334_v54  ;;  %1683 = vmatprep.mubr.f32.mxu0 %v8219_v3 }
  0xe5   :  { %v5853_v57 = vpop.f32.mrf.mxu0  ;;  %v5855_v42 = vpop.f32.mrf.mxu1 }
  0xe7   :  { %v340_v0 = vpop.f32.mrf.mxu0  ;;  %v603_v43 = vpop.f32.mrf.mxu1  ;;  %4524 = vmatmul.mubr.msk.f32.gmra.mxu0 %vm176_vm2, %v1476_v60 }
  0xe8   :  { %v5858_v56 = vadd.f32 %v603_v43, %v340_v0  ;;  %1689 = vmatprep.mubr.f32.mxu0 %v8219_v3  ;;  %v1485_v0 = vsel %vm225_vm0, %v1482_v2, %v1484_v29  ;;  %v1486_v43 = vrot.slane %v5369_v24, 4  ;;  %v1489_v2 = vrot.slane %v5387_v31, 4 }
  0xe9   :  { %v5864_v49 = vpop.f32.mrf.mxu0  ;;  %v5866_v6 = vpop.f32.mrf.mxu1 }
  0xeb   :  { %v346_v51 = vpop.f32.mrf.mxu0  ;;  %v609_v34 = vpop.f32.mrf.mxu1  ;;  %4525 = vmatmul.mubr.msk.f32.gmra.mxu0 %vm176_vm2, %v1478_v45  ;;  %v1487_v45 = vrot.slane %v5374_v25, 4 }
  0xec   :  { %v5869_v61 = vadd.f32 %v609_v34, %v346_v51  ;;  %1695 = vmatprep.mubr.f32.mxu0 %v8219_v3 }
  0xed   :  { %v5874_v5 = vpop.f32.mrf.mxu0  ;;  %v5876_v9 = vpop.f32.mrf.mxu1  ;;  %v1490_v29 = vsel %vm225_vm0, %v1487_v45, %v1489_v2 }
  0xef   :  { %v352_v10 = vpop.f32.mrf.mxu0  ;;  %v615_v12 = vpop.f32.mrf.mxu1  ;;  %4526 = vmatmul.mubr.msk.f32.gmra.mxu0 %vm176_vm2, %v1481_v1  ;;  %v1488_v1 = vsel %vm225_vm0, %v1486_v43, %v1487_v45  ;;  %v1494_v45 = vrot.slane %v5416_v39, 4 }
  0xf0   :  { %v5879_v13 = vadd.f32 %v615_v12, %v352_v10  ;;  %1701 = vmatprep.mubr.f32.mxu0 %v8219_v3 }
  0xf1   :  { %v5884_v54 = vpop.f32.mrf.mxu0  ;;  %v5886_v21 = vpop.f32.mrf.mxu1 }
  0xf3   :  { %v358_v14 = vpop.f32.mrf.mxu0  ;;  %v621_v60 = vpop.f32.mrf.mxu1  ;;  %4527 = vmatmul.mubr.msk.f32.gmra.mxu0 %vm176_vm2, %v1483_v20 }
  0xf4   :  { %v5889_v18 = vadd.f32 %v621_v60, %v358_v14  ;;  %1707 = vmatprep.mubr.f32.mxu0 %v8219_v3  ;;  %v1491_v14 = vrot.slane %v5399_v35, 4 }
  0xf5   :  { %v5895_v28 = vpop.f32.mrf.mxu0  ;;  %v5897_v19 = vpop.f32.mrf.mxu1 }
  0xf7   :  { %v364_v46 = vpop.f32.mrf.mxu0  ;;  %v627_v51 = vpop.f32.mrf.mxu1  ;;  %4528 = vmatmul.mubr.msk.f32.gmra.mxu0 %vm176_vm2, %v1485_v0 }
  0xf8   :  { %v5900_v34 = vadd.f32 %v627_v51, %v364_v46  ;;  %1713 = vmatprep.mubr.f32.mxu0 %v8219_v3  ;;  %v1492_v51 = vsel %vm225_vm0, %v1489_v2, %v1491_v14  ;;  %v1496_v2 = vrot.slane %v5429_v44, 4 }
  0xf9   :  { %v5905_v10 = vpop.f32.mrf.mxu0  ;;  %v5907_v24 = vpop.f32.mrf.mxu1 }
  0xfb   :  { %v370_v25 = vpop.f32.mrf.mxu0  ;;  %v633_v12 = vpop.f32.mrf.mxu1  ;;  %4529 = vmatmul.mubr.msk.f32.gmra.mxu0 %vm176_vm2, %v1488_v1  ;;  %v1493_v1 = vrot.slane %v5411_v38, 4 }
  0xfc   :  { %v5910_v20 = vadd.f32 %v633_v12, %v370_v25  ;;  %1719 = vmatprep.mubr.f32.mxu0 %v8219_v3 }
  0xfd   :  { %v5915_v60 = vpop.f32.mrf.mxu0  ;;  %v5917_v0 = vpop.f32.mrf.mxu1 }
  0xfe   :  { %8249 = vst [vmem:[#allocation10_spill] sm:$0xff] %v5917_v0 }
  0xff   :  { %v376_v31 = vpop.f32.mrf.mxu0  ;;  %v639_v43 = vpop.f32.mrf.mxu1  ;;  %4530 = vmatmul.mubr.msk.f32.gmra.mxu0 %vm176_vm2, %v1490_v29  ;;  %v1495_v29 = vsel %vm225_vm0, %v1493_v1, %v1494_v45 }
 0x100   :  { %v5920_v46 = vadd.f32 %v639_v43, %v376_v31  ;;  %1725 = vmatprep.mubr.f32.mxu0 %v8219_v3 }
 0x101   :  { %v5926_v25 = vpop.f32.mrf.mxu0  ;;  %v5928_v35 = vpop.f32.mrf.mxu1 }
 0x102   :  { %8250 = vst [vmem:[#allocation11_spill] sm:$0xff] %v5926_v25  ;;  %8251 = vst [vmem:[#allocation12_spill] sm:$0xff] %v5928_v35 }
 0x103   :  { %v382_v12 = vpop.f32.mrf.mxu0  ;;  %v645_v33 = vpop.f32.mrf.mxu1  ;;  %4531 = vmatmul.mubr.msk.f32.gmra.mxu0 %vm176_vm2, %v1492_v51  ;;  %v1498_v51 = vrot.slane %v5441_v47, 4 }
 0x104   :  { %v5931_v32 = vadd.f32 %v645_v33, %v382_v12  ;;  %1731 = vmatprep.mubr.f32.mxu0 %v8219_v3  ;;  %v1497_v33 = vsel %vm225_vm0, %v1494_v45, %v1496_v2  ;;  %v1501_v45 = vrot.slane %v5460_v59, 4 }
 0x105   :  { %v5936_v14 = vpop.f32.mrf.mxu0  ;;  %v5938_v38 = vpop.f32.mrf.mxu1 }
 0x106   :  { %8252 = vst [vmem:[#allocation13_spill] sm:$0xff] %v5936_v14  ;;  %8253 = vst [vmem:[#allocation14_spill] sm:$0xff] %v5938_v38 }
 0x107   :  { %v388_v39 = vpop.f32.mrf.mxu0  ;;  %v651_v31 = vpop.f32.mrf.mxu1  ;;  %4532 = vmatmul.mubr.msk.f32.gmra.mxu0 %vm176_vm2, %v1495_v29  ;;  %v1499_v29 = vsel %vm225_vm0, %v1496_v2, %v1498_v51  ;;  %v1503_v2 = vrot.slane %v5478_v63, 4 }
 0x108   :  { %v5941_v43 = vadd.f32 %v651_v31, %v388_v39  ;;  %1737 = vmatprep.mubr.f32.mxu0 %v8219_v3  ;;  %v1500_v39 = vrot.slane %v5455_v58, 4 }
 0x109   :  { %v5946_v12 = vpop.f32.mrf.mxu0  ;;  %v5948_v1 = vpop.f32.mrf.mxu1 }
 0x10a   :  { %8254 = vst [vmem:[#allocation15_spill] sm:$0xff] %v5946_v12  ;;  %8255 = vst [vmem:[#allocation16_spill] sm:$0xff] %v5948_v1 }
 0x10b   :  { %v394_v44 = vpop.f32.mrf.mxu0  ;;  %v657_v23 = vpop.f32.mrf.mxu1  ;;  %4533 = vmatmul.mubr.msk.f32.gmra.mxu0 %vm176_vm2, %v1497_v33 }
 0x10c   :  { %v5951_v40 = vadd.f32 %v657_v23, %v394_v44  ;;  %1743 = vmatprep.mubr.f32.mxu0 %v8219_v3  ;;  %v1502_v23 = vsel %vm225_vm0, %v1500_v39, %v1501_v45 }
 0x10d   :  { %v5957_v31 = vpop.f32.mrf.mxu0  ;;  %v5959_v47 = vpop.f32.mrf.mxu1 }
 0x10e   :  { %8256 = vst [vmem:[#allocation17_spill] sm:$0xff] %v5957_v31  ;;  %8257 = vst [vmem:[#allocation18_spill] sm:$0xff] %v5959_v47 }
 0x10f   :  { %v400_v27 = vpop.f32.mrf.mxu0  ;;  %v663_v48 = vpop.f32.mrf.mxu1  ;;  %4534 = vmatmul.mubr.msk.f32.gmra.mxu0 %vm176_vm2, %v1499_v29 }
 0x110   :  { %v5962_v1 = vadd.f32 %v663_v48, %v400_v27  ;;  %1749 = vmatprep.mubr.f32.mxu0 %v8219_v3  ;;  %v1504_v48 = vsel %vm225_vm0, %v1501_v45, %v1503_v2  ;;  %v1505_v27 = vrot.slane %v5490_v4, 4  ;;  %v1508_v45 = vrot.slane %v5507_v11, 4 }
 0x111   :  { %v5967_v33 = vpop.f32.mrf.mxu0  ;;  %v5969_v58 = vpop.f32.mrf.mxu1 }
 0x112   :  { %8258 = vst [vmem:[#allocation19_spill] sm:$0xff] %v5967_v33  ;;  %8259 = vst [vmem:[#allocation20_spill] sm:$0xff] %v5969_v58 }
 0x113   :  { %v406_v59 = vpop.f32.mrf.mxu0  ;;  %v669_v51 = vpop.f32.mrf.mxu1  ;;  %4535 = vmatmul.mubr.msk.f32.gmra.mxu0 %vm176_vm2, %v1502_v23  ;;  %v1506_v23 = vsel %vm225_vm0, %v1503_v2, %v1505_v27  ;;  %v1510_v2 = vrot.slane %v5520_v16, 4 }
 0x114   :  { %v5972_v44 = vadd.f32 %v669_v51, %v406_v59  ;;  %1755 = vmatprep.mubr.f32.mxu0 %v8219_v3  ;;  %v1507_v59 = vrot.slane %v5502_v8, 4 }
 0x115   :  { %v5977_v29 = vpop.f32.mrf.mxu0  ;;  %v5979_v39 = vpop.f32.mrf.mxu1 }
 0x116   :  { %8260 = vst [vmem:[#allocation21_spill] sm:$0xff] %v5977_v29  ;;  %8261 = vst [vmem:[#allocation22_spill] sm:$0xff] %v5979_v39 }
 0x117   :  { %v412_v63 = vpop.f32.mrf.mxu0  ;;  %v675_v47 = vpop.f32.mrf.mxu1  ;;  %4536 = vmatmul.mubr.msk.f32.gmra.mxu0 %vm176_vm2, %v1504_v48 }
 0x118   :  { %v5982_v31 = vadd.f32 %v675_v47, %v412_v63  ;;  %1761 = vmatprep.mubr.f32.mxu0 %v8219_v3  ;;  %v1509_v47 = vsel %vm225_vm0, %v1507_v59, %v1508_v45 }
 0x119   :  { %v5988_v51 = vpop.f32.mrf.mxu0  ;;  %v5990_v4 = vpop.f32.mrf.mxu1 }
 0x11a   :  { %8262 = vst [vmem:[#allocation23_spill] sm:$0xff] %v5988_v51  ;;  %8263 = vst [vmem:[#allocation24_spill] sm:$0xff] %v5990_v4 }
 0x11b   :  { %v418_v58 = vpop.f32.mrf.mxu0  ;;  %v681_v33 = vpop.f32.mrf.mxu1  ;;  %4537 = vmatmul.mubr.msk.f32.gmra.mxu0 %vm176_vm2, %v1506_v23 }
 0x11c   :  { %v5993_v39 = vadd.f32 %v681_v33, %v418_v58  ;;  %1767 = vmatprep.mubr.f32.mxu0 %v8219_v3  ;;  %v1511_v33 = vsel %vm225_vm0, %v1508_v45, %v1510_v2  ;;  %v1512_v58 = vrot.slane %v5532_v26, 4 }
 0x11d   :  { %v5998_v48 = vpop.f32.mrf.mxu0  ;;  %v6000_v8 = vpop.f32.mrf.mxu1 }
 0x11e   :  { %8264 = vst [vmem:[#allocation25_spill] sm:$0xff] %v5998_v48  ;;  %8265 = vst [vmem:[#allocation26_spill] sm:$0xff] %v6000_v8 }
 0x11f   :  { %v424_v11 = vpop.f32.mrf.mxu0  ;;  %v687_v27 = vpop.f32.mrf.mxu1  ;;  %4538 = vmatmul.mubr.msk.f32.gmra.mxu0 %vm176_vm2, %v1509_v47  ;;  %v1513_v47 = vsel %vm225_vm0, %v1510_v2, %v1512_v58 }
 0x120   :  { %v6003_v63 = vadd.f32 %v687_v27, %v424_v11  ;;  %1773 = vmatprep.mubr.f32.mxu0 %v8219_v3 }
 0x121   :  { %v6008_v23 = vpop.f32.mrf.mxu0  ;;  %v6010_v59 = vpop.f32.mrf.mxu1 }
 0x122   :  { %8266 = vst [vmem:[#allocation27_spill] sm:$0xff] %v6008_v23  ;;  %8267 = vst [vmem:[#allocation28_spill] sm:$0xff] %v6010_v59 }
 0x123   :  { %v430_v16 = vpop.f32.mrf.mxu0  ;;  %v693_v29 = vpop.f32.mrf.mxu1  ;;  %4539 = vmatmul.mubr.msk.f32.gmra.mxu0 %vm176_vm2, %v1511_v33 }
 0x124   :  { %v6013_v4 = vadd.f32 %v693_v29, %v430_v16  ;;  %1779 = vmatprep.mubr.f32.mxu0 %v8219_v3 }
 0x125   :  { %v6017_v11 = vpop.f32.mrf.mxu0  ;;  %v6019_v27 = vpop.f32.mrf.mxu1 }
 0x126   :  { %8268 = vst [vmem:[#allocation29_spill] sm:$0xff] %v6017_v11  ;;  %8269 = vst [vmem:[#allocation30_spill] sm:$0xff] %v6019_v27 }
 0x127   :  { %v436_v45 = vpop.f32.mrf.mxu0  ;;  %v699_v26 = vpop.f32.mrf.mxu1  ;;  %4540 = vmatmul.mubr.msk.f32.gmra.mxu0 %vm176_vm2, %v1513_v47  ;;  %vm4287_vm2 = vcmask 1041408  }
 0x128   :  { %v6022_v51 = vadd.f32 %v699_v26, %v436_v45  ;;  %2743 = vmatprep.mubr.f32.mxu0 %v8219_v3 }
 0x129   :  { %v6025_v59 = vpop.f32.mrf.mxu0  ;;  %v6027_v29 = vpop.f32.mrf.mxu1 }
 0x12a   :  { %8270 = vst [vmem:[#allocation31_spill] sm:$0xff] %v6025_v59  ;;  %8271 = vst [vmem:[#allocation32_spill] sm:$0xff] %v6027_v29 }
 0x12b   :  { %v890_v33 = vpop.f32.mrf.mxu0  ;;  %v1267_v16 = vpop.f32.mrf.mxu1 }
 0x12c   :  { %v1033_v2 = vadd.f32 %v890_v33, %v5784_v22 }
 0x12d   :  { %v6030_v58 = vpop.f32.mrf.mxu0  ;;  %v6032_v11 = vpop.f32.mrf.mxu1 }
 0x12e   :  { %8272 = vst [vmem:[#allocation33_spill] sm:$0xff] %v6030_v58  ;;  %8273 = vst [vmem:[#allocation34_spill] sm:$0xff] %v6032_v11  ;;  %v6034_v27 = vadd.f32 %v1267_v16, %v1033_v2 }
 0x12f   :  { %v896_v23 = vpop.f32.mrf.mxu0  ;;  %v1273_v47 = vpop.f32.mrf.mxu1 }
 0x130   :  { %v1035_v45 = vadd.f32 %v896_v23, %v5796_v37 }
 0x131   :  { %v6037_v26 = vpop.f32.mrf.mxu0  ;;  %v6039_v3 = vpop.f32.mrf.mxu1 }
 0x132   :  { %8274 = vst [vmem:[#allocation35_spill] sm:$0xff] %v6037_v26  ;;  %8275 = vst [vmem:[#allocation36_spill] sm:$0xff] %v6039_v3  ;;  %v6041_v59 = vadd.f32 %v1273_v47, %v1035_v45 }
 0x133   :  { %v902_v29 = vpop.f32.mrf.mxu0  ;;  %v1279_v8 = vpop.f32.mrf.mxu1 }
 0x134   :  { %v1037_v22 = vadd.f32 %v902_v29, %v5807_v55 }
 0x135   :  { %v6044_v33 = vpop.f32.mrf.mxu0  ;;  %v6053_v23 = vpop.f32.mrf.mxu1 }
 0x136   :  { %8276 = vst [vmem:[#allocation37_spill] sm:$0xff] %v6044_v33  ;;  %v6046_v48 = vadd.f32 %v1279_v8, %v1037_v22  ;;  %8279 = vst [vmem:[#allocation40_spill] sm:$0xff] %v6053_v23 }
 0x137   :  { %v908_v16 = vpop.f32.mrf.mxu0  ;;  %v6060_v55 = vpop.f32.mrf.mxu1 }
 0x138   :  { %v6049_v2 = vadd.f32 %v908_v16, %v5817_v50  ;;  %8280 = vst [vmem:[#allocation41_spill] sm:$0xff] %v6060_v55 }
 0x139   :  { %v6051_v11 = vpop.f32.mrf.mxu0  ;;  %v6067_v22 = vpop.f32.mrf.mxu1 }
 0x13a   :  { %8277 = vst [vmem:[#allocation38_spill] sm:$0xff] %v6049_v2  ;;  %8278 = vst [vmem:[#allocation39_spill] sm:$0xff] %v6051_v11 }
 0x13b   :  { %v914_v37 = vpop.f32.mrf.mxu0  ;;  %8281 = vst [vmem:[#allocation42_spill] sm:$0xff] %v6067_v22 }
 0x13c   :  { %v6056_v47 = vadd.f32 %v914_v37, %v5827_v62  ;;  %v6074_v37 = vpop.f32.mrf.mxu1 }
 0x13d   :  { %v6058_v45 = vpop.f32.mrf.mxu0 }
 0x13f   :  { %v920_v3 = vpop.f32.mrf.mxu0 }
 0x140   :  { %v6063_v8 = vadd.f32 %v920_v3, %v5838_v15  ;;  %v6081_v15 = vpop.f32.mrf.mxu1 }
 0x141   :  { %v6065_v29 = vpop.f32.mrf.mxu0 }
 0x143   :  { %v926_v50 = vpop.f32.mrf.mxu0 }
 0x144   :  { %v6070_v16 = vadd.f32 %v926_v50, %v5848_v36  ;;  %v6088_v50 = vpop.f32.mrf.mxu1 }
 0x145   :  { %v6072_v58 = vpop.f32.mrf.mxu0 }
 0x147   :  { %v932_v62 = vpop.f32.mrf.mxu0 }
 0x148   :  { %v6077_v23 = vadd.f32 %v932_v62, %v5858_v56  ;;  %v6095_v62 = vpop.f32.mrf.mxu1 }
 0x149   :  { %v6079_v26 = vpop.f32.mrf.mxu0 }
 0x14b   :  { %v938_v3 = vpop.f32.mrf.mxu0 }
 0x14c   :  { %v6084_v55 = vadd.f32 %v938_v3, %v5869_v61  ;;  %v6102_v3 = vpop.f32.mrf.mxu1 }
 0x14d   :  { %v6086_v2 = vpop.f32.mrf.mxu0 }
 0x14f   :  { %v944_v36 = vpop.f32.mrf.mxu0 }
 0x150   :  { %v6091_v33 = vadd.f32 %v944_v36, %v5879_v13  ;;  %v6109_v36 = vpop.f32.mrf.mxu1 }
 0x151   :  { %v6093_v22 = vpop.f32.mrf.mxu0 }
 0x153   :  { %v950_v56 = vpop.f32.mrf.mxu0 }
 0x154   :  { %v6098_v11 = vadd.f32 %v950_v56, %v5889_v18  ;;  %v6116_v56 = vpop.f32.mrf.mxu1 }
 0x155   :  { %v6100_v12 = vpop.f32.mrf.mxu0 }
 0x157   :  { %v956_v61 = vpop.f32.mrf.mxu0 }
 0x158   :  { %v6105_v17 = vadd.f32 %v956_v61, %v5900_v34  ;;  %v6123_v61 = vpop.f32.mrf.mxu1 }
 0x159   :  { %v6107_v52 = vpop.f32.mrf.mxu0 }
 0x15a   :  { %8282 = vst [vmem:[#allocation43_spill] sm:$0xff] %v6105_v17 }
 0x15b   :  { %v962_v13 = vpop.f32.mrf.mxu0 }
 0x15c   :  { %v6112_v38 = vadd.f32 %v962_v13, %v5910_v20  ;;  %v6130_v13 = vpop.f32.mrf.mxu1 }
 0x15d   :  { %v6114_v14 = vpop.f32.mrf.mxu0 }
 0x15e   :  { %8283 = vst [vmem:[#allocation44_spill] sm:$0xff] %v6112_v38  ;;  %8284 = vst [vmem:[#allocation45_spill] sm:$0xff] %v6114_v14 }
 0x15f   :  { %v968_v18 = vpop.f32.mrf.mxu0 }
 0x160   :  { %v6119_v35 = vadd.f32 %v968_v18, %v5920_v46  ;;  %v6137_v18 = vpop.f32.mrf.mxu1 }
 0x161   :  { %v6121_v25 = vpop.f32.mrf.mxu0 }
 0x162   :  { %8285 = vst [vmem:[#allocation46_spill] sm:$0xff] %v6119_v35  ;;  %8286 = vst [vmem:[#allocation47_spill] sm:$0xff] %v6121_v25 }
 0x163   :  { %v974_v34 = vpop.f32.mrf.mxu0 }
 0x164   :  { %v6126_v17 = vadd.f32 %v974_v34, %v5931_v32  ;;  %v6144_v34 = vpop.f32.mrf.mxu1 }
 0x165   :  { %v6128_v0 = vpop.f32.mrf.mxu0 }
 0x166   :  { %8287 = vst [vmem:[#allocation48_spill] sm:$0xff] %v6126_v17  ;;  %8288 = vst [vmem:[#allocation49_spill] sm:$0xff] %v6128_v0 }
 0x167   :  { %v980_v20 = vpop.f32.mrf.mxu0 }
 0x168   :  { %v6133_v38 = vadd.f32 %v980_v20, %v5941_v43  ;;  %v6151_v20 = vpop.f32.mrf.mxu1 }
 0x169   :  { %v6135_v14 = vpop.f32.mrf.mxu0 }
 0x16a   :  { %8289 = vst [vmem:[#allocation50_spill] sm:$0xff] %v6133_v38  ;;  %8290 = vst [vmem:[#allocation51_spill] sm:$0xff] %v6135_v14 }
 0x16b   :  { %v986_v46 = vpop.f32.mrf.mxu0 }
 0x16c   :  { %v6140_v35 = vadd.f32 %v986_v46, %v5951_v40  ;;  %v6158_v46 = vpop.f32.mrf.mxu1 }
 0x16d   :  { %v6142_v25 = vpop.f32.mrf.mxu0 }
 0x16e   :  { %8291 = vst [vmem:[#allocation52_spill] sm:$0xff] %v6140_v35  ;;  %8292 = vst [vmem:[#allocation53_spill] sm:$0xff] %v6142_v25 }
 0x16f   :  { %v992_v32 = vpop.f32.mrf.mxu0 }
 0x170   :  { %v6147_v17 = vadd.f32 %v992_v32, %v5962_v1  ;;  %v6165_v32 = vpop.f32.mrf.mxu1 }
 0x171   :  { %v6149_v0 = vpop.f32.mrf.mxu0 }
 0x172   :  { %8293 = vst [vmem:[#allocation54_spill] sm:$0xff] %v6147_v17  ;;  %8294 = vst [vmem:[#allocation55_spill] sm:$0xff] %v6149_v0 }
 0x173   :  { %v998_v43 = vpop.f32.mrf.mxu0 }
 0x174   :  { %v6154_v38 = vadd.f32 %v998_v43, %v5972_v44  ;;  %v6172_v43 = vpop.f32.mrf.mxu1 }
 0x175   :  { %v6156_v14 = vpop.f32.mrf.mxu0 }
 0x176   :  { %8295 = vst [vmem:[#allocation56_spill] sm:$0xff] %v6154_v38  ;;  %8296 = vst [vmem:[#allocation57_spill] sm:$0xff] %v6156_v14 }
 0x177   :  { %v1004_v40 = vpop.f32.mrf.mxu0 }
 0x178   :  { %v6161_v35 = vadd.f32 %v1004_v40, %v5982_v31  ;;  %v6179_v40 = vpop.f32.mrf.mxu1 }
 0x179   :  { %v6163_v25 = vpop.f32.mrf.mxu0 }
 0x17a   :  { %8297 = vst [vmem:[#allocation58_spill] sm:$0xff] %v6161_v35  ;;  %8298 = vst [vmem:[#allocation59_spill] sm:$0xff] %v6163_v25 }
 0x17b   :  { %v1010_v1 = vpop.f32.mrf.mxu0 }
 0x17c   :  { %v6168_v17 = vadd.f32 %v1010_v1, %v5993_v39  ;;  %v6186_v1 = vpop.f32.mrf.mxu1 }
 0x17d   :  { %v6170_v0 = vpop.f32.mrf.mxu0  ;;  %8305 = vst [vmem:[#allocation66_spill] sm:$0xff] %v6186_v1 }
 0x17e   :  { %8299 = vst [vmem:[#allocation60_spill] sm:$0xff] %v6168_v17  ;;  %8300 = vst [vmem:[#allocation61_spill] sm:$0xff] %v6170_v0 }
 0x17f   :  { %v1016_v44 = vpop.f32.mrf.mxu0 }
 0x180   :  { %v6175_v38 = vadd.f32 %v1016_v44, %v6003_v63  ;;  %v6193_v44 = vpop.f32.mrf.mxu1 }
 0x181   :  { %v6177_v14 = vpop.f32.mrf.mxu0 }
 0x182   :  { %8301 = vst [vmem:[#allocation62_spill] sm:$0xff] %v6175_v38  ;;  %8302 = vst [vmem:[#allocation63_spill] sm:$0xff] %v6177_v14 }
 0x183   :  { %v1022_v31 = vpop.f32.mrf.mxu0 }
 0x184   :  { %v6182_v35 = vadd.f32 %v1022_v31, %v6013_v4  ;;  %v6200_v31 = vpop.f32.mrf.mxu1 }
 0x185   :  { %v6184_v25 = vpop.f32.mrf.mxu0 }
 0x186   :  { %8303 = vst [vmem:[#allocation64_spill] sm:$0xff] %v6182_v35  ;;  %8304 = vst [vmem:[#allocation65_spill] sm:$0xff] %v6184_v25  ;;  %v1836_v35 = vlaneseq }
 0x187   :  { %v1028_v39 = vpop.f32.mrf.mxu0 }
 0x188   :  { %v6189_v17 = vadd.f32 %v1028_v39, %v6022_v51  ;;  %v6207_v39 = vpop.f32.mrf.mxu1 }
 0x189   :  { %v6191_v0 = vpop.f32.mrf.mxu0 }
 0x18a   :  { %8306 = vst [vmem:[#allocation67_spill] sm:$0xff] %v6189_v17  ;;  %8307 = vst [vmem:[#allocation68_spill] sm:$0xff] %v6191_v0  ;;  %v6209_v17 = vshrl.u32 %v1836_v35, 7  ;;  %v1834_v35 = vld [vmem:[%s8209_s2] sm:$0x3]  ;;  %s5021_s2 = smov 8  }
 0x18b   :  { %v1643_v63 = vpop.f32.mrf.mxu0 }
 0x18c   :  { %v6196_v38 = vadd.f32 %v1643_v63, %v6034_v27  ;;  %v588_v63 = vadd.f32 %v5835_v41, %v5833_v7  ;;  %v1418_v7 = vadd.f32 %v6074_v37, %v6056_v47  ;;  %v8221_v41 = vsub.s32 1, %v6209_v17 }
 0x18d   :  { %v6198_v14 = vpop.f32.mrf.mxu0  ;;  %v1420_v47 = vadd.f32 %v6088_v50, %v6063_v8  ;;  %v606_v50 = vadd.f32 %v5866_v6, %v5864_v49 }
 0x18e   :  { %8308 = vst [vmem:[#allocation69_spill] sm:$0xff] %v6196_v38  ;;  %8309 = vst [vmem:[#allocation70_spill] sm:$0xff] %v6198_v14  ;;  %v6248_v37 = vrot.slane %v1834_v35, %v8221_v41 }
 0x18f   :  { %v1649_v4 = vpop.f32.mrf.mxu0 }
 0x190   :  { %v6203_v25 = vadd.f32 %v1649_v4, %v6041_v59  ;;  %v1042_v59 = vadd.f32 %v6058_v45, %v588_v63  ;;  %v6221_v4 = vpop.f32.mrf.mxu1 }
 0x191   :  { %v6205_v1 = vpop.f32.mrf.mxu0 }
 0x192   :  { %8310 = vst [vmem:[#allocation71_spill] sm:$0xff] %v6203_v25  ;;  %8311 = vst [vmem:[#allocation72_spill] sm:$0xff] %v6205_v1  ;;  %v1419_v45 = vadd.f32 %v6081_v15, %v1042_v59  ;;  %v6236_v25 = vpop.f32.mrf.mxu1 }
 0x193   :  { %v1655_v51 = vpop.f32.mrf.mxu0 }
 0x194   :  { %v6212_v0 = vadd.f32 %v1655_v51, %v6046_v48  ;;  %v594_v48 = vadd.f32 %v5845_v53, %v5843_v30  ;;  %v600_v30 = vadd.f32 %v5855_v42, %v5853_v57 }
 0x195   :  { %v6214_v27 = vpop.f32.mrf.mxu0 }
 0x196   :  { %8312 = vst [vmem:[#allocation73_spill] sm:$0xff] %v6212_v0  ;;  %8313 = vst [vmem:[#allocation74_spill] sm:$0xff] %v6214_v27  ;;  %v1044_v63 = vadd.f32 %v6065_v29, %v594_v48  ;;  %v8314_v0 = vsub.s32 0, %v6209_v17  ;;  %v1046_v59 = vadd.f32 %v6072_v58, %v600_v30  ;;  %v1048_v30 = vadd.f32 %v6079_v26, %v606_v50 }
 0x197   :  { %v6218_v38 = vpop.f32.mrf.mxu0 }
 0x198   :  { %v6240_v1 = vrot.slane %v1834_v35, %v8314_v0  ;;  %v1421_v48 = vadd.f32 %v6095_v62, %v1044_v63 }
 0x199   :  { %v6227_v14 = vpop.f32.mrf.mxu0 }
 0x19b   :  { %v1667_v51 = vpop.f32.mrf.mxu0 }
 0x19c   :  { %v1794_v27 = vadd.f32 %v1667_v51, %v1418_v7  ;;  %v6255_v7 = vpop.f32.mrf.mxu1 }
 0x19d   :  { %v1669_v53 = vpop.f32.mrf.mxu0 }
 0x19e   :  { %v1795_v15 = vadd.f32 %v1669_v53, %v1419_v45  ;;  %v6251_v29 = vadd.f32 %v6240_v1, %v1794_v27  ;;  %v1422_v27 = vadd.f32 %v6102_v3, %v6070_v16  ;;  %v1423_v45 = vadd.f32 %v6109_v36, %v1046_v59  ;;  %v6271_v49 = vpop.f32.mrf.mxu1 }
 0x19f   :  { %v1673_v0 = vpop.f32.mrf.mxu0  ;;  %v612_v53 = vadd.f32 %v5876_v9, %v5874_v5 }
 0x1a0   :  { %v1796_v57 = vadd.f32 %v1673_v0, %v1420_v47  ;;  %v8223_v42 = vmax.f32 %v6251_v29, 0.0  ;;  %v1855_v8 = vadd.f32 %v6248_v37, %v1795_v15  ;;  %v1424_v15 = vadd.f32 %v6116_v56, %v6077_v23 }
 0x1a1   :  { %v1675_v35 = vpop.f32.mrf.mxu0  ;;  %v1050_v0 = vadd.f32 %v6086_v2, %v612_v53  ;;  %v618_v56 = vadd.f32 %v5886_v21, %v5884_v54 }
 0x1a2   :  { %v6264_v51 = vadd.f32 %v6240_v1, %v1796_v57  ;;  %v1797_v58 = vadd.f32 %v1675_v35, %v1421_v48  ;;  %2006 = vrot.lane.b32.xlu0 %v8223_v42, %s5021_s2  ;;  %v1903_v62 = vmax.f32 %v1855_v8, 0.0  ;;  %v1425_v57 = vadd.f32 %v6123_v61, %v1048_v30  ;;  %v6288_v8 = vpop.f32.mrf.mxu1 }
 0x1a3   :  { %v1679_v63 = vpop.f32.mrf.mxu0  ;;  %v1426_v35 = vadd.f32 %v6130_v13, %v6084_v55  ;;  %v624_v13 = vadd.f32 %v5897_v19, %v5895_v28 }
 0x1a4   :  { %v8224_v6 = vmax.f32 %v6264_v51, 0.0  ;;  %v1857_v16 = vadd.f32 %v6248_v37, %v1797_v58  ;;  %v1798_v3 = vadd.f32 %v1679_v63, %v1422_v27  ;;  %2008 = vrot.lane.b32.xlu1 %v1903_v62, %s5021_s2  ;;  %v1427_v58 = vadd.f32 %v6137_v18, %v1050_v0  ;;  %v6305_v63 = vpop.f32.mrf.mxu1 }
 0x1a5   :  { %v1681_v47 = vpop.f32.mrf.mxu0  ;;  %v1054_v53 = vadd.f32 %v6100_v12, %v624_v13  ;;  %v1430_v0 = vadd.f32 %v6158_v46, %v6098_v11  ;;  %v8315_v46 = vld [vmem:[#allocation10_spill] sm:$0xff] }
 0x1a6   :  { %v1905_v36 = vmax.f32 %v1857_v16, 0.0  ;;  %v6281_v59 = vadd.f32 %v6240_v1, %v1798_v3  ;;  %v1799_v26 = vadd.f32 %v1681_v47, %v1423_v45  ;;  %2010 = vrot.lane.b32.xlu0 %v8224_v6, %s5021_s2  ;;  %v1052_v45 = vadd.f32 %v6093_v22, %v618_v56 }
 0x1a7   :  { %v1685_v48 = vpop.f32.mrf.mxu0  ;;  %v1428_v16 = vadd.f32 %v6144_v34, %v6091_v33  ;;  %v630_v34 = vadd.f32 %v5907_v24, %v5905_v10 }
 0x1a8   :  { %v8225_v5 = vmax.f32 %v6281_v59, 0.0  ;;  %v1859_v9 = vadd.f32 %v6248_v37, %v1799_v26  ;;  %v1800_v23 = vadd.f32 %v1685_v48, %v1424_v15  ;;  %2012 = vrot.lane.b32.xlu1 %v1905_v36, %s5021_s2  ;;  %v1429_v15 = vadd.f32 %v6151_v20, %v1052_v45  ;;  %v6322_v36 = vpop.f32.mrf.mxu1 }
 0x1a9   :  { %v1687_v50 = vpop.f32.mrf.mxu0 }
 0x1aa   :  { %v1907_v2 = vmax.f32 %v1859_v9, 0.0  ;;  %v6298_v27 = vadd.f32 %v6240_v1, %v1800_v23  ;;  %v1801_v61 = vadd.f32 %v1687_v50, %v1425_v57  ;;  %2014 = vrot.lane.b32.xlu0 %v8225_v5, %s5021_s2  ;;  %v1431_v57 = vadd.f32 %v6165_v32, %v1054_v53  ;;  %v6339_v56 = vpop.f32.mrf.mxu1 }
 0x1ab   :  { %v1691_v62 = vpop.f32.mrf.mxu0  ;;  %v1056_v23 = vadd.f32 %v6107_v52, %v630_v34  ;;  %v636_v50 = vadd.f32 %v8315_v46, %v5915_v60  ;;  %v8324_v46 = vld [vmem:[#allocation14_spill] sm:$0xff] }
 0x1ac   :  { %v8226_v54 = vmax.f32 %v6298_v27, 0.0  ;;  %v1861_v21 = vadd.f32 %v6248_v37, %v1801_v61  ;;  %v1802_v55 = vadd.f32 %v1691_v62, %v1426_v35  ;;  %2016 = vrot.lane.b32.xlu1 %v1907_v2, %s5021_s2  ;;  %v8316_v2 = vld [vmem:[#allocation43_spill] sm:$0xff]  ;;  %v8317_v62 = vld [vmem:[#allocation45_spill] sm:$0xff]  ;;  %v6356_v13 = vpop.f32.mrf.mxu1 }
 0x1ad   :  { %v1693_v30 = vpop.f32.mrf.mxu0  ;;  %v1432_v61 = vadd.f32 %v6172_v43, %v8316_v2  ;;  %v1058_v45 = vadd.f32 %v8317_v62, %v636_v50  ;;  %v8325_v2 = vld [vmem:[#allocation46_spill] sm:$0xff]  ;;  %v8326_v62 = vld [vmem:[#allocation49_spill] sm:$0xff] }
 0x1ae   :  { %v1909_v18 = vmax.f32 %v1861_v21, 0.0  ;;  %v6315_v3 = vadd.f32 %v6240_v1, %v1802_v55  ;;  %v1803_v22 = vadd.f32 %v1693_v30, %v1427_v58  ;;  %2018 = vrot.lane.b32.xlu0 %v8226_v54, %s5021_s2  ;;  %v1433_v55 = vadd.f32 %v6179_v40, %v1056_v23 }
 0x1af   :  { %v1697_v47 = vpop.f32.mrf.mxu0 }
 0x1b0   :  { %v8227_v28 = vmax.f32 %v6315_v3, 0.0  ;;  %v1863_v19 = vadd.f32 %v6248_v37, %v1803_v22  ;;  %v1804_v33 = vadd.f32 %v1697_v47, %v1428_v16  ;;  %2020 = vrot.lane.b32.xlu1 %v1909_v18, %s5021_s2  ;;  %v8318_v16 = vld [vmem:[#allocation11_spill] sm:$0xff]  ;;  %v8319_v18 = vld [vmem:[#allocation12_spill] sm:$0xff] }
 0x1b1   :  { %v1699_v26 = vpop.f32.mrf.mxu0  ;;  %v642_v22 = vadd.f32 %v8319_v18, %v8318_v16  ;;  %v8320_v47 = vld [vmem:[#allocation44_spill] sm:$0xff] }
 0x1b2   :  { %v1911_v12 = vmax.f32 %v1863_v19, 0.0  ;;  %v6332_v48 = vadd.f32 %v6240_v1, %v1804_v33  ;;  %v1805_v20 = vadd.f32 %v1699_v26, %v1429_v15  ;;  %2022 = vrot.lane.b32.xlu0 %v8227_v28, %s5021_s2  ;;  %v8321_v15 = vld [vmem:[#allocation66_spill] sm:$0xff]  ;;  %v1435_v26 = vadd.f32 %v6193_v44, %v1058_v45  ;;  %v8327_v18 = vld [vmem:[#allocation8_spill] sm:$0xff] }
 0x1b3   :  { %v1703_v9 = vpop.f32.mrf.mxu0  ;;  %v1434_v19 = vadd.f32 %v8321_v15, %v8320_v47  ;;  %v8329_v47 = vld [vmem:[#allocation15_spill] sm:$0xff]  ;;  %v8330_v15 = vld [vmem:[#allocation16_spill] sm:$0xff] }
 0x1b4   :  { %v8228_v10 = vmax.f32 %v6332_v48, 0.0  ;;  %v1865_v24 = vadd.f32 %v6248_v37, %v1805_v20  ;;  %v1806_v11 = vadd.f32 %v1703_v9, %v1430_v0  ;;  %2024 = vrot.lane.b32.xlu1 %v1911_v12, %s5021_s2  ;;  %v8322_v12 = vld [vmem:[#allocation47_spill] sm:$0xff] }
 0x1b5   :  { %v1705_v35 = vpop.f32.mrf.mxu0  ;;  %v1060_v20 = vadd.f32 %v8322_v12, %v642_v22  ;;  %v8328_v22 = vld [vmem:[#allocation9_spill] sm:$0xff] }
 0x1b6   :  { %v1913_v32 = vmax.f32 %v1865_v24, 0.0  ;;  %v6349_v58 = vadd.f32 %v6240_v1, %v1806_v11  ;;  %v1807_v52 = vadd.f32 %v1705_v35, %v1431_v57  ;;  %2026 = vrot.lane.b32.xlu0 %v8228_v10, %s5021_s2  ;;  %v6373_v57 = vpop.f32.mrf.mxu1  ;;  %v8323_v11 = vld [vmem:[#allocation13_spill] sm:$0xff] }
 0x1b7   :  { %v1709_v21 = vpop.f32.mrf.mxu0  ;;  %v648_v50 = vadd.f32 %v8324_v46, %v8323_v11  ;;  %v8333_v46 = vld [vmem:[#allocation51_spill] sm:$0xff] }
 0x1b8   :  { %v8230_v60 = vmax.f32 %v6349_v58, 0.0  ;;  %v1867_v43 = vadd.f32 %v6248_v37, %v1807_v52  ;;  %v1808_v30 = vadd.f32 %v1709_v21, %v1432_v61  ;;  %2028 = vrot.lane.b32.xlu1 %v1913_v32, %s5021_s2  ;;  %v1436_v61 = vadd.f32 %v6200_v31, %v8325_v2 }
 0x1b9   :  { %v1711_v53 = vpop.f32.mrf.mxu0  ;;  %v1062_v45 = vadd.f32 %v8326_v62, %v648_v50 }
 0x1ba   :  { %v1915_v33 = vmax.f32 %v1867_v43, 0.0  ;;  %v6366_v34 = vadd.f32 %v6240_v1, %v1808_v30  ;;  %v1809_v40 = vadd.f32 %v1711_v53, %v1433_v55  ;;  %2030 = vrot.lane.b32.xlu0 %v8230_v60, %s5021_s2  ;;  %v1437_v55 = vadd.f32 %v6207_v39, %v1060_v20  ;;  %v6390_v43 = vpop.f32.mrf.mxu1  ;;  %v8332_v20 = vld [vmem:[#allocation39_spill] sm:$0xff] }
 0x1bb   :  { %v1715_v0 = vpop.f32.mrf.mxu0  ;;  %v582_v53 = vadd.f32 %v8328_v22, %v8327_v18  ;;  %v8337_v18 = vld [vmem:[#allocation42_spill] sm:$0xff] }
 0x1bc   :  { %v8231_v9 = vmax.f32 %v6366_v34, 0.0  ;;  %v1869_v23 = vadd.f32 %v6248_v37, %v1809_v40  ;;  %v1810_v24 = vadd.f32 %v1715_v0, %v1434_v19  ;;  %2032 = vrot.lane.b32.xlu1 %v1915_v33, %s5021_s2  ;;  %v654_v19 = vadd.f32 %v8330_v15, %v8329_v47  ;;  %v8331_v40 = vld [vmem:[#allocation48_spill] sm:$0xff]  ;;  %v8338_v47 = vld [vmem:[#allocation37_spill] sm:$0xff] }
 0x1bd   :  { %v1717_v35 = vpop.f32.mrf.mxu0 }
 0x1be   :  { %v1917_v44 = vmax.f32 %v1869_v23, 0.0  ;;  %v6383_v32 = vadd.f32 %v6240_v1, %v1810_v24  ;;  %v1811_v52 = vadd.f32 %v1717_v35, %v1435_v26  ;;  %2034 = vrot.lane.b32.xlu0 %v8231_v9, %s5021_s2  ;;  %v1438_v26 = vadd.f32 %v6221_v4, %v8331_v40  ;;  %v6410_v35 = vpop.f32.mrf.mxu1 }
 0x1bf   :  { %v1721_v21 = vpop.f32.mrf.mxu0  ;;  %v1040_v23 = vadd.f32 %v8332_v20, %v582_v53  ;;  %v1439_v24 = vadd.f32 %v6236_v25, %v1062_v45  ;;  %v1064_v50 = vadd.f32 %v8333_v46, %v654_v19  ;;  %v8342_v20 = vld [vmem:[#allocation41_spill] sm:$0xff] }
 0x1c0   :  { %v8233_v30 = vmax.f32 %v6383_v32, 0.0  ;;  %v1871_v31 = vadd.f32 %v6248_v37, %v1811_v52  ;;  %v1812_v16 = vadd.f32 %v1721_v21, %v1436_v61  ;;  %2036 = vrot.lane.b32.xlu1 %v1917_v44, %s5021_s2  ;;  %v8334_v44 = vld [vmem:[#allocation6_spill] sm:$0xff]  ;;  %v8335_v52 = vld [vmem:[#allocation7_spill] sm:$0xff] }
 0x1c1   :  { %v1723_v33 = vpop.f32.mrf.mxu0  ;;  %v576_v62 = vadd.f32 %v8335_v52, %v8334_v44  ;;  %v1417_v22 = vadd.f32 %v8337_v18, %v1040_v23  ;;  %v1441_v19 = vadd.f32 %v6271_v49, %v1064_v50  ;;  %v8343_v50 = vld [vmem:[#allocation35_spill] sm:$0xff]  ;;  %v8345_v18 = vld [vmem:[#allocation2_spill] sm:$0xff] }
 0x1c2   :  { %v1919_v39 = vmax.f32 %v1871_v31, 0.0  ;;  %v6402_v0 = vadd.f32 %v6240_v1, %v1812_v16  ;;  %v1813_v12 = vadd.f32 %v1723_v33, %v1437_v55  ;;  %2038 = vrot.lane.b32.xlu0 %v8233_v30, %s5021_s2  ;;  %v8336_v55 = vld [vmem:[#allocation50_spill] sm:$0xff]  ;;  %v1387_v33 = vpop.f32.mrf.mxu1 }
 0x1c3   :  { %v1727_v11 = vpop.f32.mrf.mxu0  ;;  %v1440_v31 = vadd.f32 %v6255_v7, %v8336_v55  ;;  %v1038_v15 = vadd.f32 %v8338_v47, %v576_v62  ;;  %v8339_v7 = vld [vmem:[#allocation4_spill] sm:$0xff]  ;;  %v8347_v47 = vld [vmem:[#allocation74_spill] sm:$0xff] }
 0x1c4   :  { %v8234_v4 = vmax.f32 %v6402_v0, 0.0  ;;  %v1873_v2 = vadd.f32 %v6248_v37, %v1813_v12  ;;  %v1814_v61 = vadd.f32 %v1727_v11, %v1438_v26  ;;  %2040 = vrot.lane.b32.xlu1 %v1919_v39, %s5021_s2  ;;  %v8340_v26 = vld [vmem:[#allocation5_spill] sm:$0xff]  ;;  %v8341_v12 = vld [vmem:[#allocation38_spill] sm:$0xff]  ;;  %v1793_v11 = vadd.f32 %v6227_v14, %v1417_v22  ;;  %v8344_v62 = vld [vmem:[#allocation40_spill] sm:$0xff]  ;;  %v1389_v55 = vpop.f32.mrf.mxu1 }
 0x1c5   :  { %v1729_v21 = vpop.f32.mrf.mxu0  ;;  %v570_v39 = vadd.f32 %v8340_v26, %v8339_v7  ;;  %v8346_v22 = vld [vmem:[#allocation3_spill] sm:$0xff]  ;;  %v8348_v7 = vld [vmem:[#allocation33_spill] sm:$0xff] }
 0x1c6   :  { %v1921_v25 = vmax.f32 %v1873_v2, 0.0  ;;  %v6420_v45 = vadd.f32 %v6240_v1, %v1814_v61  ;;  %v1815_v16 = vadd.f32 %v1729_v21, %v1439_v24  ;;  %2042 = vrot.lane.b32.xlu0 %v8234_v4, %s5021_s2  ;;  %v1416_v24 = vadd.f32 %v8342_v20, %v8341_v12  ;;  %v1393_v20 = vpop.f32.mrf.mxu1 }
 0x1c7   :  { %v1733_v53 = vpop.f32.mrf.mxu0  ;;  %v1036_v44 = vadd.f32 %v8343_v50, %v570_v39  ;;  %v1415_v21 = vadd.f32 %v8344_v62, %v1038_v15  ;;  %v1853_v15 = vadd.f32 %v6248_v37, %v1793_v11  ;;  %v8349_v39 = vld [vmem:[#allocation36_spill] sm:$0xff] }
 0x1c8   :  { %v1816_v40 = vadd.f32 %v1733_v53, %v1440_v31  ;;  %2044 = vrot.lane.b32.xlu1 %v1921_v25, %s5021_s2  ;;  %v1922_v23 = vmax.f32 %v6420_v45, 0.0  ;;  %v1875_v2 = vadd.f32 %v6248_v37, %v1815_v16  ;;  %v1792_v31 = vadd.f32 %v6218_v38, %v1416_v24  ;;  %v8350_v11 = vld [vmem:[#allocation72_spill] sm:$0xff] }
 0x1c9   :  { %v1735_v46 = vpop.f32.mrf.mxu0  ;;  %v564_v53 = vadd.f32 %v8346_v22, %v8345_v18  ;;  %v1413_v12 = vadd.f32 %v8349_v39, %v1036_v44  ;;  %v1901_v62 = vmax.f32 %v1853_v15, 0.0  ;;  %v8351_v18 = vld [vmem:[#allocation34_spill] sm:$0xff]  ;;  %v1395_v22 = vpop.f32.mrf.mxu1 }
 0x1ca   :  { %v6437_v61 = vadd.f32 %v6240_v1, %v1816_v40  ;;  %v1817_v49 = vadd.f32 %v1735_v46, %v1441_v19  ;;  %v1791_v19 = vadd.f32 %v8347_v47, %v1415_v21  ;;  %v1923_v40 = vmax.f32 %v1875_v2, 0.0 }
 0x1cb   :  { %v6440_v52 = vpop.f32.mrf.mxu0  ;;  %v1034_v26 = vadd.f32 %v8348_v7, %v564_v53  ;;  %v6463_v24 = vadd.f32 %v6240_v1, %v1792_v31  ;;  %v1789_v2 = vadd.f32 %v8350_v11, %v1413_v12  ;;  %v8352_v53 = vld [vmem:[#allocation73_spill] sm:$0xff]  ;;  %v8355_v7 = vld [vmem:[#allocation70_spill] sm:$0xff] }
 0x1cc   :  { %v1924_v14 = vmax.f32 %v6437_v61, 0.0  ;;  %v1877_v25 = vadd.f32 %v6248_v37, %v1817_v49  ;;  %2046 = vrot.lane.b32.xlu1 %v1922_v23, %s5021_s2  ;;  %v1851_v50 = vadd.f32 %v6248_v37, %v1791_v19  ;;  %v6476_v31 = vadd.f32 %v6240_v1, %v8352_v53  ;;  %v8354_v19 = vld [vmem:[#allocation26_spill] sm:$0xff]  ;;  %v8356_v11 = vld [vmem:[#allocation61_spill] sm:$0xff]  ;;  %v1399_v53 = vpop.f32.mrf.mxu1 }
 0x1cd   :  { %v6449_v16 = vpop.f32.mrf.mxu0  ;;  %v1411_v44 = vadd.f32 %v8351_v18, %v1034_v26  ;;  %v1849_v12 = vadd.f32 %v6248_v37, %v1789_v2  ;;  %v8359_v2 = vld [vmem:[#allocation28_spill] sm:$0xff] }
 0x1ce   :  { %2050 = vrot.lane.b32.xlu0 %v1924_v14, %s5021_s2  ;;  %v1925_v46 = vmax.f32 %v1877_v25, 0.0  ;;  %v8222_v25 = vmax.f32 %v6463_v24, 0.0  ;;  %v1401_v54 = vpop.f32.mrf.mxu1 }
 0x1cf   :  { %v6458_v38 = vpop.f32.mrf.mxu0  ;;  %v1787_v39 = vadd.f32 %v8355_v7, %v1411_v44  ;;  %v8358_v44 = vld [vmem:[#allocation27_spill] sm:$0xff]  ;;  %v8360_v7 = vld [vmem:[#allocation60_spill] sm:$0xff] }
 0x1d0   :  { %2048 = vrot.lane.b32.xlu1 %v1923_v40, %s5021_s2  ;;  %v8353_v40 = vld [vmem:[#allocation25_spill] sm:$0xff]  ;;  %v1405_v9 = vpop.f32.mrf.mxu1 }
 0x1d1   :  { %v6466_v49 = vpop.f32.mrf.mxu0  ;;  %v684_v15 = vadd.f32 %v8354_v19, %v8353_v40  ;;  %v8229_v40 = vmax.f32 %v6476_v31, 0.0  ;;  %v1847_v42 = vadd.f32 %v6248_v37, %v1787_v39  ;;  %v8364_v39 = vld [vmem:[#allocation30_spill] sm:$0xff] }
 0x1d2   :  { %2052 = vrot.lane.b32.xlu0 %v1925_v46, %s5021_s2  ;;  %v1899_v46 = vmax.f32 %v1851_v50, 0.0  ;;  %v690_v50 = vadd.f32 %v8359_v2, %v8358_v44  ;;  %v1407_v4 = vpop.f32.mrf.mxu1 }
 0x1d3   :  { %v6471_v21 = vpop.f32.mrf.mxu0  ;;  %v1074_v18 = vadd.f32 %v8356_v11, %v684_v15  ;;  %v1897_v15 = vmax.f32 %v1849_v12, 0.0  ;;  %v8361_v11 = vld [vmem:[#allocation63_spill] sm:$0xff] }
 0x1d4   :  { %2004 = vrot.lane.b32.xlu1 %v1901_v62, %s5021_s2  ;;  %v8357_v62 = vld [vmem:[#allocation71_spill] sm:$0xff] }
 0x1d5   :  { %v6480_v47 = vpop.f32.mrf.mxu0  ;;  %v6494_v41 = vadd.f32 %v6240_v1, %v8357_v62  ;;  %v1076_v62 = vadd.f32 %v8361_v11, %v690_v50  ;;  %v1451_v5 = vadd.f32 %v1389_v55, %v1074_v18  ;;  %v1895_v55 = vmax.f32 %v1847_v42, 0.0  ;;  %v8366_v50 = vld [vmem:[#allocation65_spill] sm:$0xff]  ;;  %v8370_v42 = vld [vmem:[#allocation32_spill] sm:$0xff] }
 0x1d6   :  { %2002 = vrot.lane.b32.xlu0 %v8222_v25, %s5021_s2  ;;  %v1450_v25 = vadd.f32 %v1387_v33, %v8360_v7  ;;  %v8363_v33 = vld [vmem:[#allocation29_spill] sm:$0xff] }
 0x1d7   :  { %v6489_v26 = vpop.f32.mrf.mxu0  ;;  %v8232_v44 = vmax.f32 %v6494_v41, 0.0  ;;  %v696_v7 = vadd.f32 %v8364_v39, %v8363_v33  ;;  %v1453_v18 = vadd.f32 %v1395_v22, %v1076_v62  ;;  %v8371_v39 = vld [vmem:[#allocation64_spill] sm:$0xff] }
 0x1d8   :  { %2000 = vrot.lane.b32.xlu1 %v1899_v46, %s5021_s2  ;;  %v8362_v46 = vld [vmem:[#allocation69_spill] sm:$0xff] }
 0x1d9   :  { %v6500_v19 = vpop.f32.mrf.mxu0  ;;  %v6510_v28 = vadd.f32 %v6240_v1, %v8362_v46  ;;  %v1078_v11 = vadd.f32 %v8366_v50, %v696_v7  ;;  %v1454_v7 = vadd.f32 %v1399_v53, %v8371_v39  ;;  %v8377_v39 = vld [vmem:[#allocation57_spill] sm:$0xff] }
 0x1da   :  { %1998 = vrot.lane.b32.xlu0 %v8229_v40, %s5021_s2  ;;  %v8365_v40 = vld [vmem:[#allocation62_spill] sm:$0xff] }
 0x1db   :  { %v1763_v6 = vpop.f32.mrf.mxu0  ;;  %v1452_v12 = vadd.f32 %v1393_v20, %v8365_v40  ;;  %v8369_v40 = vld [vmem:[#allocation31_spill] sm:$0xff] }
 0x1dc   :  { %v1826_v2 = vadd.f32 %v1763_v6, %v1450_v25  ;;  %1996 = vrot.lane.b32.xlu1 %v1897_v15, %s5021_s2  ;;  %v1894_v6 = vmax.f32 %v6510_v28, 0.0  ;;  %v702_v22 = vadd.f32 %v8370_v42, %v8369_v40  ;;  %v8375_v40 = vld [vmem:[#allocation22_spill] sm:$0xff] }
 0x1dd   :  { %v1765_v10 = vpop.f32.mrf.mxu0 }
 0x1de   :  { %v1827_v60 = vadd.f32 %v1765_v10, %v1451_v5  ;;  %1994 = vrot.lane.b32.xlu0 %v8232_v44, %s5021_s2  ;;  %v6523_v25 = vadd.f32 %v6240_v1, %v1826_v2  ;;  %v8367_v5 = vld [vmem:[#allocation23_spill] sm:$0xff]  ;;  %v8368_v10 = vld [vmem:[#allocation24_spill] sm:$0xff] }
 0x1df   :  { %v1769_v46 = vpop.f32.mrf.mxu0  ;;  %v678_v20 = vadd.f32 %v8368_v10, %v8367_v5  ;;  %v8372_v2 = vld [vmem:[#allocation59_spill] sm:$0xff] }
 0x1e0   :  { %v1887_v15 = vadd.f32 %v6248_v37, %v1827_v60  ;;  %v1828_v33 = vadd.f32 %v1769_v46, %v1452_v12  ;;  %1992 = vrot.lane.b32.xlu1 %v1895_v55, %s5021_s2  ;;  %v1455_v12 = vadd.f32 %v1401_v54, %v1078_v11  ;;  %v8373_v46 = vld [vmem:[#allocation68_spill] sm:$0xff]  ;;  %v8239_v5 = vmax.f32 %v6523_v25, 0.0 }
 0x1e1   :  { %v1771_v62 = vpop.f32.mrf.mxu0  ;;  %v1072_v60 = vadd.f32 %v8372_v2, %v678_v20  ;;  %v1080_v55 = vadd.f32 %v8373_v46, %v702_v22  ;;  %v8376_v20 = vld [vmem:[#allocation67_spill] sm:$0xff] }
 0x1e2   :  { %v1935_v50 = vmax.f32 %v1887_v15, 0.0  ;;  %v1829_v44 = vadd.f32 %v1771_v62, %v1453_v18  ;;  %1990 = vrot.lane.b32.xlu0 %v1894_v6, %s5021_s2  ;;  %v6539_v10 = vadd.f32 %v6240_v1, %v1828_v33  ;;  %v8374_v18 = vld [vmem:[#allocation21_spill] sm:$0xff]  ;;  %v1456_v54 = vadd.f32 %v1405_v9, %v8376_v20 }
 0x1e3   :  { %v1775_v30 = vpop.f32.mrf.mxu0  ;;  %v672_v42 = vadd.f32 %v8375_v40, %v8374_v18  ;;  %v1449_v2 = vadd.f32 %v6410_v35, %v1072_v60 }
 0x1e4   :  { %v1889_v53 = vadd.f32 %v6248_v37, %v1829_v44  ;;  %v1830_v15 = vadd.f32 %v1775_v30, %v1454_v7  ;;  %2072 = vrot.lane.b32.xlu1 %v1935_v50, %s5021_s2  ;;  %v1457_v44 = vadd.f32 %v1407_v4, %v1080_v55  ;;  %v1936_v7 = vmax.f32 %v6539_v10, 0.0  ;;  %v8381_v55 = vld [vmem:[#allocation55_spill] sm:$0xff] }
 0x1e5   :  { %v1777_v62 = vpop.f32.mrf.mxu0  ;;  %v1070_v33 = vadd.f32 %v8377_v39, %v672_v42  ;;  %v1825_v35 = vadd.f32 %v6500_v19, %v1449_v2  ;;  %v8382_v19 = vld [vmem:[#allocation17_spill] sm:$0xff]  ;;  %v8383_v39 = vld [vmem:[#allocation18_spill] sm:$0xff] }
 0x1e6   :  { %v1937_v11 = vmax.f32 %v1889_v53, 0.0  ;;  %v1831_v22 = vadd.f32 %v1777_v62, %v1455_v12  ;;  %2070 = vrot.lane.b32.xlu0 %v8239_v5, %s5021_s2  ;;  %v6553_v50 = vadd.f32 %v6240_v1, %v1830_v15  ;;  %v8378_v12 = vld [vmem:[#allocation19_spill] sm:$0xff]  ;;  %v8379_v53 = vld [vmem:[#allocation20_spill] sm:$0xff]  ;;  %v8380_v62 = vld [vmem:[#allocation58_spill] sm:$0xff]  ;;  %v660_v2 = vadd.f32 %v8383_v39, %v8382_v19 }
 0x1e7   :  { %v1781_v30 = vpop.f32.mrf.mxu0  ;;  %v666_v18 = vadd.f32 %v8379_v53, %v8378_v12  ;;  %v1448_v42 = vadd.f32 %v6390_v43, %v8380_v62  ;;  %v1447_v20 = vadd.f32 %v6373_v57, %v1070_v33  ;;  %v1885_v57 = vadd.f32 %v6248_v37, %v1825_v35  ;;  %v8385_v33 = vld [vmem:[#allocation53_spill] sm:$0xff] }
 0x1e8   :  { %v1891_v46 = vadd.f32 %v6248_v37, %v1831_v22  ;;  %v1832_v9 = vadd.f32 %v1781_v30, %v1456_v54  ;;  %2076 = vrot.lane.b32.xlu1 %v1937_v11, %s5021_s2  ;;  %v1938_v11 = vmax.f32 %v6553_v50, 0.0  ;;  %v8389_v5 = vmax.f32 %v6402_v0, 0.0 }
 0x1e9   :  { %v1783_v40 = vpop.f32.mrf.mxu0  ;;  %v1068_v15 = vadd.f32 %v8381_v55, %v666_v18  ;;  %v1824_v54 = vadd.f32 %v6489_v26, %v1448_v42  ;;  %v1933_v35 = vmax.f32 %v1885_v57, 0.0 }
 0x1ea   :  { %v1939_v4 = vmax.f32 %v1891_v46, 0.0  ;;  %v1833_v60 = vadd.f32 %v1783_v40, %v1457_v44  ;;  %2074 = vrot.lane.b32.xlu0 %v1936_v7, %s5021_s2  ;;  %v6570_v22 = vadd.f32 %v6240_v1, %v1832_v9  ;;  %v8384_v44 = vld [vmem:[#allocation56_spill] sm:$0xff]  ;;  %v1823_v46 = vadd.f32 %v6480_v47, %v1447_v20  ;;  %v8386_v47 = vld [vmem:[#allocation54_spill] sm:$0xff] }
 0x1eb   :  { %v1446_v30 = vadd.f32 %v6356_v13, %v8384_v44  ;;  %v1066_v9 = vadd.f32 %v8385_v33, %v660_v2  ;;  %v1445_v12 = vadd.f32 %v6339_v56, %v1068_v15  ;;  %v6587_v18 = vadd.f32 %v6240_v1, %v1824_v54 }
 0x1ec   :  { %v1893_v43 = vadd.f32 %v6248_v37, %v1833_v60  ;;  %2080 = vrot.lane.b32.xlu1 %v1939_v4, %s5021_s2  ;;  %v1940_v13 = vmax.f32 %v6570_v22, 0.0  ;;  %v1444_v40 = vadd.f32 %v6322_v36, %v8386_v47  ;;  %v1883_v42 = vadd.f32 %v6248_v37, %v1823_v46  ;;  %v8387_v36 = vld [vmem:[#allocation52_spill] sm:$0xff] }
 0x1ed   :  { %v1822_v53 = vadd.f32 %v6471_v21, %v1446_v30  ;;  %v1821_v62 = vadd.f32 %v6466_v49, %v1445_v12  ;;  %v1443_v56 = vadd.f32 %v6305_v63, %v1066_v9  ;;  %v8238_v60 = vmax.f32 %v6587_v18, 0.0  ;;  %v2160_v63 = vld [vmem:[%s8210_s9 + $0x8] sm:$0xff] }
 0x1ee   :  { %v1941_v26 = vmax.f32 %v1893_v43, 0.0  ;;  %2078 = vrot.lane.b32.xlu0 %v1938_v11, %s5021_s2  ;;  %v1820_v21 = vadd.f32 %v6458_v38, %v1444_v40  ;;  %v1442_v49 = vadd.f32 %v6288_v8, %v8387_v36  ;;  %v1931_v20 = vmax.f32 %v1883_v42, 0.0  ;;  %4541 = vmatprep.mubr.msk.f32.mxu1 %vm2223_vm5, %v2160_v63 }
 0x1ef   :  { %v6601_v4 = vadd.f32 %v6240_v1, %v1822_v53  ;;  %v1819_v55 = vadd.f32 %v6449_v16, %v1443_v56  ;;  %v1881_v15 = vadd.f32 %v6248_v37, %v1821_v62 }
 0x1f0   :  { %2084 = vrot.lane.b32.xlu1 %v1941_v26, %s5021_s2  ;;  %v1818_v38 = vadd.f32 %v6440_v52, %v1442_v49  ;;  %v6617_v54 = vadd.f32 %v6240_v1, %v1820_v21 }
 0x1f1   :  { %v8237_v8 = vmax.f32 %v6601_v4, 0.0  ;;  %v1879_v16 = vadd.f32 %v6248_v37, %v1819_v55  ;;  %v1929_v43 = vmax.f32 %v1881_v15, 0.0 }
 0x1f2   :  { %2082 = vrot.lane.b32.xlu0 %v1940_v13, %s5021_s2  ;;  %v6627_v19 = vadd.f32 %v6240_v1, %v1818_v38  ;;  %v8236_v52 = vmax.f32 %v6617_v54, 0.0 }
 0x1f3   :  { %v1927_v39 = vmax.f32 %v1879_v16, 0.0 }
 0x1f4   :  { %2068 = vrot.lane.b32.xlu1 %v1933_v35, %s5021_s2  ;;  %v8235_v2 = vmax.f32 %v6627_v19, 0.0 }
 0x1f6   :  { %2066 = vrot.lane.b32.xlu0 %v8238_v60, %s5021_s2  ;;  %v8388_v60 = vmov 0.0  }
 0x1f8   :  { %2064 = vrot.lane.b32.xlu1 %v1931_v20, %s5021_s2 }
 0x1fa   :  { %2062 = vrot.lane.b32.xlu0 %v8237_v8, %s5021_s2 }
 0x1fc   :  { %2060 = vrot.lane.b32.xlu1 %v1929_v43, %s5021_s2 }
 0x1fe   :  { %2058 = vrot.lane.b32.xlu0 %v8236_v52, %s5021_s2 }
 0x200   :  { %2056 = vrot.lane.b32.xlu1 %v1927_v39, %s5021_s2 }
 0x202   :  { %2054 = vrot.lane.b32.xlu0 %v8235_v2, %s5021_s2 }
 0x214   :  { %v2007_v37 = vpop.permute.xlu0 %2006 }
 0x216   :  { %v2009_v1 = vpop.permute.xlu1 %2008 }
 0x217   :  { %v6640_v44 = vsel %vm2086_vm6, %v2007_v37, %v2009_v1 }
 0x218   :  { %v6642_v30 = vpop.permute.xlu0 %2010 }
 0x21a   :  { %v6644_v46 = vpop.permute.xlu1 %2012 }
 0x21c   :  { %v2015_v57 = vpop.permute.xlu0 %2014 }
 0x21e   :  { %v2017_v26 = vpop.permute.xlu1 %2016 }
 0x220   :  { %v2019_v33 = vpop.permute.xlu0 %2018 }
 0x222   :  { %v2021_v9 = vpop.permute.xlu1 %2020 }
 0x224   :  { %v2023_v12 = vpop.permute.xlu0 %2022 }
 0x226   :  { %v2025_v53 = vpop.permute.xlu1 %2024 }
 0x228   :  { %v2027_v47 = vpop.permute.xlu0 %2026 }
 0x22a   :  { %v2029_v40 = vpop.permute.xlu1 %2028 }
 0x22c   :  { %v2031_v62 = vpop.permute.xlu0 %2030 }
 0x22e   :  { %v2033_v42 = vpop.permute.xlu1 %2032 }
 0x230   :  { %v2035_v35 = vpop.permute.xlu0 %2034 }
 0x232   :  { %v2037_v56 = vpop.permute.xlu1 %2036 }
 0x233   :  { %v2098_v61 = vsel %vm2086_vm6, %v2035_v35, %v2037_v56  ;;  %v2094_v56 = vsel %vm2086_vm6, %v2019_v33, %v2021_v9  ;;  %v2092_v33 = vsel %vm2086_vm6, %v6642_v30, %v6644_v46  ;;  %v8398_v30 = vmax.f32 %v6251_v29, 0.0 }
 0x234   :  { %v2039_v21 = vpop.permute.xlu0 %2038 }
 0x235   :  { %v2139_v46 = vmax.f32 %v8398_v30, %v6640_v44  ;;  %v2175_v30 = vld [vmem:[%s8210_s9 + $0x80] sm:$0xff] }
 0x236   :  { %v2041_v36 = vpop.permute.xlu1 %2040 }
 0x237   :  { %v2099_v8 = vsel %vm2086_vm6, %v2039_v21, %v2041_v36  ;;  %v8391_v21 = vmax.f32 %v6366_v34, 0.0 }
 0x238   :  { %v2043_v55 = vpop.permute.xlu0 %2042 }
 0x239   :  { %v2146_v36 = vmax.f32 %v8391_v21, %v2098_v61 }
 0x23a   :  { %v2045_v49 = vpop.permute.xlu1 %2044 }
 0x23b   :  { %v2100_v1 = vsel %vm2086_vm6, %v2043_v55, %v2045_v49  ;;  %v2093_v55 = vsel %vm2086_vm6, %v2015_v57, %v2017_v26  ;;  %v8397_v57 = vmax.f32 %v6264_v51, 0.0 }
 0x23d   :  { %v2140_v26 = vmax.f32 %v8397_v57, %v2092_v33  ;;  %v2167_v33 = vld [vmem:[%s8210_s9 + $0x40] sm:$0xff] }
 0x23e   :  { %v2047_v15 = vpop.permute.xlu1 %2046  ;;  %v2171_v57 = vld [vmem:[%s8210_s9 + $0x60] sm:$0xff] }
 0x240   :  { %v2051_v20 = vpop.permute.xlu0 %2050 }
 0x242   :  { %v2049_v63 = vpop.permute.xlu1 %2048 }
 0x243   :  { %v2101_v16 = vsel %vm2086_vm6, %v2047_v15, %v2049_v63  ;;  %v2148_v15 = vmax.f32 %v8389_v5, %v2100_v1  ;;  %v2096_v5 = vsel %vm2086_vm6, %v2027_v47, %v2029_v40  ;;  %v8394_v47 = vmax.f32 %v6315_v3, 0.0 }
 0x244   :  { %v2053_v38 = vpop.permute.xlu0 %2052  ;;  %v2149_v2 = vmax.f32 %v1922_v23, %v2101_v16  ;;  %v2097_v23 = vsel %vm2086_vm6, %v2031_v62, %v2033_v42  ;;  %v8393_v62 = vmax.f32 %v6332_v48, 0.0  ;;  %v8396_v3 = vmax.f32 %v6281_v59, 0.0 }
 0x245   :  { %v2102_v43 = vsel %vm2086_vm6, %v2051_v20, %v2053_v38 }
 0x246   :  { %v2150_v39 = vmax.f32 %v1924_v14, %v2102_v43  ;;  %v2005_v37 = vpop.permute.xlu1 %2004  ;;  %v8390_v14 = vmax.f32 %v6383_v32, 0.0  ;;  %v2144_v42 = vmax.f32 %v8393_v62, %v2096_v5  ;;  %v2141_v9 = vmax.f32 %v8396_v3, %v2093_v55  ;;  %v2163_v55 = vld [vmem:[%s8210_s9 + $0x20] sm:$0xff]  ;;  %v2170_v3 = vld [vmem:[%s8210_s9 + $0x58] sm:$0xff] }
 0x247   :  { %v8399_v43 = vmax.f32 %v6463_v24, 0.0  ;;  %v8405_v62 = vmax.f32 %v6617_v54, 0.0  ;;  %v2162_v54 = vld [vmem:[%s8210_s9 + $0x18] sm:$0xff] }
 0x248   :  { %2321 = vmatpush1.msra.mxu1 %v2150_v39  ;;  %v2003_v52 = vpop.permute.xlu0 %2002  ;;  %v2147_v49 = vmax.f32 %v8390_v14, %v2099_v8  ;;  %v2095_v8 = vsel %vm2086_vm6, %v2023_v12, %v2025_v53  ;;  %v8395_v12 = vmax.f32 %v6298_v27, 0.0 }
 0x249   :  { %2322 = vmatprep.subr.mxu1 %v8388_v60  ;;  %v2143_v40 = vmax.f32 %v8394_v47, %v2095_v8  ;;  %v2090_v38 = vsel %vm2086_vm6, %v2003_v52, %v2005_v37  ;;  %v8400_v52 = vmax.f32 %v6476_v31, 0.0 }
 0x24a   :  { %v2001_v63 = vpop.permute.xlu1 %2000  ;;  %2323 = vmatpush1.msra.mxu1 %v2149_v2  ;;  %v8392_v2 = vmax.f32 %v6349_v58, 0.0  ;;  %v2142_v53 = vmax.f32 %v8395_v12, %v2094_v56  ;;  %v2138_v51 = vmax.f32 %v8399_v43, %v2090_v38  ;;  %v2166_v12 = vld [vmem:[%s8210_s9 + $0x38] sm:$0xff]  ;;  %v2176_v38 = vld [vmem:[%s8210_s9 + $0x88] sm:$0xff]  ;;  %v2179_v43 = vld [vmem:[%s8210_s9 + $0xa0] sm:$0xff] }
 0x24b   :  { %2324 = vmatprep.subr.mxu1 %v8388_v60 }
 0x24c   :  { %2325 = vmatpush1.msra.mxu1 %v2148_v15  ;;  %v1999_v45 = vpop.permute.xlu0 %1998  ;;  %v2145_v35 = vmax.f32 %v8392_v2, %v2097_v23  ;;  %v8401_v15 = vmax.f32 %v6494_v41, 0.0  ;;  %v8403_v2 = vmax.f32 %v6587_v18, 0.0 }
 0x24d   :  { %2326 = vmatprep.subr.mxu1 %v8388_v60  ;;  %v2089_v16 = vsel %vm2086_vm6, %v1999_v45, %v2001_v63 }
 0x24e   :  { %v1997_v0 = vpop.permute.xlu1 %1996  ;;  %2327 = vmatpush1.msra.mxu1 %v2147_v49  ;;  %v2137_v37 = vmax.f32 %v8400_v52, %v2089_v16  ;;  %v2180_v16 = vld [vmem:[%s8210_s9 + $0xa8] sm:$0xff]  ;;  %v2183_v52 = vld [vmem:[%s8210_s9 + $0xc0] sm:$0xff] }
 0x24f   :  { %2328 = vmatprep.subr.mxu1 %v8388_v60 }
 0x250   :  { %2329 = vmatpush1.msra.mxu1 %v2146_v36  ;;  %v1995_v32 = vpop.permute.xlu0 %1994 }
 0x251   :  { %2330 = vmatprep.subr.mxu1 %v8388_v60  ;;  %v2088_v1 = vsel %vm2086_vm6, %v1995_v32, %v1997_v0  ;;  %v8402_v0 = vmax.f32 %v6523_v25, 0.0 }
 0x252   :  { %v1993_v34 = vpop.permute.xlu1 %1992  ;;  %2331 = vmatpush1.msra.mxu1 %v2145_v35  ;;  %v2136_v63 = vmax.f32 %v8401_v15, %v2088_v1  ;;  %v2184_v1 = vld [vmem:[%s8210_s9 + $0xc8] sm:$0xff]  ;;  %v2187_v15 = vld [vmem:[%s8210_s9 + $0xe0] sm:$0xff] }
 0x253   :  { %2332 = vmatprep.subr.mxu1 %v8388_v60 }
 0x254   :  { %2333 = vmatpush1.msra.mxu1 %v2144_v42  ;;  %v1991_v58 = vpop.permute.xlu0 %1990 }
 0x255   :  { %2334 = vmatprep.subr.mxu1 %v8388_v60  ;;  %v2087_v44 = vsel %vm2086_vm6, %v1991_v58, %v1993_v34  ;;  %v2161_v58 = vld [vmem:[%s8210_s9 + $0x10] sm:$0xff] }
 0x256   :  { %2335 = vmatpush1.msra.mxu1 %v2143_v40  ;;  %v2073_v48 = vpop.permute.xlu1 %2072  ;;  %v2135_v61 = vmax.f32 %v1894_v6, %v2087_v44  ;;  %v2159_v40 = vld [vmem:[%s8210_s9] sm:$0xff]  ;;  %v2188_v44 = vld [vmem:[%s8210_s9 + $0xe8] sm:$0xff] }
 0x257   :  { %2336 = vmatprep.subr.mxu1 %v8388_v60 }
 0x258   :  { %2337 = vmatpush1.msra.mxu1 %v2142_v53  ;;  %v2071_v20 = vpop.permute.xlu0 %2070  ;;  %v2165_v53 = vld [vmem:[%s8210_s9 + $0x30] sm:$0xff] }
 0x259   :  { %2338 = vmatprep.subr.mxu1 %v8388_v60  ;;  %v2107_v21 = vsel %vm2086_vm6, %v2071_v20, %v2073_v48  ;;  %v2168_v48 = vld [vmem:[%s8210_s9 + $0x48] sm:$0xff] }
 0x25a   :  { %2339 = vmatpush1.msra.mxu1 %v2141_v9  ;;  %v2077_v27 = vpop.permute.xlu1 %2076  ;;  %v2155_v5 = vmax.f32 %v8402_v0, %v2107_v21  ;;  %v2169_v9 = vld [vmem:[%s8210_s9 + $0x50] sm:$0xff]  ;;  %v2172_v20 = vld [vmem:[%s8210_s9 + $0x68] sm:$0xff]  ;;  %v2199_v21 = vld [vmem:[%s8210_s9 + $0x140] sm:$0xff] }
 0x25b   :  { %2340 = vmatprep.subr.mxu1 %v8388_v60  ;;  %v2203_v0 = vld [vmem:[%s8210_s9 + $0x160] sm:$0xff] }
 0x25c   :  { %2341 = vmatpush1.msra.mxu1 %v2140_v26  ;;  %v2075_v59 = vpop.permute.xlu0 %2074  ;;  %v2174_v26 = vld [vmem:[%s8210_s9 + $0x78] sm:$0xff] }
 0x25d   :  { %2342 = vmatprep.subr.mxu1 %v8388_v60  ;;  %v2108_v23 = vsel %vm2086_vm6, %v2075_v59, %v2077_v27  ;;  %v2173_v27 = vld [vmem:[%s8210_s9 + $0x70] sm:$0xff] }
 0x25e   :  { %2343 = vmatpush1.msra.mxu1 %v2139_v46  ;;  %v2081_v39 = vpop.permute.xlu1 %2080  ;;  %v2156_v36 = vmax.f32 %v1936_v7, %v2108_v23  ;;  %v8404_v7 = vmax.f32 %v6601_v4, 0.0  ;;  %v8406_v4 = vmax.f32 %v6627_v19, 0.0  ;;  %v2164_v19 = vld [vmem:[%s8210_s9 + $0x28] sm:$0xff]  ;;  %v2178_v46 = vld [vmem:[%s8210_s9 + $0x98] sm:$0xff]  ;;  %v2177_v59 = vld [vmem:[%s8210_s9 + $0x90] sm:$0xff] }
 0x25f   :  { %2344 = vmatprep.subr.mxu1 %v8388_v60  ;;  %v2198_v23 = vld [vmem:[%s8210_s9 + $0x138] sm:$0xff] }
 0x260   :  { %2345 = vmatpush1.msra.mxu1 %v2138_v51  ;;  %v2079_v29 = vpop.permute.xlu0 %2078  ;;  %v2182_v51 = vld [vmem:[%s8210_s9 + $0xb8] sm:$0xff] }
 0x261   :  { %2346 = vmatprep.subr.mxu1 %v8388_v60  ;;  %v2109_v31 = vsel %vm2086_vm6, %v2079_v29, %v2081_v39  ;;  %v2181_v39 = vld [vmem:[%s8210_s9 + $0xb0] sm:$0xff] }
 0x262   :  { %2347 = vmatpush1.msra.mxu1 %v2137_v37  ;;  %v2085_v24 = vpop.permute.xlu1 %2084  ;;  %v2157_v28 = vmax.f32 %v1938_v11, %v2109_v31  ;;  %v2186_v37 = vld [vmem:[%s8210_s9 + $0xd8] sm:$0xff]  ;;  %v2185_v29 = vld [vmem:[%s8210_s9 + $0xd0] sm:$0xff] }
 0x263   :  { %2348 = vmatprep.subr.mxu1 %v8388_v60  ;;  %v2194_v31 = vld [vmem:[%s8210_s9 + $0x118] sm:$0xff] }
 0x264   :  { %2349 = vmatpush1.msra.mxu1 %v2136_v63  ;;  %v2083_v14 = vpop.permute.xlu0 %2082  ;;  %v2190_v63 = vld [vmem:[%s8210_s9 + $0xf8] sm:$0xff] }
 0x265   :  { %v2110_v49 = vsel %vm2086_vm6, %v2083_v14, %v2085_v24  ;;  %2350 = vmatprep.subr.mxu1 %v8388_v60  ;;  %v2189_v24 = vld [vmem:[%s8210_s9 + $0xf0] sm:$0xff]  ;;  %v2191_v14 = vld [vmem:[%s8210_s9 + $0x100] sm:$0xff] }
 0x266   :  { %v2158_v45 = vmax.f32 %v1940_v13, %v2110_v49  ;;  %2351 = vmatpush1.msra.mxu1 %v2135_v61  ;;  %v2069_v41 = vpop.permute.xlu1 %2068  ;;  %v2192_v61 = vld [vmem:[%s8210_s9 + $0x108] sm:$0xff]  ;;  %v2193_v49 = vld [vmem:[%s8210_s9 + $0x110] sm:$0xff] }
 0x267   :  { %2368 = vmatprep.subr.mxu1 %v8388_v60 }
 0x268   :  { %v2067_v6 = vpop.permute.xlu0 %2066  ;;  %2369 = vmatpush2.msra.mxu1 %v2158_v45  ;;  %v2196_v45 = vld [vmem:[%s8210_s9 + $0x128] sm:$0xff] }
 0x269   :  { %2370 = vmatprep.subr.mxu1 %v8388_v60  ;;  %v2106_v13 = vsel %vm2086_vm6, %v2067_v6, %v2069_v41  ;;  %v2195_v41 = vld [vmem:[%s8210_s9 + $0x120] sm:$0xff]  ;;  %v2200_v6 = vld [vmem:[%s8210_s9 + $0x148] sm:$0xff] }
 0x26a   :  { %2371 = vmatpush2.msra.mxu1 %v2157_v28  ;;  %v2065_v22 = vpop.permute.xlu1 %2064  ;;  %v2154_v35 = vmax.f32 %v8403_v2, %v2106_v13  ;;  %v2197_v28 = vld [vmem:[%s8210_s9 + $0x130] sm:$0xff]  ;;  %v2204_v13 = vld [vmem:[%s8210_s9 + $0x168] sm:$0xff]  ;;  %v2207_v2 = vld [vmem:[%s8210_s9 + $0x180] sm:$0xff] }
 0x26b   :  { %2372 = vmatprep.subr.mxu1 %v8388_v60 }
 0x26c   :  { %v2063_v50 = vpop.permute.xlu0 %2062  ;;  %2373 = vmatpush2.msra.mxu1 %v2156_v36  ;;  %v2202_v36 = vld [vmem:[%s8210_s9 + $0x158] sm:$0xff] }
 0x26d   :  { %v2105_v11 = vsel %vm2086_vm6, %v2063_v50, %v2065_v22  ;;  %2374 = vmatprep.subr.mxu1 %v8388_v60  ;;  %v2201_v22 = vld [vmem:[%s8210_s9 + $0x150] sm:$0xff] }
 0x26e   :  { %2375 = vmatpush2.msra.mxu1 %v2155_v5  ;;  %v2061_v10 = vpop.permute.xlu1 %2060  ;;  %v2153_v32 = vmax.f32 %v8404_v7, %v2105_v11  ;;  %v2206_v5 = vld [vmem:[%s8210_s9 + $0x178] sm:$0xff]  ;;  %v2205_v50 = vld [vmem:[%s8210_s9 + $0x170] sm:$0xff]  ;;  %v2208_v11 = vld [vmem:[%s8210_s9 + $0x188] sm:$0xff] }
 0x26f   :  { %2376 = vmatprep.subr.mxu1 %v8388_v60  ;;  %v2212_v7 = vld [vmem:[%s8210_s9 + $0x1a8] sm:$0xff] }
 0x270   :  { %v2059_v8 = vpop.permute.xlu0 %2058  ;;  %2377 = vmatpush2.msra.mxu1 %v2154_v35  ;;  %v2210_v35 = vld [vmem:[%s8210_s9 + $0x198] sm:$0xff] }
 0x271   :  { %v2104_v25 = vsel %vm2086_vm6, %v2059_v8, %v2061_v10  ;;  %2378 = vmatprep.subr.mxu1 %v8388_v60  ;;  %v2209_v10 = vld [vmem:[%s8210_s9 + $0x190] sm:$0xff]  ;;  %v2214_v8 = vld [vmem:[%s8210_s9 + $0x1b8] sm:$0xff] }
 0x272   :  { %v2152_v42 = vmax.f32 %v8405_v62, %v2104_v25  ;;  %2379 = vmatpush2.msra.mxu1 %v2153_v32  ;;  %v2057_v18 = vpop.permute.xlu1 %2056  ;;  %v2211_v32 = vld [vmem:[%s8210_s9 + $0x1a0] sm:$0xff]  ;;  %v2213_v25 = vld [vmem:[%s8210_s9 + $0x1b0] sm:$0xff]  ;;  %v2216_v62 = vld [vmem:[%s8210_s9 + $0x1c8] sm:$0xff] }
 0x273   :  { %2380 = vmatprep.subr.mxu1 %v8388_v60 }
 0x274   :  { %v2055_v34 = vpop.permute.xlu0 %2054  ;;  %2381 = vmatpush2.msra.mxu1 %v2152_v42  ;;  %v4602_v42 = vld [vmem:[%s8211_s3 + $0x1d8] sm:$0xff] }
 0x275   :  { %v2103_v56 = vsel %vm2086_vm6, %v2055_v34, %v2057_v18  ;;  %2382 = vmatprep.subr.mxu1 %v8388_v60  ;;  %v4648_v18 = vld [vmem:[%s8211_s3 + $0x2c8] sm:$0xff]  ;;  %2681 = vmatprep.subr.mxu0 %v4602_v42  ;;  %v4601_v34 = vld [vmem:[%s8211_s3 + $0x1d0] sm:$0xff] }
 0x276   :  { %v2151_v47 = vmax.f32 %v8406_v4, %v2103_v56  ;;  %v4647_v56 = vld [vmem:[%s8211_s3 + $0x2c0] sm:$0xff]  ;;  %2682 = vmatpush1.msra.mxu0 %v4601_v34  ;;  %v4621_v42 = vld [vmem:[%s8211_s3 + $0x1f0] sm:$0xff]  ;;  %v4620_v34 = vld [vmem:[%s8211_s3 + $0x1e8] sm:$0xff] }
 0x277   :  { %v2215_v4 = vld [vmem:[%s8210_s9 + $0x1c0] sm:$0xff] }
 0x278   :  { %2383 = vmatpush2.msra.mxu1 %v2151_v47  ;;  %v4600_v47 = vld [vmem:[%s8211_s3 + $0x1c8] sm:$0xff] }
 0x279   :  { %2385 = vmatmul.mubr.f32.vlgmr.msra.gmra.mxu1 %v2159_v40  ;;  %2994 = vmatprep.subr.mxu1 %v4648_v18  ;;  %v4646_v40 = vld [vmem:[%s8211_s3 + $0x2b8] sm:$0xff] }
 0x27a   :  { %4542 = vmatprep.mubr.msk.f32.mxu1 %vm2223_vm5, %v2162_v54  ;;  %v2218_v54 = vld [vmem:[%s8210_s9 + $0x1d8] sm:$0xff]  ;;  %2995 = vmatpush1.msra.mxu1 %v4647_v56  ;;  %v4573_v56 = vld [vmem:[%s8211_s3 + $0xf0] sm:$0xff] }
 0x27b   :  { %2683 = vmatprep.subr.mxu0 %v4600_v47  ;;  %2996 = vmatprep.subr.mxu1 %v4646_v40  ;;  %v4574_v18 = vld [vmem:[%s8211_s3 + $0xf8] sm:$0xff]  ;;  %v2590_v47 = vld [vmem:[%s8211_s3 + $0xe8] sm:$0xff] }
 0x27c   :  { %v4724_v40 = vld [vmem:[%s8211_s3 + $0x4a8] sm:$0xff] }
 0x27d   :  { %2390 = vmatmul.mubr.f32.gmra.mxu1 %v2161_v58  ;;  %v4599_v58 = vld [vmem:[%s8211_s3 + $0x1c0] sm:$0xff] }
 0x27e   :  { %4543 = vmatprep.mubr.msk.f32.mxu1 %vm2223_vm5, %v2164_v19  ;;  %v4645_v19 = vld [vmem:[%s8211_s3 + $0x2b0] sm:$0xff]  ;;  %2684 = vmatpush1.msra.mxu0 %v4599_v58 }
 0x27f   :  { %2997 = vmatpush1.msra.mxu1 %v4645_v19 }
 0x281   :  { %2395 = vmatmul.mubr.f32.gmra.mxu1 %v2163_v55  ;;  %v4598_v55 = vld [vmem:[%s8211_s3 + $0x1b8] sm:$0xff] }
 0x282   :  { %4544 = vmatprep.mubr.msk.f32.mxu1 %vm2223_vm5, %v2166_v12  ;;  %v4644_v12 = vld [vmem:[%s8211_s3 + $0x2a8] sm:$0xff]  ;;  %2685 = vmatprep.subr.mxu0 %v4598_v55 }
 0x283   :  { %2998 = vmatprep.subr.mxu1 %v4644_v12 }
 0x285   :  { %2400 = vmatmul.mubr.f32.gmra.mxu1 %v2165_v53  ;;  %v4597_v53 = vld [vmem:[%s8211_s3 + $0x1b0] sm:$0xff] }
 0x286   :  { %4545 = vmatprep.mubr.msk.f32.mxu1 %vm2223_vm5, %v2168_v48  ;;  %v4643_v48 = vld [vmem:[%s8211_s3 + $0x2a0] sm:$0xff]  ;;  %2686 = vmatpush1.msra.mxu0 %v4597_v53 }
 0x287   :  { %2999 = vmatpush1.msra.mxu1 %v4643_v48 }
 0x289   :  { %2405 = vmatmul.mubr.f32.gmra.mxu1 %v2167_v33  ;;  %v2217_v33 = vld [vmem:[%s8210_s9 + $0x1d0] sm:$0xff] }
 0x28a   :  { %4546 = vmatprep.mubr.msk.f32.mxu1 %vm2223_vm5, %v2170_v3  ;;  %v4596_v3 = vld [vmem:[%s8211_s3 + $0x1a8] sm:$0xff] }
 0x28b   :  { %2687 = vmatprep.subr.mxu0 %v4596_v3 }
 0x28d   :  { %2410 = vmatmul.mubr.f32.gmra.mxu1 %v2169_v9  ;;  %v2220_v9 = vld [vmem:[%s8210_s9 + $0x1e8] sm:$0xff] }
 0x28e   :  { %4547 = vmatprep.mubr.msk.f32.mxu1 %vm2223_vm5, %v2172_v20  ;;  %v4642_v20 = vld [vmem:[%s8211_s3 + $0x298] sm:$0xff] }
 0x28f   :  { %3000 = vmatprep.subr.mxu1 %v4642_v20 }
 0x291   :  { %2415 = vmatmul.mubr.f32.gmra.mxu1 %v2171_v57  ;;  %v4595_v57 = vld [vmem:[%s8211_s3 + $0x1a0] sm:$0xff] }
 0x292   :  { %4548 = vmatprep.mubr.msk.f32.mxu1 %vm2223_vm5, %v2174_v26  ;;  %v4641_v26 = vld [vmem:[%s8211_s3 + $0x290] sm:$0xff]  ;;  %2688 = vmatpush1.msra.mxu0 %v4595_v57 }
 0x293   :  { %3001 = vmatpush1.msra.mxu1 %v4641_v26 }
 0x295   :  { %2420 = vmatmul.mubr.f32.gmra.mxu1 %v2173_v27  ;;  %v4594_v27 = vld [vmem:[%s8211_s3 + $0x198] sm:$0xff] }
 0x296   :  { %4549 = vmatprep.mubr.msk.f32.mxu1 %vm2223_vm5, %v2176_v38  ;;  %v4640_v38 = vld [vmem:[%s8211_s3 + $0x288] sm:$0xff]  ;;  %2689 = vmatprep.subr.mxu0 %v4594_v27 }
 0x297   :  { %3002 = vmatprep.subr.mxu1 %v4640_v38 }
 0x299   :  { %2425 = vmatmul.mubr.f32.gmra.mxu1 %v2175_v30  ;;  %v2219_v30 = vld [vmem:[%s8210_s9 + $0x1e0] sm:$0xff] }
 0x29a   :  { %4550 = vmatprep.mubr.msk.f32.mxu1 %vm2223_vm5, %v2178_v46  ;;  %v4593_v46 = vld [vmem:[%s8211_s3 + $0x190] sm:$0xff] }
 0x29b   :  { %2690 = vmatpush1.msra.mxu0 %v4593_v46 }
 0x29d   :  { %2430 = vmatmul.mubr.f32.gmra.mxu1 %v2177_v59  ;;  %v2222_v59 = vld [vmem:[%s8210_s9 + $0x1f8] sm:$0xff] }
 0x29e   :  { %4551 = vmatprep.mubr.msk.f32.mxu1 %vm2223_vm5, %v2180_v16  ;;  %v4639_v16 = vld [vmem:[%s8211_s3 + $0x280] sm:$0xff] }
 0x29f   :  { %3003 = vmatpush1.msra.mxu1 %v4639_v16 }
 0x2a1   :  { %2435 = vmatmul.mubr.f32.gmra.mxu1 %v2179_v43  ;;  %v4592_v43 = vld [vmem:[%s8211_s3 + $0x188] sm:$0xff] }
 0x2a2   :  { %4552 = vmatprep.mubr.msk.f32.mxu1 %vm2223_vm5, %v2182_v51  ;;  %v4638_v51 = vld [vmem:[%s8211_s3 + $0x278] sm:$0xff]  ;;  %2691 = vmatprep.subr.mxu0 %v4592_v43 }
 0x2a3   :  { %3004 = vmatprep.subr.mxu1 %v4638_v51 }
 0x2a5   :  { %2440 = vmatmul.mubr.f32.gmra.mxu1 %v2181_v39  ;;  %v4591_v39 = vld [vmem:[%s8211_s3 + $0x180] sm:$0xff] }
 0x2a6   :  { %4553 = vmatprep.mubr.msk.f32.mxu1 %vm2223_vm5, %v2184_v1  ;;  %v4637_v1 = vld [vmem:[%s8211_s3 + $0x270] sm:$0xff]  ;;  %2692 = vmatpush1.msra.mxu0 %v4591_v39 }
 0x2a7   :  { %3005 = vmatpush1.msra.mxu1 %v4637_v1 }
 0x2a9   :  { %2445 = vmatmul.mubr.f32.gmra.mxu1 %v2183_v52  ;;  %v2221_v52 = vld [vmem:[%s8210_s9 + $0x1f0] sm:$0xff] }
 0x2aa   :  { %4554 = vmatprep.mubr.msk.f32.mxu1 %vm2223_vm5, %v2186_v37  ;;  %v4590_v37 = vld [vmem:[%s8211_s3 + $0x178] sm:$0xff] }
 0x2ab   :  { %2693 = vmatprep.subr.mxu0 %v4590_v37 }
 0x2ad   :  { %2450 = vmatmul.mubr.f32.gmra.mxu1 %v2185_v29  ;;  %v4636_v29 = vld [vmem:[%s8211_s3 + $0x268] sm:$0xff] }
 0x2ae   :  { %4555 = vmatprep.mubr.msk.f32.mxu1 %vm2223_vm5, %v2188_v44  ;;  %v4589_v44 = vld [vmem:[%s8211_s3 + $0x170] sm:$0xff]  ;;  %3006 = vmatprep.subr.mxu1 %v4636_v29 }
 0x2af   :  { %2694 = vmatpush1.msra.mxu0 %v4589_v44 }
 0x2b1   :  { %2455 = vmatmul.mubr.f32.gmra.mxu1 %v2187_v15  ;;  %v4635_v15 = vld [vmem:[%s8211_s3 + $0x260] sm:$0xff] }
 0x2b2   :  { %4556 = vmatprep.mubr.msk.f32.mxu1 %vm2223_vm5, %v2190_v63  ;;  %v4588_v63 = vld [vmem:[%s8211_s3 + $0x168] sm:$0xff]  ;;  %3007 = vmatpush1.msra.mxu1 %v4635_v15 }
 0x2b3   :  { %2695 = vmatprep.subr.mxu0 %v4588_v63 }
 0x2b5   :  { %2460 = vmatmul.mubr.f32.gmra.mxu1 %v2189_v24  ;;  %v4634_v24 = vld [vmem:[%s8211_s3 + $0x258] sm:$0xff] }
 0x2b6   :  { %4557 = vmatprep.mubr.msk.f32.mxu1 %vm2223_vm5, %v2192_v61  ;;  %v4587_v61 = vld [vmem:[%s8211_s3 + $0x160] sm:$0xff]  ;;  %3008 = vmatprep.subr.mxu1 %v4634_v24 }
 0x2b7   :  { %2696 = vmatpush1.msra.mxu0 %v4587_v61 }
 0x2b9   :  { %2465 = vmatmul.mubr.f32.gmra.mxu1 %v2191_v14  ;;  %v4633_v14 = vld [vmem:[%s8211_s3 + $0x250] sm:$0xff] }
 0x2ba   :  { %4558 = vmatprep.mubr.msk.f32.mxu1 %vm2223_vm5, %v2194_v31  ;;  %v4586_v31 = vld [vmem:[%s8211_s3 + $0x158] sm:$0xff]  ;;  %3009 = vmatpush1.msra.mxu1 %v4633_v14 }
 0x2bb   :  { %2697 = vmatprep.subr.mxu0 %v4586_v31 }
 0x2bd   :  { %2470 = vmatmul.mubr.f32.gmra.mxu1 %v2193_v49  ;;  %v4632_v49 = vld [vmem:[%s8211_s3 + $0x248] sm:$0xff] }
 0x2be   :  { %4559 = vmatprep.mubr.msk.f32.mxu1 %vm2223_vm5, %v2196_v45  ;;  %v4585_v45 = vld [vmem:[%s8211_s3 + $0x150] sm:$0xff]  ;;  %3010 = vmatprep.subr.mxu1 %v4632_v49 }
 0x2bf   :  { %2698 = vmatpush1.msra.mxu0 %v4585_v45 }
 0x2c1   :  { %2475 = vmatmul.mubr.f32.gmra.mxu1 %v2195_v41  ;;  %v4631_v41 = vld [vmem:[%s8211_s3 + $0x240] sm:$0xff] }
 0x2c2   :  { %4560 = vmatprep.mubr.msk.f32.mxu1 %vm2223_vm5, %v2198_v23  ;;  %v4584_v23 = vld [vmem:[%s8211_s3 + $0x148] sm:$0xff]  ;;  %3011 = vmatpush1.msra.mxu1 %v4631_v41 }
 0x2c3   :  { %2699 = vmatprep.subr.mxu0 %v4584_v23 }
 0x2c5   :  { %2480 = vmatmul.mubr.f32.gmra.mxu1 %v2197_v28  ;;  %v4630_v28 = vld [vmem:[%s8211_s3 + $0x238] sm:$0xff] }
 0x2c6   :  { %4561 = vmatprep.mubr.msk.f32.mxu1 %vm2223_vm5, %v2200_v6  ;;  %v4583_v6 = vld [vmem:[%s8211_s3 + $0x140] sm:$0xff]  ;;  %3012 = vmatprep.subr.mxu1 %v4630_v28 }
 0x2c7   :  { %2700 = vmatpush1.msra.mxu0 %v4583_v6 }
 0x2c9   :  { %2485 = vmatmul.mubr.f32.gmra.mxu1 %v2199_v21  ;;  %v4629_v21 = vld [vmem:[%s8211_s3 + $0x230] sm:$0xff] }
 0x2ca   :  { %4562 = vmatprep.mubr.msk.f32.mxu1 %vm2223_vm5, %v2202_v36  ;;  %v4582_v36 = vld [vmem:[%s8211_s3 + $0x138] sm:$0xff]  ;;  %3013 = vmatpush1.msra.mxu1 %v4629_v21 }
 0x2cb   :  { %2701 = vmatprep.subr.mxu0 %v4582_v36 }
 0x2cd   :  { %2490 = vmatmul.mubr.f32.gmra.mxu1 %v2201_v22  ;;  %v4628_v22 = vld [vmem:[%s8211_s3 + $0x228] sm:$0xff] }
 0x2ce   :  { %4563 = vmatprep.mubr.msk.f32.mxu1 %vm2223_vm5, %v2204_v13  ;;  %v4581_v13 = vld [vmem:[%s8211_s3 + $0x130] sm:$0xff]  ;;  %3014 = vmatprep.subr.mxu1 %v4628_v22 }
 0x2cf   :  { %2702 = vmatpush1.msra.mxu0 %v4581_v13 }
 0x2d1   :  { %2495 = vmatmul.mubr.f32.gmra.mxu1 %v2203_v0  ;;  %v4627_v0 = vld [vmem:[%s8211_s3 + $0x220] sm:$0xff] }
 0x2d2   :  { %4564 = vmatprep.mubr.msk.f32.mxu1 %vm2223_vm5, %v2206_v5  ;;  %v4580_v5 = vld [vmem:[%s8211_s3 + $0x128] sm:$0xff]  ;;  %3015 = vmatpush1.msra.mxu1 %v4627_v0 }
 0x2d3   :  { %2703 = vmatprep.subr.mxu0 %v4580_v5 }
 0x2d5   :  { %2500 = vmatmul.mubr.f32.gmra.mxu1 %v2205_v50  ;;  %v4626_v50 = vld [vmem:[%s8211_s3 + $0x218] sm:$0xff] }
 0x2d6   :  { %4565 = vmatprep.mubr.msk.f32.mxu1 %vm2223_vm5, %v2208_v11  ;;  %v4579_v11 = vld [vmem:[%s8211_s3 + $0x120] sm:$0xff]  ;;  %3016 = vmatprep.subr.mxu1 %v4626_v50 }
 0x2d7   :  { %2704 = vmatpush1.msra.mxu0 %v4579_v11  ;;  %v2589_v50 = vld [vmem:[%s8211_s3 + $0xe0] sm:$0xff] }
 0x2d8   :  { %v4723_v11 = vld [vmem:[%s8211_s3 + $0x4a0] sm:$0xff] }
 0x2d9   :  { %2505 = vmatmul.mubr.f32.gmra.mxu1 %v2207_v2  ;;  %v4625_v2 = vld [vmem:[%s8211_s3 + $0x210] sm:$0xff] }
 0x2da   :  { %4566 = vmatprep.mubr.msk.f32.mxu1 %vm2223_vm5, %v2210_v35  ;;  %v4578_v35 = vld [vmem:[%s8211_s3 + $0x118] sm:$0xff]  ;;  %3017 = vmatpush1.msra.mxu1 %v4625_v2 }
 0x2db   :  { %2705 = vmatprep.subr.mxu0 %v4578_v35 }
 0x2dd   :  { %2510 = vmatmul.mubr.f32.gmra.mxu1 %v2209_v10  ;;  %v4624_v10 = vld [vmem:[%s8211_s3 + $0x208] sm:$0xff] }
 0x2de   :  { %4567 = vmatprep.mubr.msk.f32.mxu1 %vm2223_vm5, %v2212_v7  ;;  %v4577_v7 = vld [vmem:[%s8211_s3 + $0x110] sm:$0xff]  ;;  %3018 = vmatprep.subr.mxu1 %v4624_v10  ;;  %v2588_v10 = vld [vmem:[%s8211_s3 + $0xd8] sm:$0xff] }
 0x2df   :  { %2706 = vmatpush1.msra.mxu0 %v4577_v7  ;;  %v4722_v7 = vld [vmem:[%s8211_s3 + $0x498] sm:$0xff] }
 0x2e1   :  { %2515 = vmatmul.mubr.f32.gmra.mxu1 %v2211_v32  ;;  %v4623_v32 = vld [vmem:[%s8211_s3 + $0x200] sm:$0xff] }
 0x2e2   :  { %4568 = vmatprep.mubr.msk.f32.mxu1 %vm2223_vm5, %v2214_v8  ;;  %v4576_v8 = vld [vmem:[%s8211_s3 + $0x108] sm:$0xff]  ;;  %3019 = vmatpush1.msra.mxu1 %v4623_v32  ;;  %v2587_v32 = vld [vmem:[%s8211_s3 + $0xd0] sm:$0xff] }
 0x2e3   :  { %2707 = vmatprep.subr.mxu0 %v4576_v8  ;;  %v4721_v8 = vld [vmem:[%s8211_s3 + $0x490] sm:$0xff] }
 0x2e5   :  { %2520 = vmatmul.mubr.f32.gmra.mxu1 %v2213_v25  ;;  %v4622_v25 = vld [vmem:[%s8211_s3 + $0x1f8] sm:$0xff] }
 0x2e6   :  { %4569 = vmatprep.mubr.msk.f32.mxu1 %vm2223_vm5, %v2216_v62  ;;  %v4575_v62 = vld [vmem:[%s8211_s3 + $0x100] sm:$0xff]  ;;  %3020 = vmatprep.subr.mxu1 %v4622_v25 }
 0x2e7   :  { %2708 = vmatpush1.msra.mxu0 %v4575_v62  ;;  %3021 = vmatpush1.msra.mxu1 %v4621_v42  ;;  %v2586_v62 = vld [vmem:[%s8211_s3 + $0xc8] sm:$0xff] }
 0x2e8   :  { %2709 = vmatprep.subr.mxu0 %v4574_v18  ;;  %3022 = vmatprep.subr.mxu1 %v4620_v34  ;;  %v4720_v42 = vld [vmem:[%s8211_s3 + $0x488] sm:$0xff]  ;;  %v2585_v34 = vld [vmem:[%s8211_s3 + $0xc0] sm:$0xff] }
 0x2e9   :  { %2525 = vmatmul.mubr.f32.gmra.mxu1 %v2215_v4  ;;  %v4619_v4 = vld [vmem:[%s8211_s3 + $0x1e0] sm:$0xff]  ;;  %2710 = vmatpush1.msra.mxu0 %v4573_v56 }
 0x2ea   :  { %4570 = vmatprep.mubr.msk.f32.mxu1 %vm2223_vm5, %v2218_v54  ;;  %3023 = vmatpush1.msra.mxu1 %v4619_v4  ;;  %v4719_v56 = vld [vmem:[%s8211_s3 + $0x480] sm:$0xff] }
 0x2eb   :  { %2810 = vmatprep.subr.mxu0 %v2590_v47  ;;  %3394 = vmatprep.subr.mxu1 %v4724_v40 }
 0x2ed   :  { %2530 = vmatmul.mubr.f32.gmra.mxu1 %v2217_v33 }
 0x2ee   :  { %4571 = vmatprep.mubr.msk.f32.mxu1 %vm2223_vm5, %v2220_v9 }
 0x2f1   :  { %2535 = vmatmul.mubr.f32.gmra.mxu1 %v2219_v30 }
 0x2f2   :  { %4572 = vmatprep.mubr.msk.f32.mxu1 %vm2223_vm5, %v2222_v59 }
 0x2f5   :  { %2540 = vmatmul.mubr.f32.gmra.mxu1 %v2221_v52 }
 0x2f6   :  { %3056 = vmatprep.mubr.f32.mxu1 %v8388_v60 }
 0x339   :  { %v2386_v54 = vpop.f32.mrf.mxu1 }
 0x33b   :  { %v2388_v58 = vpop.f32.mrf.mxu1 }
 0x33c   :  { %v4718_v58 = vld [vmem:[%s8211_s3 + $0x478] sm:$0xff] }
 0x33d   :  { %v2391_v19 = vpop.f32.mrf.mxu1 }
 0x33f   :  { %v2393_v55 = vpop.f32.mrf.mxu1 }
 0x341   :  { %v2396_v12 = vpop.f32.mrf.mxu1 }
 0x343   :  { %v2398_v53 = vpop.f32.mrf.mxu1 }
 0x345   :  { %v2401_v48 = vpop.f32.mrf.mxu1 }
 0x347   :  { %v2403_v33 = vpop.f32.mrf.mxu1 }
 0x349   :  { %v7150_v3 = vpop.f32.mrf.mxu1 }
 0x34b   :  { %v2408_v9 = vpop.f32.mrf.mxu1 }
 0x34d   :  { %v7152_v20 = vpop.f32.mrf.mxu1 }
 0x34f   :  { %v2413_v57 = vpop.f32.mrf.mxu1 }
 0x351   :  { %v7154_v26 = vpop.f32.mrf.mxu1 }
 0x353   :  { %v2418_v27 = vpop.f32.mrf.mxu1 }
 0x355   :  { %v7156_v38 = vpop.f32.mrf.mxu1 }
 0x357   :  { %v2423_v30 = vpop.f32.mrf.mxu1 }
 0x358   :  { %v2583_v30 = vld [vmem:[%s8211_s3 + $0xb0] sm:$0xff] }
 0x359   :  { %v7158_v46 = vpop.f32.mrf.mxu1 }
 0x35b   :  { %v2428_v59 = vpop.f32.mrf.mxu1 }
 0x35c   :  { %v4717_v59 = vld [vmem:[%s8211_s3 + $0x470] sm:$0xff] }
 0x35d   :  { %v7160_v16 = vpop.f32.mrf.mxu1 }
 0x35f   :  { %v2433_v43 = vpop.f32.mrf.mxu1 }
 0x361   :  { %v7162_v51 = vpop.f32.mrf.mxu1 }
 0x363   :  { %v2438_v39 = vpop.f32.mrf.mxu1 }
 0x365   :  { %v7164_v1 = vpop.f32.mrf.mxu1 }
 0x367   :  { %v2443_v52 = vpop.f32.mrf.mxu1 }
 0x368   :  { %v2582_v52 = vld [vmem:[%s8211_s3 + $0xa8] sm:$0xff] }
 0x369   :  { %v7166_v37 = vpop.f32.mrf.mxu1 }
 0x36b   :  { %v2448_v29 = vpop.f32.mrf.mxu1 }
 0x36c   :  { %v4716_v29 = vld [vmem:[%s8211_s3 + $0x468] sm:$0xff] }
 0x36d   :  { %v7168_v44 = vpop.f32.mrf.mxu1 }
 0x36f   :  { %v2453_v15 = vpop.f32.mrf.mxu1 }
 0x371   :  { %v7170_v63 = vpop.f32.mrf.mxu1 }
 0x373   :  { %v2458_v24 = vpop.f32.mrf.mxu1 }
 0x375   :  { %v7172_v61 = vpop.f32.mrf.mxu1 }
 0x377   :  { %v2463_v14 = vpop.f32.mrf.mxu1 }
 0x378   :  { %v4715_v14 = vld [vmem:[%s8211_s3 + $0x460] sm:$0xff] }
 0x379   :  { %v2466_v31 = vpop.f32.mrf.mxu1 }
 0x37a   :  { %v7174_v45 = vmax.f32 %v2386_v54, %v2466_v31  ;;  %v2584_v54 = vld [vmem:[%s8211_s3 + $0xb8] sm:$0xff] }
 0x37b   :  { %v2468_v49 = vpop.f32.mrf.mxu1 }
 0x37c   :  { %v2607_v6 = vrot.slane %v7174_v45, 1  ;;  %v2921_v21 = vrot.slane %v7174_v45, 2  ;;  %v2580_v49 = vld [vmem:[%s8211_s3 + $0x98] sm:$0xff] }
 0x37d   :  { %v2471_v41 = vpop.f32.mrf.mxu1 }
 0x37e   :  { %v7176_v23 = vmax.f32 %v2391_v19, %v2471_v41  ;;  %v4714_v41 = vld [vmem:[%s8211_s3 + $0x458] sm:$0xff] }
 0x37f   :  { %v2473_v28 = vpop.f32.mrf.mxu1 }
 0x380   :  { %v2608_v36 = vrot.slane %v7176_v23, 1  ;;  %v2922_v22 = vrot.slane %v7176_v23, 2 }
 0x381   :  { %v2476_v13 = vpop.f32.mrf.mxu1 }
 0x382   :  { %v2609_v0 = vsel %vm110_vm1, %v2607_v6, %v2608_v36  ;;  %v2923_v5 = vsel %vm704_vm3, %v2921_v21, %v2922_v22  ;;  %v7190_v2 = vmax.f32 %v2396_v12, %v2476_v13  ;;  %v2579_v6 = vld [vmem:[%s8211_s3 + $0x90] sm:$0xff] }
 0x383   :  { %v2478_v35 = vpop.f32.mrf.mxu1  ;;  %4603 = vmatmul.mubr.msk.f32.vlgmr.msra.gmra.mxu0 %vm2662_vm7, %v2609_v0  ;;  %4649 = vmatmul.mubr.msk.f32.vlgmr.msra.gmra.mxu1 %vm2662_vm7, %v2923_v5  ;;  %v4713_v21 = vld [vmem:[%s8211_s3 + $0x450] sm:$0xff]  ;;  %v4712_v0 = vld [vmem:[%s8211_s3 + $0x448] sm:$0xff] }
 0x384   :  { %2749 = vmatprep.mubr.f32.mxu0 %v8388_v60  ;;  %3062 = vmatprep.mubr.f32.mxu1 %v8388_v60  ;;  %v2610_v47 = vrot.slane %v7190_v2, 1  ;;  %v2924_v40 = vrot.slane %v7190_v2, 2  ;;  %v3324_v33 = vrot.slane %v7190_v2, 4  ;;  %v3124_v9 = vrot.slane %v7190_v2, 3 }
 0x385   :  { %v2481_v25 = vpop.f32.mrf.mxu1  ;;  %2811 = vmatpush1.msra.mxu0 %v2589_v50  ;;  %3395 = vmatpush1.msra.mxu1 %v4723_v11 }
 0x386   :  { %v2548_v18 = vmax.f32 %v2401_v48, %v2481_v25  ;;  %2812 = vmatprep.subr.mxu0 %v2588_v10  ;;  %3396 = vmatprep.subr.mxu1 %v4722_v7 }
 0x387   :  { %v2483_v4 = vpop.f32.mrf.mxu1  ;;  %2813 = vmatpush1.msra.mxu0 %v2587_v32  ;;  %3397 = vmatpush1.msra.mxu1 %v4721_v8 }
 0x388   :  { %v2611_v19 = vrot.slane %v2548_v18, 1  ;;  %v2925_v55 = vrot.slane %v2548_v18, 2  ;;  %v3125_v12 = vrot.slane %v2548_v18, 3  ;;  %v3325_v53 = vrot.slane %v2548_v18, 4  ;;  %2814 = vmatprep.subr.mxu0 %v2586_v62  ;;  %3398 = vmatprep.subr.mxu1 %v4720_v42  ;;  %v2577_v62 = vld [vmem:[%s8211_s3 + $0x80] sm:$0xff]  ;;  %v4710_v4 = vld [vmem:[%s8211_s3 + $0x438] sm:$0xff] }
 0x389   :  { %v2486_v48 = vpop.f32.mrf.mxu1  ;;  %2815 = vmatpush1.msra.mxu0 %v2585_v34  ;;  %3399 = vmatpush1.msra.mxu1 %v4719_v56  ;;  %v4711_v42 = vld [vmem:[%s8211_s3 + $0x440] sm:$0xff]  ;;  %v2576_v56 = vld [vmem:[%s8211_s3 + $0x78] sm:$0xff] }
 0x38a   :  { %v2612_v57 = vsel %vm110_vm1, %v2610_v47, %v2611_v19  ;;  %v2926_v27 = vsel %vm704_vm3, %v2924_v40, %v2925_v55  ;;  %2816 = vmatprep.subr.mxu0 %v2584_v54  ;;  %3400 = vmatprep.subr.mxu1 %v4718_v58  ;;  %v7239_v43 = vmax.f32 %v7150_v3, %v2486_v48  ;;  %v2581_v3 = vld [vmem:[%s8211_s3 + $0xa0] sm:$0xff]  ;;  %v4709_v54 = vld [vmem:[%s8211_s3 + $0x430] sm:$0xff]  ;;  %v2574_v19 = vld [vmem:[%s8211_s3 + $0x68] sm:$0xff] }
 0x38b   :  { %v2488_v39 = vpop.f32.mrf.mxu1  ;;  %4604 = vmatmul.mubr.msk.f32.gmra.mxu0 %vm2662_vm7, %v2612_v57  ;;  %4650 = vmatmul.mubr.msk.f32.gmra.mxu1 %vm2662_vm7, %v2926_v27  ;;  %v7250_v15 = vsel %vm225_vm0, %v3324_v33, %v3325_v53  ;;  %v7253_v24 = vsel %vm1081_vm4, %v3124_v9, %v3125_v12  ;;  %v4708_v55 = vld [vmem:[%s8211_s3 + $0x428] sm:$0xff]  ;;  %v2573_v53 = vld [vmem:[%s8211_s3 + $0x60] sm:$0xff]  ;;  %v4706_v27 = vld [vmem:[%s8211_s3 + $0x418] sm:$0xff] }
 0x38c   :  { %2755 = vmatprep.mubr.f32.mxu0 %v8388_v60  ;;  %3068 = vmatprep.mubr.f32.mxu1 %v8388_v60  ;;  %v2613_v22 = vrot.slane %v7239_v43, 1  ;;  %v2927_v13 = vrot.slane %v7239_v43, 2  ;;  %v3327_v7 = vrot.slane %v7239_v43, 4  ;;  %v3127_v32 = vrot.slane %v7239_v43, 3  ;;  %v4707_v48 = vld [vmem:[%s8211_s3 + $0x420] sm:$0xff] }
 0x38d   :  { %v2491_v31 = vpop.f32.mrf.mxu1  ;;  %2817 = vmatpush1.msra.mxu0 %v2583_v30  ;;  %3401 = vmatpush1.msra.mxu1 %v4717_v59 }
 0x38e   :  { %v2550_v28 = vmax.f32 %v7152_v20, %v2491_v31  ;;  %2818 = vmatprep.subr.mxu0 %v2582_v52  ;;  %3402 = vmatprep.subr.mxu1 %v4716_v29  ;;  %v2578_v20 = vld [vmem:[%s8211_s3 + $0x88] sm:$0xff] }
 0x38f   :  { %v2493_v36 = vpop.f32.mrf.mxu1  ;;  %2819 = vmatpush1.msra.mxu0 %v2581_v3  ;;  %3403 = vmatpush1.msra.mxu1 %v4715_v14 }
 0x390   :  { %v2614_v5 = vrot.slane %v2550_v28, 1  ;;  %v2928_v50 = vrot.slane %v2550_v28, 2  ;;  %v3128_v11 = vrot.slane %v2550_v28, 3  ;;  %v3328_v35 = vrot.slane %v2550_v28, 4  ;;  %2820 = vmatprep.subr.mxu0 %v2580_v49  ;;  %3404 = vmatprep.subr.mxu1 %v4714_v41  ;;  %v2571_v41 = vld [vmem:[%s8211_s3 + $0x50] sm:$0xff]  ;;  %v2570_v36 = vld [vmem:[%s8211_s3 + $0x48] sm:$0xff] }
 0x391   :  { %v2496_v10 = vpop.f32.mrf.mxu1  ;;  %2821 = vmatpush1.msra.mxu0 %v2579_v6  ;;  %3405 = vmatpush1.msra.mxu1 %v4713_v21  ;;  %v4705_v28 = vld [vmem:[%s8211_s3 + $0x410] sm:$0xff] }
 0x392   :  { %v2615_v8 = vsel %vm110_vm1, %v2613_v22, %v2614_v5  ;;  %v2929_v25 = vsel %vm704_vm3, %v2927_v13, %v2928_v50  ;;  %2822 = vmatprep.subr.mxu0 %v2578_v20  ;;  %3406 = vmatprep.subr.mxu1 %v4712_v0  ;;  %v7295_v18 = vmax.f32 %v7154_v26, %v2496_v10  ;;  %v2575_v26 = vld [vmem:[%s8211_s3 + $0x70] sm:$0xff]  ;;  %v4704_v22 = vld [vmem:[%s8211_s3 + $0x408] sm:$0xff]  ;;  %v4703_v0 = vld [vmem:[%s8211_s3 + $0x400] sm:$0xff] }
 0x393   :  { %v2498_v34 = vpop.f32.mrf.mxu1  ;;  %4605 = vmatmul.mubr.msk.f32.gmra.mxu0 %vm2662_vm7, %v2615_v8  ;;  %4651 = vmatmul.mubr.msk.f32.gmra.mxu1 %vm2662_vm7, %v2929_v25  ;;  %v7306_v47 = vsel %vm225_vm0, %v3327_v7, %v3328_v35  ;;  %v7309_v40 = vsel %vm1081_vm4, %v3127_v32, %v3128_v11  ;;  %v2568_v50 = vld [vmem:[%s8211_s3 + $0x38] sm:$0xff]  ;;  %v2567_v10 = vld [vmem:[%s8211_s3 + $0x30] sm:$0xff] }
 0x394   :  { %2761 = vmatprep.mubr.f32.mxu0 %v8388_v60  ;;  %3074 = vmatprep.mubr.f32.mxu1 %v8388_v60  ;;  %v2616_v9 = vrot.slane %v7295_v18, 1  ;;  %v2930_v57 = vrot.slane %v7295_v18, 2  ;;  %v3330_v3 = vrot.slane %v7295_v18, 4  ;;  %v3130_v14 = vrot.slane %v7295_v18, 3  ;;  %v4702_v11 = vld [vmem:[%s8211_s3 + $0x3f8] sm:$0xff]  ;;  %v4701_v7 = vld [vmem:[%s8211_s3 + $0x3f0] sm:$0xff] }
 0x395   :  { %v2501_v58 = vpop.f32.mrf.mxu1  ;;  %2823 = vmatpush1.msra.mxu0 %v2577_v62  ;;  %3407 = vmatpush1.msra.mxu1 %v4711_v42  ;;  %v4700_v62 = vld [vmem:[%s8211_s3 + $0x3e8] sm:$0xff] }
 0x396   :  { %v2552_v12 = vmax.f32 %v7156_v38, %v2501_v58  ;;  %2824 = vmatprep.subr.mxu0 %v2576_v56  ;;  %3408 = vmatprep.subr.mxu1 %v4710_v4  ;;  %v2572_v38 = vld [vmem:[%s8211_s3 + $0x58] sm:$0xff] }
 0x397   :  { %v2503_v33 = vpop.f32.mrf.mxu1  ;;  %2825 = vmatpush1.msra.mxu0 %v2575_v26  ;;  %3409 = vmatpush1.msra.mxu1 %v4709_v54 }
 0x398   :  { %v2617_v30 = vrot.slane %v2552_v12, 1  ;;  %v2931_v59 = vrot.slane %v2552_v12, 2  ;;  %v3131_v39 = vrot.slane %v2552_v12, 3  ;;  %v3331_v52 = vrot.slane %v2552_v12, 4  ;;  %2826 = vmatprep.subr.mxu0 %v2574_v19  ;;  %3410 = vmatprep.subr.mxu1 %v4708_v55  ;;  %v2565_v12 = vld [vmem:[%s8211_s3 + $0x20] sm:$0xff] }
 0x399   :  { %v2506_v29 = vpop.f32.mrf.mxu1  ;;  %2827 = vmatpush1.msra.mxu0 %v2573_v53  ;;  %3411 = vmatpush1.msra.mxu1 %v4707_v48  ;;  %v4699_v53 = vld [vmem:[%s8211_s3 + $0x3e0] sm:$0xff] }
 0x39a   :  { %v2618_v31 = vsel %vm110_vm1, %v2616_v9, %v2617_v30  ;;  %v2932_v49 = vsel %vm704_vm3, %v2930_v57, %v2931_v59  ;;  %2828 = vmatprep.subr.mxu0 %v2572_v38  ;;  %3412 = vmatprep.subr.mxu1 %v4706_v27  ;;  %v7351_v6 = vmax.f32 %v7158_v46, %v2506_v29  ;;  %v2569_v46 = vld [vmem:[%s8211_s3 + $0x40] sm:$0xff]  ;;  %v2564_v9 = vld [vmem:[%s8211_s3 + $0x18] sm:$0xff]  ;;  %v4697_v30 = vld [vmem:[%s8211_s3 + $0x3d0] sm:$0xff] }
 0x39b   :  { %v2508_v21 = vpop.f32.mrf.mxu1  ;;  %4606 = vmatmul.mubr.msk.f32.gmra.mxu0 %vm2662_vm7, %v2618_v31  ;;  %4652 = vmatmul.mubr.msk.f32.gmra.mxu1 %vm2662_vm7, %v2932_v49  ;;  %v7362_v13 = vsel %vm225_vm0, %v3330_v3, %v3331_v52  ;;  %v7365_v20 = vsel %vm1081_vm4, %v3130_v14, %v3131_v39  ;;  %v4698_v57 = vld [vmem:[%s8211_s3 + $0x3d8] sm:$0xff]  ;;  %v2562_v39 = vld [vmem:[%s8211_s3 + $0x8] sm:$0xff]  ;;  %v2561_v3 = vld [vmem:[%s8211_s3] sm:$0xff] }
 0x39c   :  { %2767 = vmatprep.mubr.f32.mxu0 %v8388_v60  ;;  %3080 = vmatprep.mubr.f32.mxu1 %v8388_v60  ;;  %v2619_v8 = vrot.slane %v7351_v6, 1  ;;  %v2933_v25 = vrot.slane %v7351_v6, 2  ;;  %v3333_v54 = vrot.slane %v7351_v6, 4  ;;  %v3133_v58 = vrot.slane %v7351_v6, 3  ;;  %v4696_v52 = vld [vmem:[%s8211_s3 + $0x3c8] sm:$0xff]  ;;  %v4695_v14 = vld [vmem:[%s8211_s3 + $0x3c0] sm:$0xff] }
 0x39d   :  { %v2511_v5 = vpop.f32.mrf.mxu1  ;;  %2829 = vmatpush1.msra.mxu0 %v2571_v41  ;;  %3413 = vmatpush1.msra.mxu1 %v4705_v28 }
 0x39e   :  { %v2554_v35 = vmax.f32 %v7160_v16, %v2511_v5  ;;  %2830 = vmatprep.subr.mxu0 %v2570_v36  ;;  %3414 = vmatprep.subr.mxu1 %v4704_v22  ;;  %v2566_v16 = vld [vmem:[%s8211_s3 + $0x28] sm:$0xff] }
 0x39f   :  { %v2513_v32 = vpop.f32.mrf.mxu1  ;;  %2831 = vmatpush1.msra.mxu0 %v2569_v46  ;;  %3415 = vmatpush1.msra.mxu1 %v4703_v0 }
 0x3a0   :  { %v2620_v42 = vrot.slane %v2554_v35, 1  ;;  %v2934_v34 = vrot.slane %v2554_v35, 2  ;;  %v3134_v56 = vrot.slane %v2554_v35, 3  ;;  %v3334_v4 = vrot.slane %v2554_v35, 4  ;;  %2832 = vmatprep.subr.mxu0 %v2568_v50  ;;  %3416 = vmatprep.subr.mxu1 %v4702_v11 }
 0x3a1   :  { %v2516_v26 = vpop.f32.mrf.mxu1  ;;  %2833 = vmatpush1.msra.mxu0 %v2567_v10  ;;  %3417 = vmatpush1.msra.mxu1 %v4701_v7 }
 0x3a2   :  { %v2621_v19 = vsel %vm110_vm1, %v2619_v8, %v2620_v42  ;;  %v2935_v55 = vsel %vm704_vm3, %v2933_v25, %v2934_v34  ;;  %2834 = vmatprep.subr.mxu0 %v2566_v16  ;;  %3418 = vmatprep.subr.mxu1 %v4700_v62  ;;  %v7407_v48 = vmax.f32 %v7162_v51, %v2516_v26  ;;  %v2563_v51 = vld [vmem:[%s8211_s3 + $0x10] sm:$0xff] }
 0x3a3   :  { %v2518_v33 = vpop.f32.mrf.mxu1  ;;  %4607 = vmatmul.mubr.msk.f32.gmra.mxu0 %vm2662_vm7, %v2621_v19  ;;  %4653 = vmatmul.mubr.msk.f32.gmra.mxu1 %vm2662_vm7, %v2935_v55  ;;  %v7418_v38 = vsel %vm225_vm0, %v3333_v54, %v3334_v4  ;;  %v7421_v27 = vsel %vm1081_vm4, %v3133_v58, %v3134_v56 }
 0x3a4   :  { %2773 = vmatprep.mubr.f32.mxu0 %v8388_v60  ;;  %3086 = vmatprep.mubr.f32.mxu1 %v8388_v60  ;;  %v2622_v49 = vrot.slane %v7407_v48, 1  ;;  %v2936_v41 = vrot.slane %v7407_v48, 2  ;;  %v3336_v28 = vrot.slane %v7407_v48, 4  ;;  %v3136_v5 = vrot.slane %v7407_v48, 3 }
 0x3a5   :  { %v2521_v59 = vpop.f32.mrf.mxu1  ;;  %2835 = vmatpush1.msra.mxu0 %v2565_v12  ;;  %3419 = vmatpush1.msra.mxu1 %v4699_v53 }
 0x3a6   :  { %v2556_v29 = vmax.f32 %v7164_v1, %v2521_v59  ;;  %2836 = vmatprep.subr.mxu0 %v2564_v9  ;;  %3420 = vmatprep.subr.mxu1 %v4698_v57  ;;  %v4686_v1 = vld [vmem:[%s8211_s3 + $0x3b8] sm:$0xff] }
 0x3a7   :  { %v2523_v31 = vpop.f32.mrf.mxu1  ;;  %2837 = vmatpush1.msra.mxu0 %v2563_v51  ;;  %3421 = vmatpush1.msra.mxu1 %v4697_v30 }
 0x3a8   :  { %v2623_v21 = vrot.slane %v2556_v29, 1  ;;  %v2937_v36 = vrot.slane %v2556_v29, 2  ;;  %v3137_v22 = vrot.slane %v2556_v29, 3  ;;  %v3337_v46 = vrot.slane %v2556_v29, 4  ;;  %2838 = vmatprep.subr.mxu0 %v2562_v39  ;;  %3422 = vmatprep.subr.mxu1 %v4696_v52 }
 0x3a9   :  { %v2526_v0 = vpop.f32.mrf.mxu1  ;;  %2839 = vmatpush1.msra.mxu0 %v2561_v3  ;;  %3423 = vmatpush1.msra.mxu1 %v4695_v14  ;;  %v3322_v31 = vrot.slane %v7176_v23, 4 }
 0x3aa   :  { %v2624_v50 = vsel %vm110_vm1, %v2622_v49, %v2623_v21  ;;  %v2938_v11 = vsel %vm704_vm3, %v2936_v41, %v2937_v36  ;;  %3194 = vmatprep.subr.mxu0 %v4686_v1  ;;  %v7454_v35 = vsel %vm225_vm0, %v3336_v28, %v3337_v46  ;;  %v7457_v10 = vmax.f32 %v7166_v37, %v2526_v0  ;;  %v4685_v21 = vld [vmem:[%s8211_s3 + $0x3b0] sm:$0xff]  ;;  %v4683_v46 = vld [vmem:[%s8211_s3 + $0x3a0] sm:$0xff]  ;;  %v4682_v0 = vld [vmem:[%s8211_s3 + $0x398] sm:$0xff] }
 0x3ab   :  { %v2528_v7 = vpop.f32.mrf.mxu1  ;;  %4608 = vmatmul.mubr.msk.f32.gmra.mxu0 %vm2662_vm7, %v2624_v50  ;;  %4654 = vmatmul.mubr.msk.f32.gmra.mxu1 %vm2662_vm7, %v2938_v11  ;;  %v7462_v32 = vsel %vm1081_vm4, %v3136_v5, %v3137_v22  ;;  %v3321_v28 = vrot.slane %v7174_v45, 4  ;;  %v4684_v22 = vld [vmem:[%s8211_s3 + $0x3a8] sm:$0xff]  ;;  %v4681_v5 = vld [vmem:[%s8211_s3 + $0x390] sm:$0xff]  ;;  %v4679_v11 = vld [vmem:[%s8211_s3 + $0x380] sm:$0xff] }
 0x3ac   :  { %2779 = vmatprep.mubr.f32.mxu0 %v8388_v60  ;;  %3092 = vmatprep.mubr.f32.mxu1 %v8388_v60  ;;  %v2625_v37 = vrot.slane %v7457_v10, 1  ;;  %v2939_v62 = vrot.slane %v7457_v10, 2  ;;  %v3339_v42 = vrot.slane %v7457_v10, 4  ;;  %v3139_v58 = vrot.slane %v7457_v10, 3  ;;  %v4680_v50 = vld [vmem:[%s8211_s3 + $0x388] sm:$0xff] }
 0x3ad   :  { %v2531_v8 = vpop.f32.mrf.mxu1  ;;  %4903 = vmatprep.subr.mxu1 %v8388_v60  ;;  %v3323_v36 = vsel %vm225_vm0, %v3321_v28, %v3322_v31  ;;  %v4676_v7 = vld [vmem:[%s8211_s3 + $0x368] sm:$0xff] }
 0x3ae   :  { %v2558_v25 = vmax.f32 %v7168_v44, %v2531_v8  ;;  %v4673_v8 = vld [vmem:[%s8211_s3 + $0x350] sm:$0xff] }
 0x3af   :  { %v2533_v16 = vpop.f32.mrf.mxu1 }
 0x3b0   :  { %v2626_v34 = vrot.slane %v2558_v25, 1  ;;  %v2940_v56 = vrot.slane %v2558_v25, 2  ;;  %v3140_v4 = vrot.slane %v2558_v25, 3  ;;  %v3340_v26 = vrot.slane %v2558_v25, 4  ;;  %v4672_v25 = vld [vmem:[%s8211_s3 + $0x348] sm:$0xff]  ;;  %v4670_v16 = vld [vmem:[%s8211_s3 + $0x338] sm:$0xff] }
 0x3b1   :  { %v2536_v54 = vpop.f32.mrf.mxu1 }
 0x3b2   :  { %v2627_v19 = vsel %vm110_vm1, %v2625_v37, %v2626_v34  ;;  %v2941_v55 = vsel %vm704_vm3, %v2939_v62, %v2940_v56  ;;  %v7475_v44 = vsel %vm225_vm0, %v3339_v42, %v3340_v26  ;;  %v7478_v12 = vmax.f32 %v7170_v63, %v2536_v54  ;;  %v4668_v37 = vld [vmem:[%s8211_s3 + $0x328] sm:$0xff]  ;;  %v4666_v62 = vld [vmem:[%s8211_s3 + $0x318] sm:$0xff]  ;;  %v4657_v54 = vld [vmem:[%s8211_s3 + $0x2d0] sm:$0xff] }
 0x3b3   :  { %v2538_v53 = vpop.f32.mrf.mxu1  ;;  %4609 = vmatmul.mubr.msk.f32.gmra.mxu0 %vm2662_vm7, %v2627_v19  ;;  %4655 = vmatmul.mubr.msk.f32.gmra.mxu1 %vm2662_vm7, %v2941_v55  ;;  %v7483_v33 = vsel %vm1081_vm4, %v3139_v58, %v3140_v4  ;;  %v4664_v42 = vld [vmem:[%s8211_s3 + $0x308] sm:$0xff]  ;;  %v4662_v34 = vld [vmem:[%s8211_s3 + $0x2f8] sm:$0xff]  ;;  %v3122_v4 = vrot.slane %v7176_v23, 3  ;;  %v3121_v58 = vrot.slane %v7174_v45, 3 }
 0x3b4   :  { %2785 = vmatprep.mubr.f32.mxu0 %v8388_v60  ;;  %3098 = vmatprep.mubr.f32.mxu1 %v8388_v60  ;;  %v2628_v51 = vrot.slane %v7478_v12, 1  ;;  %v2942_v63 = vrot.slane %v7478_v12, 2  ;;  %v3342_v59 = vrot.slane %v7478_v12, 4  ;;  %v3142_v39 = vrot.slane %v7478_v12, 3  ;;  %v4660_v56 = vld [vmem:[%s8211_s3 + $0x2e8] sm:$0xff]  ;;  %v4658_v26 = vld [vmem:[%s8211_s3 + $0x2d8] sm:$0xff] }
 0x3b5   :  { %v2541_v9 = vpop.f32.mrf.mxu1  ;;  %v3123_v23 = vsel %vm1081_vm4, %v3121_v58, %v3122_v4 }
 0x3b6   :  { %v2560_v57 = vmax.f32 %v7172_v61, %v2541_v9 }
 0x3b7   :  { %v2543_v30 = vpop.f32.mrf.mxu1 }
 0x3b8   :  { %v2629_v52 = vrot.slane %v2560_v57, 1  ;;  %v2943_v29 = vrot.slane %v2560_v57, 2  ;;  %v3143_v3 = vrot.slane %v2560_v57, 3  ;;  %v3343_v14 = vrot.slane %v2560_v57, 4 }
 0x3ba   :  { %v2630_v49 = vsel %vm110_vm1, %v2628_v51, %v2629_v52  ;;  %v2944_v41 = vsel %vm704_vm3, %v2942_v63, %v2943_v29  ;;  %v7496_v61 = vsel %vm225_vm0, %v3342_v59, %v3343_v14  ;;  %v7499_v1 = vsel %vm1081_vm4, %v3142_v39, %v3143_v3 }
 0x3bb   :  { %4610 = vmatmul.mubr.msk.f32.gmra.mxu0 %vm2662_vm7, %v2630_v49  ;;  %4656 = vmatmul.mubr.msk.f32.gmra.mxu1 %vm2662_vm7, %v2944_v41  ;;  %vm3903_vm0 = vcmask 1047559   ;;  %vm3905_vm1 = vcmask 654336   ;;  %vm4283_vm3 = vcmask 408576   ;;  %vm4361_vm4 = vcmask 80896  }
 0x3bc   :  { %2872 = vmatprep.mubr.f32.mxu0 %v8388_v60  ;;  %3456 = vmatprep.mubr.f32.mxu1 %v8388_v60 }
 0x3bf   :  { %4611 = vmatmul.mubr.msk.f32.vlgmr.msra.gmra.mxu0 %vm2662_vm7, %v7174_v45  ;;  %4725 = vmatmul.mubr.msk.f32.vlgmr.msra.gmra.mxu1 %vm2662_vm7, %v3323_v36 }
 0x3c0   :  { %2878 = vmatprep.mubr.f32.mxu0 %v8388_v60  ;;  %3195 = vmatpush1.msra.mxu0 %v4685_v21 }
 0x3c1   :  { %3462 = vmatprep.mubr.f32.mxu1 %v8388_v60  ;;  %3196 = vmatprep.subr.mxu0 %v4684_v22 }
 0x3c2   :  { %3197 = vmatpush1.msra.mxu0 %v4683_v46 }
 0x3c3   :  { %4612 = vmatmul.mubr.msk.f32.gmra.mxu0 %vm2662_vm7, %v7190_v2  ;;  %4726 = vmatmul.mubr.msk.f32.gmra.mxu1 %vm2662_vm7, %v7250_v15  ;;  %v4678_v2 = vld [vmem:[%s8211_s3 + $0x378] sm:$0xff]  ;;  %v4677_v15 = vld [vmem:[%s8211_s3 + $0x370] sm:$0xff] }
 0x3c4   :  { %3198 = vmatprep.subr.mxu0 %v4682_v0  ;;  %2884 = vmatprep.mubr.f32.mxu0 %v8388_v60 }
 0x3c5   :  { %3199 = vmatpush1.msra.mxu0 %v4681_v5  ;;  %3468 = vmatprep.mubr.f32.mxu1 %v8388_v60 }
 0x3c6   :  { %3200 = vmatprep.subr.mxu0 %v4680_v50 }
 0x3c7   :  { %4613 = vmatmul.mubr.msk.f32.gmra.mxu0 %vm2662_vm7, %v7239_v43  ;;  %4727 = vmatmul.mubr.msk.f32.gmra.mxu1 %vm2662_vm7, %v7306_v47  ;;  %v4675_v43 = vld [vmem:[%s8211_s3 + $0x360] sm:$0xff]  ;;  %v4674_v47 = vld [vmem:[%s8211_s3 + $0x358] sm:$0xff] }
 0x3c8   :  { %3201 = vmatpush1.msra.mxu0 %v4679_v11  ;;  %2890 = vmatprep.mubr.f32.mxu0 %v8388_v60 }
 0x3c9   :  { %3202 = vmatprep.subr.mxu0 %v4678_v2  ;;  %3474 = vmatprep.mubr.f32.mxu1 %v8388_v60 }
 0x3ca   :  { %3203 = vmatpush1.msra.mxu0 %v4677_v15 }
 0x3cb   :  { %4614 = vmatmul.mubr.msk.f32.gmra.mxu0 %vm2662_vm7, %v7295_v18  ;;  %3204 = vmatprep.subr.mxu0 %v4676_v7  ;;  %v4671_v18 = vld [vmem:[%s8211_s3 + $0x340] sm:$0xff] }
 0x3cc   :  { %4728 = vmatmul.mubr.msk.f32.gmra.mxu1 %vm2662_vm7, %v7362_v13  ;;  %3205 = vmatpush1.msra.mxu0 %v4675_v43  ;;  %v4669_v13 = vld [vmem:[%s8211_s3 + $0x330] sm:$0xff] }
 0x3cd   :  { %3206 = vmatprep.subr.mxu0 %v4674_v47  ;;  %2896 = vmatprep.mubr.f32.mxu0 %v8388_v60 }
 0x3ce   :  { %3207 = vmatpush1.msra.mxu0 %v4673_v8  ;;  %3480 = vmatprep.mubr.f32.mxu1 %v8388_v60 }
 0x3cf   :  { %4615 = vmatmul.mubr.msk.f32.gmra.mxu0 %vm2662_vm7, %v7351_v6  ;;  %3208 = vmatprep.subr.mxu0 %v4672_v25  ;;  %v4667_v6 = vld [vmem:[%s8211_s3 + $0x320] sm:$0xff] }
 0x3d0   :  { %4729 = vmatmul.mubr.msk.f32.gmra.mxu1 %vm2662_vm7, %v7418_v38  ;;  %3209 = vmatpush1.msra.mxu0 %v4671_v18  ;;  %v4665_v38 = vld [vmem:[%s8211_s3 + $0x310] sm:$0xff] }
 0x3d1   :  { %3210 = vmatprep.subr.mxu0 %v4670_v16  ;;  %2902 = vmatprep.mubr.f32.mxu0 %v8388_v60 }
 0x3d2   :  { %3211 = vmatpush1.msra.mxu0 %v4669_v13  ;;  %3486 = vmatprep.mubr.f32.mxu1 %v8388_v60 }
 0x3d3   :  { %4616 = vmatmul.mubr.msk.f32.gmra.mxu0 %vm2662_vm7, %v7407_v48  ;;  %3212 = vmatprep.subr.mxu0 %v4668_v37  ;;  %v4663_v48 = vld [vmem:[%s8211_s3 + $0x300] sm:$0xff] }
 0x3d4   :  { %4730 = vmatmul.mubr.msk.f32.gmra.mxu1 %vm2662_vm7, %v7454_v35  ;;  %3213 = vmatpush1.msra.mxu0 %v4667_v6  ;;  %v4661_v35 = vld [vmem:[%s8211_s3 + $0x2f0] sm:$0xff] }
 0x3d5   :  { %3214 = vmatprep.subr.mxu0 %v4666_v62  ;;  %2908 = vmatprep.mubr.f32.mxu0 %v8388_v60 }
 0x3d6   :  { %3215 = vmatpush1.msra.mxu0 %v4665_v38  ;;  %3492 = vmatprep.mubr.f32.mxu1 %v8388_v60 }
 0x3d7   :  { %4617 = vmatmul.mubr.msk.f32.gmra.mxu0 %vm2662_vm7, %v7457_v10  ;;  %3216 = vmatprep.subr.mxu0 %v4664_v42  ;;  %v4659_v10 = vld [vmem:[%s8211_s3 + $0x2e0] sm:$0xff] }
 0x3d8   :  { %4731 = vmatmul.mubr.msk.f32.gmra.mxu1 %vm2662_vm7, %v7475_v44  ;;  %3217 = vmatpush1.msra.mxu0 %v4663_v48 }
 0x3d9   :  { %3218 = vmatprep.subr.mxu0 %v4662_v34  ;;  %2914 = vmatprep.mubr.f32.mxu0 %v8388_v60 }
 0x3da   :  { %3219 = vmatpush1.msra.mxu0 %v4661_v35  ;;  %3498 = vmatprep.mubr.f32.mxu1 %v8388_v60 }
 0x3db   :  { %4618 = vmatmul.mubr.msk.f32.gmra.mxu0 %vm2662_vm7, %v7478_v12  ;;  %3220 = vmatprep.subr.mxu0 %v4660_v56 }
 0x3dc   :  { %4732 = vmatmul.mubr.msk.f32.gmra.mxu1 %vm2662_vm7, %v7496_v61  ;;  %3221 = vmatpush1.msra.mxu0 %v4659_v10 }
 0x3dd   :  { %3222 = vmatprep.subr.mxu0 %v4658_v26  ;;  %3256 = vmatprep.mubr.f32.mxu0 %v8388_v60 }
 0x3de   :  { %3223 = vmatpush1.msra.mxu0 %v4657_v54 }
 0x3df   :  { %4687 = vmatmul.mubr.msk.f32.vlgmr.msra.gmra.mxu0 %vm2662_vm7, %v3123_v23 }
 0x3e0   :  { %3262 = vmatprep.mubr.f32.mxu0 %v8388_v60 }
 0x3e3   :  { %4688 = vmatmul.mubr.msk.f32.gmra.mxu0 %vm2662_vm7, %v7253_v24 }
 0x3e4   :  { %3268 = vmatprep.mubr.f32.mxu0 %v8388_v60 }
 0x3e7   :  { %4689 = vmatmul.mubr.msk.f32.gmra.mxu0 %vm2662_vm7, %v7309_v40 }
 0x3e8   :  { %3274 = vmatprep.mubr.f32.mxu0 %v8388_v60 }
 0x3eb   :  { %4690 = vmatmul.mubr.msk.f32.gmra.mxu0 %vm2662_vm7, %v7365_v20 }
 0x3ec   :  { %3280 = vmatprep.mubr.f32.mxu0 %v8388_v60 }
 0x3ef   :  { %4691 = vmatmul.mubr.msk.f32.gmra.mxu0 %vm2662_vm7, %v7421_v27 }
 0x3f0   :  { %3286 = vmatprep.mubr.f32.mxu0 %v8388_v60 }
 0x3f3   :  { %4692 = vmatmul.mubr.msk.f32.gmra.mxu0 %vm2662_vm7, %v7462_v32 }
 0x3f4   :  { %3292 = vmatprep.mubr.f32.mxu0 %v8388_v60 }
 0x3f7   :  { %4693 = vmatmul.mubr.msk.f32.gmra.mxu0 %vm2662_vm7, %v7483_v33 }
 0x3f8   :  { %3298 = vmatprep.mubr.f32.mxu0 %v8388_v60 }
 0x3fb   :  { %4694 = vmatmul.mubr.msk.f32.gmra.mxu0 %vm2662_vm7, %v7499_v1 }
 0x443   :  { %v2745_v45 = vpop.f32.mrf.mxu0  ;;  %v3058_v24 = vpop.f32.mrf.mxu1 }
 0x445   :  { %v2747_v40 = vpop.f32.mrf.mxu0  ;;  %v3060_v20 = vpop.f32.mrf.mxu1 }
 0x44b   :  { %v2751_v27 = vpop.f32.mrf.mxu0  ;;  %v3064_v19 = vpop.f32.mrf.mxu1 }
 0x44d   :  { %v2753_v55 = vpop.f32.mrf.mxu0  ;;  %v3066_v44 = vpop.f32.mrf.mxu1 }
 0x453   :  { %v7665_v12 = vpop.f32.mrf.mxu0  ;;  %v7667_v32 = vpop.f32.mrf.mxu1 }
 0x455   :  { %v7669_v53 = vpop.f32.mrf.mxu0  ;;  %v7671_v33 = vpop.f32.mrf.mxu1 }
 0x45b   :  { %v7673_v9 = vpop.f32.mrf.mxu0  ;;  %v7675_v57 = vpop.f32.mrf.mxu1 }
 0x45d   :  { %v7677_v51 = vpop.f32.mrf.mxu0  ;;  %v7679_v63 = vpop.f32.mrf.mxu1 }
 0x463   :  { %v2769_v30 = vpop.f32.mrf.mxu0  ;;  %v3082_v59 = vpop.f32.mrf.mxu1 }
 0x465   :  { %v2771_v39 = vpop.f32.mrf.mxu0  ;;  %v7681_v52 = vpop.f32.mrf.mxu1 }
 0x46b   :  { %v2775_v29 = vpop.f32.mrf.mxu0  ;;  %v7683_v3 = vpop.f32.mrf.mxu1 }
 0x46d   :  { %v2777_v14 = vpop.f32.mrf.mxu0  ;;  %v7685_v31 = vpop.f32.mrf.mxu1 }
 0x473   :  { %v2781_v49 = vpop.f32.mrf.mxu0  ;;  %v7687_v41 = vpop.f32.mrf.mxu1 }
 0x475   :  { %v7689_v61 = vpop.f32.mrf.mxu0  ;;  %v7691_v1 = vpop.f32.mrf.mxu1 }
 0x47b   :  { %v7693_v28 = vpop.f32.mrf.mxu0  ;;  %v7695_v21 = vpop.f32.mrf.mxu1 }
 0x47d   :  { %v7697_v36 = vpop.f32.mrf.mxu0  ;;  %v7699_v22 = vpop.f32.mrf.mxu1 }
 0x47f   :  { %v2874_v46 = vpop.f32.mrf.mxu0  ;;  %v7703_v2 = vpop.f32.mrf.mxu1 }
 0x480   :  { %v2875_v0 = vadd.f32 %v2874_v46, %v2745_v45  ;;  %8408 = vst [vmem:[#allocation43_spill] sm:$0xff] %v7703_v2 }
 0x481   :  { %v2876_v5 = vpop.f32.mrf.mxu0  ;;  %v7709_v18 = vpop.f32.mrf.mxu1 }
 0x482   :  { %v2877_v50 = vadd.f32 %v2876_v5, %v2747_v40  ;;  %v7701_v11 = vadd.f32 %v3058_v24, %v2875_v0  ;;  %8410 = vst [vmem:[#allocation11_spill] sm:$0xff] %v7709_v18 }
 0x483   :  { %v2880_v15 = vpop.f32.mrf.mxu0  ;;  %v7717_v6 = vpop.f32.mrf.mxu1 }
 0x484   :  { %8407 = vst [vmem:[#allocation10_spill] sm:$0xff] %v7701_v11  ;;  %v2881_v7 = vadd.f32 %v2880_v15, %v2751_v27  ;;  %v7705_v43 = vadd.f32 %v3060_v20, %v2877_v50  ;;  %8411 = vst [vmem:[#allocation12_spill] sm:$0xff] %v7717_v6 }
 0x485   :  { %v2882_v47 = vpop.f32.mrf.mxu0  ;;  %v7719_v42 = vpop.f32.mrf.mxu1 }
 0x486   :  { %8409 = vst [vmem:[#allocation45_spill] sm:$0xff] %v7705_v43  ;;  %v2883_v8 = vadd.f32 %v2882_v47, %v2753_v55  ;;  %v7707_v25 = vadd.f32 %v3064_v19, %v2881_v7  ;;  %8412 = vst [vmem:[#allocation44_spill] sm:$0xff] %v7719_v42  ;;  %v3521_v42 = vld [vmem:[%s8212_s4] sm:$0x3]  ;;  %s5022_s4 = smov 48  }
 0x487   :  { %v7711_v16 = vpop.f32.mrf.mxu0  ;;  %v7721_v35 = vpop.f32.mrf.mxu1 }
 0x488   :  { %v7713_v13 = vadd.f32 %v3066_v44, %v2883_v8 }
 0x489   :  { %v7715_v37 = vpop.f32.mrf.mxu0  ;;  %v7723_v4 = vpop.f32.mrf.mxu1 }
 0x48a   :  { %8413 = vst [vmem:[#allocation66_spill] sm:$0xff] %v7723_v4 }
 0x48b   :  { %v2892_v62 = vpop.f32.mrf.mxu0 }
 0x48c   :  { %v7725_v58 = vpop.f32.mrf.mxu1 }
 0x48d   :  { %v2894_v38 = vpop.f32.mrf.mxu0 }
 0x48e   :  { %v7727_v24 = vpop.f32.mrf.mxu1 }
 0x48f   :  { %v2898_v48 = vpop.f32.mrf.mxu0 }
 0x490   :  { %v3482_v27 = vpop.f32.mrf.mxu1  ;;  %v2899_v5 = vadd.f32 %v2898_v48, %v2769_v30 }
 0x491   :  { %v2900_v34 = vpop.f32.mrf.mxu0 }
 0x492   :  { %v3484_v44 = vpop.f32.mrf.mxu1  ;;  %v2901_v7 = vadd.f32 %v2900_v34, %v2771_v39  ;;  %v3113_v60 = vadd.f32 %v3082_v59, %v2899_v5  ;;  %v8416_v39 = vsub.s32 0, %v6209_v17  ;;  %v2893_v59 = vadd.f32 %v2892_v62, %v7673_v9 }
 0x493   :  { %v2904_v56 = vpop.f32.mrf.mxu0 }
 0x494   :  { %v3488_v50 = vpop.f32.mrf.mxu1  ;;  %v2905_v8 = vadd.f32 %v2904_v56, %v2775_v29  ;;  %v3114_v6 = vadd.f32 %v7681_v52, %v2901_v7  ;;  %v7748_v29 = vrot.slane %v3521_v42, %v8416_v39 }
 0x495   :  { %v2906_v10 = vpop.f32.mrf.mxu0 }
 0x496   :  { %v3490_v18 = vpop.f32.mrf.mxu1  ;;  %v3115_v48 = vadd.f32 %v7683_v3, %v2905_v8 }
 0x497   :  { %v2910_v26 = vpop.f32.mrf.mxu0 }
 0x498   :  { %v3494_v34 = vpop.f32.mrf.mxu1 }
 0x499   :  { %v2912_v54 = vpop.f32.mrf.mxu0 }
 0x49a   :  { %v2913_v56 = vadd.f32 %v2912_v54, %v7689_v61 }
 0x49b   :  { %v2916_v23 = vpop.f32.mrf.mxu0 }
 0x49d   :  { %v2918_v45 = vpop.f32.mrf.mxu0 }
 0x49f   :  { %v7729_v40 = vpop.f32.mrf.mxu0 }
 0x4a0   :  { %8414 = vst [vmem:[#allocation47_spill] sm:$0xff] %v7729_v40  ;;  %v2911_v40 = vadd.f32 %v2910_v26, %v2781_v49  ;;  %v3111_v26 = vadd.f32 %v7675_v57, %v2893_v59 }
 0x4a1   :  { %v7731_v20 = vpop.f32.mrf.mxu0 }
 0x4a2   :  { %8415 = vst [vmem:[#allocation13_spill] sm:$0xff] %v7731_v20  ;;  %v2907_v20 = vadd.f32 %v2906_v10, %v2777_v14  ;;  %v2887_v10 = vadd.f32 %v7711_v16, %v7665_v12  ;;  %v2889_v12 = vadd.f32 %v7715_v37, %v7669_v53 }
 0x4a3   :  { %v7733_v19 = vpop.f32.mrf.mxu0 }
 0x4a5   :  { %v7735_v55 = vpop.f32.mrf.mxu0 }
 0x4a7   :  { %v7737_v46 = vpop.f32.mrf.mxu0 }
 0x4a9   :  { %v7739_v0 = vpop.f32.mrf.mxu0 }
 0x4ab   :  { %v3276_v15 = vpop.f32.mrf.mxu0 }
 0x4ad   :  { %v3278_v47 = vpop.f32.mrf.mxu0 }
 0x4af   :  { %v3282_v2 = vpop.f32.mrf.mxu0 }
 0x4b0   :  { %v3313_v43 = vadd.f32 %v3282_v2, %v3113_v60  ;;  %v8417_v60 = vsub.s32 1, %v6209_v17  ;;  %v2895_v2 = vadd.f32 %v2894_v38, %v7677_v51 }
 0x4b1   :  { %v3284_v11 = vpop.f32.mrf.mxu0 }
 0x4b2   :  { %v3513_v4 = vadd.f32 %v3482_v27, %v3313_v43  ;;  %v3314_v30 = vadd.f32 %v3284_v11, %v3114_v6  ;;  %v7754_v14 = vrot.slane %v3521_v42, %v8417_v60  ;;  %v3116_v11 = vadd.f32 %v7685_v31, %v2907_v20  ;;  %v3496_v31 = vpop.f32.mrf.mxu1 }
 0x4b3   :  { %v3288_v5 = vpop.f32.mrf.mxu0  ;;  %v2917_v43 = vadd.f32 %v2916_v23, %v7693_v28  ;;  %v3117_v6 = vadd.f32 %v7687_v41, %v2911_v40  ;;  %v3118_v28 = vadd.f32 %v7691_v1, %v2913_v56  ;;  %v3112_v57 = vadd.f32 %v7679_v63, %v2895_v2  ;;  %v8418_v2 = vld [vmem:[#allocation66_spill] sm:$0xff] }
 0x4b4   :  { %v3514_v52 = vadd.f32 %v3484_v44, %v3314_v30  ;;  %v3315_v49 = vadd.f32 %v3288_v5, %v3115_v48  ;;  %v7758_v3 = vadd.f32 %v7748_v29, %v3513_v4  ;;  %v2919_v4 = vadd.f32 %v2918_v45, %v7697_v36  ;;  %v3500_v27 = vpop.f32.mrf.mxu1 }
 0x4b5   :  { %v3290_v9 = vpop.f32.mrf.mxu0  ;;  %v3311_v36 = vadd.f32 %v3276_v15, %v3111_v26  ;;  %v3119_v1 = vadd.f32 %v7695_v21, %v2917_v43  ;;  %v3109_v44 = vadd.f32 %v7667_v32, %v2887_v10  ;;  %v3110_v30 = vadd.f32 %v7671_v33, %v2889_v12 }
 0x4b6   :  { %v3515_v61 = vadd.f32 %v3488_v50, %v3315_v49  ;;  %v3316_v62 = vadd.f32 %v3290_v9, %v3116_v11  ;;  %v3557_v17 = vmax.f32 %v7758_v3, 0.0  ;;  %v3542_v42 = vadd.f32 %v7754_v14, %v3514_v52 }
 0x4b7   :  { %v3294_v51 = vpop.f32.mrf.mxu0  ;;  %v3312_v50 = vadd.f32 %v3278_v47, %v3112_v57  ;;  %v3120_v53 = vadd.f32 %v7699_v22, %v2919_v4  ;;  %v3309_v8 = vadd.f32 %v7737_v46, %v3109_v44  ;;  %v3511_v32 = vadd.f32 %v7725_v58, %v3311_v36  ;;  %v8424_v4 = vld [vmem:[#allocation44_spill] sm:$0xff]  ;;  %v8426_v36 = vld [vmem:[#allocation11_spill] sm:$0xff] }
 0x4b8   :  { %v3516_v38 = vadd.f32 %v3490_v18, %v3316_v62  ;;  %v3317_v54 = vadd.f32 %v3294_v51, %v3117_v6  ;;  %3597 = vrot.lane.b32.xlu0 %v3557_v17, %s5022_s4  ;;  %v3558_v41 = vmax.f32 %v3542_v42, 0.0  ;;  %v7774_v23 = vadd.f32 %v7748_v29, %v3515_v61  ;;  %v8421_v61 = vld [vmem:[#allocation12_spill] sm:$0xff] }
 0x4b9   :  { %v3296_v16 = vpop.f32.mrf.mxu0  ;;  %v3310_v56 = vadd.f32 %v7739_v0, %v3110_v30  ;;  %v3512_v5 = vadd.f32 %v7727_v24, %v3312_v50  ;;  %v3307_v46 = vadd.f32 %v7733_v19, %v7707_v25  ;;  %v3509_v52 = vadd.f32 %v7721_v35, %v3309_v8  ;;  %v8419_v19 = vld [vmem:[#allocation10_spill] sm:$0xff]  ;;  %v8420_v35 = vld [vmem:[#allocation47_spill] sm:$0xff] }
 0x4ba   :  { %v3517_v18 = vadd.f32 %v3494_v34, %v3317_v54  ;;  %v3318_v45 = vadd.f32 %v3296_v16, %v3118_v28  ;;  %3599 = vrot.lane.b32.xlu1 %v3558_v41, %s5022_s4  ;;  %v3559_v40 = vmax.f32 %v7774_v23, 0.0  ;;  %v3544_v20 = vadd.f32 %v7754_v14, %v3516_v38  ;;  %v3502_v34 = vpop.f32.mrf.mxu1  ;;  %v8425_v38 = vld [vmem:[#allocation43_spill] sm:$0xff] }
 0x4bb   :  { %v3300_v7 = vpop.f32.mrf.mxu0  ;;  %v7809_v24 = vadd.f32 %v7748_v29, %v3511_v32  ;;  %v3308_v11 = vadd.f32 %v7735_v55, %v7713_v13  ;;  %v3510_v43 = vadd.f32 %v8418_v2, %v3310_v56  ;;  %v3540_v25 = vadd.f32 %v7754_v14, %v3512_v5  ;;  %v8423_v13 = vld [vmem:[#allocation13_spill] sm:$0xff] }
 0x4bc   :  { %v3518_v37 = vadd.f32 %v3496_v31, %v3318_v45  ;;  %v3319_v63 = vadd.f32 %v3300_v7, %v3119_v1  ;;  %3601 = vrot.lane.b32.xlu0 %v3559_v40, %s5022_s4  ;;  %v3560_v21 = vmax.f32 %v3544_v20, 0.0  ;;  %v7789_v15 = vadd.f32 %v7748_v29, %v3517_v18  ;;  %v8422_v31 = vld [vmem:[#allocation45_spill] sm:$0xff]  ;;  %v3638_v18 = vld [vmem:[%s8213_s10] sm:$0xff] }
 0x4bd   :  { %v3302_v47 = vpop.f32.mrf.mxu0  ;;  %v3305_v6 = vadd.f32 %v8420_v35, %v8419_v19  ;;  %v3507_v62 = vadd.f32 %v8421_v61, %v3307_v46  ;;  %v3555_v42 = vmax.f32 %v7809_v24, 0.0  ;;  %v3537_v10 = vadd.f32 %v7748_v29, %v3509_v52  ;;  %4879 = vmatprep.mubr.msk.f32.mxu0 %vm2223_vm5, %v3638_v18  ;;  %v3641_v19 = vld [vmem:[%s8213_s10 + $0x18] sm:$0xff]  ;;  %v3642_v35 = vld [vmem:[%s8213_s10 + $0x20] sm:$0xff]  ;;  %v3644_v61 = vld [vmem:[%s8213_s10 + $0x30] sm:$0xff] }
 0x4be   :  { %v3519_v48 = vadd.f32 %v3500_v27, %v3319_v63  ;;  %v3320_v39 = vadd.f32 %v3302_v47, %v3120_v53  ;;  %3603 = vrot.lane.b32.xlu1 %v3560_v21, %s5022_s4  ;;  %v3561_v22 = vmax.f32 %v7789_v15, 0.0  ;;  %v3546_v59 = vadd.f32 %v7754_v14, %v3518_v37  ;;  %v4766_v18 = vld [vmem:[%s8214_s5 + $0xc8] sm:$0xff] }
 0x4bf   :  { %v3306_v55 = vadd.f32 %v8423_v13, %v8422_v31  ;;  %v3508_v26 = vadd.f32 %v8424_v4, %v3308_v11  ;;  %v3556_v51 = vmax.f32 %v3540_v25, 0.0  ;;  %v3538_v28 = vadd.f32 %v7754_v14, %v3510_v43  ;;  %v3639_v43 = vld [vmem:[%s8213_s10 + $0x8] sm:$0xff]  ;;  %v3648_v31 = vld [vmem:[%s8213_s10 + $0x50] sm:$0xff]  ;;  %v3649_v13 = vld [vmem:[%s8213_s10 + $0x58] sm:$0xff] }
 0x4c0   :  { %v3520_v60 = vadd.f32 %v3502_v34, %v3320_v39  ;;  %3605 = vrot.lane.b32.xlu0 %v3561_v22, %s5022_s4  ;;  %v3562_v33 = vmax.f32 %v3546_v59, 0.0  ;;  %v3547_v58 = vadd.f32 %v7748_v29, %v3519_v48  ;;  %v3505_v54 = vadd.f32 %v8425_v38, %v3305_v6  ;;  %v3643_v6 = vld [vmem:[%s8213_s10 + $0x28] sm:$0xff]  ;;  %v4757_v38 = vld [vmem:[%s8214_s5 + $0x90] sm:$0xff] }
 0x4c1   :  { %v3553_v41 = vmax.f32 %v3537_v10, 0.0  ;;  %v3535_v12 = vadd.f32 %v7748_v29, %v3507_v62  ;;  %v3506_v57 = vadd.f32 %v8426_v36, %v3306_v55  ;;  %v3554_v16 = vmax.f32 %v3538_v28, 0.0  ;;  %v3645_v62 = vld [vmem:[%s8213_s10 + $0x38] sm:$0xff]  ;;  %v3647_v10 = vld [vmem:[%s8213_s10 + $0x48] sm:$0xff]  ;;  %v3650_v55 = vld [vmem:[%s8213_s10 + $0x60] sm:$0xff] }
 0x4c2   :  { %3607 = vrot.lane.b32.xlu1 %v3562_v33, %s5022_s4  ;;  %v3563_v49 = vmax.f32 %v3547_v58, 0.0  ;;  %v3548_v0 = vadd.f32 %v7754_v14, %v3520_v60  ;;  %v3536_v1 = vadd.f32 %v7754_v14, %v3508_v26  ;;  %v3533_v20 = vadd.f32 %v7748_v29, %v3505_v54  ;;  %v3651_v4 = vld [vmem:[%s8213_s10 + $0x68] sm:$0xff]  ;;  %v3652_v26 = vld [vmem:[%s8213_s10 + $0x70] sm:$0xff]  ;;  %v4758_v28 = vld [vmem:[%s8214_s5 + $0x98] sm:$0xff] }
 0x4c3   :  { %v3551_v45 = vmax.f32 %v3535_v12, 0.0  ;;  %v3534_v44 = vadd.f32 %v7754_v14, %v3506_v57  ;;  %v8427_v25 = vmov 0.0   ;;  %4904 = vmatpush3.msra.mxu1 %v4758_v28  ;;  %v4770_v54 = vld [vmem:[%s8214_s5 + $0xe8] sm:$0xff]  ;;  %v4769_v12 = vld [vmem:[%s8214_s5 + $0xe0] sm:$0xff]  ;;  %v4768_v57 = vld [vmem:[%s8214_s5 + $0xd8] sm:$0xff] }
 0x4c4   :  { %3609 = vrot.lane.b32.xlu0 %v3563_v49, %s5022_s4  ;;  %v3564_v9 = vmax.f32 %v3548_v0, 0.0  ;;  %v3552_v27 = vmax.f32 %v3536_v1, 0.0  ;;  %v3549_v50 = vmax.f32 %v3533_v20, 0.0  ;;  %4905 = vmatprep.subr.mxu1 %v8427_v25  ;;  %v4755_v36 = vld [vmem:[%s8214_s5 + $0x80] sm:$0xff]  ;;  %v4767_v1 = vld [vmem:[%s8214_s5 + $0xd0] sm:$0xff] }
 0x4c5   :  { %v3550_v7 = vmax.f32 %v3534_v44, 0.0  ;;  %4906 = vmatpush3.msra.mxu1 %v4757_v38  ;;  %v4765_v20 = vld [vmem:[%s8214_s5 + $0xc0] sm:$0xff]  ;;  %v4764_v44 = vld [vmem:[%s8214_s5 + $0xb8] sm:$0xff]  ;;  %4923 = vmatprep.mubr.msk.f32.mxu1 %vm5023_vm9, %v8427_v25 }
 0x4c6   :  { %3611 = vrot.lane.b32.xlu1 %v3564_v9, %s5022_s4  ;;  %v3640_v9 = vld [vmem:[%s8213_s10 + $0x10] sm:$0xff]  ;;  %4907 = vmatprep.subr.mxu1 %v8427_v25 }
 0x4c8   :  { %3593 = vrot.lane.b32.xlu0 %v3555_v42, %s5022_s4 }
 0x4ca   :  { %3595 = vrot.lane.b32.xlu1 %v3556_v51, %s5022_s4  ;;  %v3653_v51 = vld [vmem:[%s8213_s10 + $0x78] sm:$0xff] }
 0x4cc   :  { %3589 = vrot.lane.b32.xlu0 %v3553_v41, %s5022_s4 }
 0x4ce   :  { %3591 = vrot.lane.b32.xlu1 %v3554_v16, %s5022_s4  ;;  %v4754_v16 = vld [vmem:[%s8214_s5 + $0x78] sm:$0xff] }
 0x4d0   :  { %3585 = vrot.lane.b32.xlu0 %v3551_v45, %s5022_s4 }
 0x4d2   :  { %3587 = vrot.lane.b32.xlu1 %v3552_v27, %s5022_s4  ;;  %v4752_v27 = vld [vmem:[%s8214_s5 + $0x68] sm:$0xff] }
 0x4d4   :  { %3581 = vrot.lane.b32.xlu0 %v3549_v50, %s5022_s4 }
 0x4d6   :  { %3583 = vrot.lane.b32.xlu1 %v3550_v7, %s5022_s4  ;;  %v4763_v7 = vld [vmem:[%s8214_s5 + $0xb0] sm:$0xff] }
 0x52a   :  { %v3598_v53 = vpop.permute.xlu0 %3597 }
 0x52c   :  { %v3600_v37 = vpop.permute.xlu1 %3599 }
 0x52d   :  { %v3618_v5 = vsel %vm3613_vm8, %v3598_v53, %v3600_v37  ;;  %v4750_v53 = vld [vmem:[%s8214_s5 + $0x58] sm:$0xff]  ;;  %v4762_v37 = vld [vmem:[%s8214_s5 + $0xa8] sm:$0xff] }
 0x52e   :  { %v3602_v63 = vpop.permute.xlu0 %3601  ;;  %v3634_v46 = vmax.f32 %v3557_v17, %v3618_v5 }
 0x530   :  { %v3604_v21 = vpop.permute.xlu1 %3603 }
 0x531   :  { %v3619_v59 = vsel %vm3613_vm8, %v3602_v63, %v3604_v21  ;;  %v4749_v63 = vld [vmem:[%s8214_s5 + $0x50] sm:$0xff]  ;;  %v4761_v21 = vld [vmem:[%s8214_s5 + $0xa0] sm:$0xff] }
 0x532   :  { %v3606_v29 = vpop.permute.xlu0 %3605  ;;  %v3635_v60 = vmax.f32 %v3559_v40, %v3619_v59 }
 0x534   :  { %v3608_v8 = vpop.permute.xlu1 %3607 }
 0x535   :  { %v3620_v47 = vsel %vm3613_vm8, %v3606_v29, %v3608_v8 }
 0x536   :  { %v3610_v30 = vpop.permute.xlu0 %3609  ;;  %v3636_v34 = vmax.f32 %v3561_v22, %v3620_v47 }
 0x538   :  { %v3612_v32 = vpop.permute.xlu1 %3611 }
 0x539   :  { %v3621_v14 = vsel %vm3613_vm8, %v3610_v30, %v3612_v32 }
 0x53a   :  { %v3637_v48 = vmax.f32 %v3563_v49, %v3621_v14  ;;  %v3594_v39 = vpop.permute.xlu0 %3593 }
 0x53c   :  { %4863 = vmatprep.subr.mxu0 %v3637_v48  ;;  %v3596_v56 = vpop.permute.xlu1 %3595 }
 0x53d   :  { %4864 = vmatpush3.msra.mxu0 %v3637_v48  ;;  %v3617_v58 = vsel %vm3613_vm8, %v3594_v39, %v3596_v56 }
 0x53e   :  { %v3590_v33 = vpop.permute.xlu0 %3589  ;;  %4865 = vmatprep.subr.mxu0 %v3636_v34  ;;  %v3633_v22 = vmax.f32 %v3555_v42, %v3617_v58  ;;  %v3646_v42 = vld [vmem:[%s8213_s10 + $0x40] sm:$0xff] }
 0x53f   :  { %4866 = vmatpush3.msra.mxu0 %v3636_v34 }
 0x540   :  { %4867 = vmatprep.subr.mxu0 %v3635_v60  ;;  %v3592_v52 = vpop.permute.xlu1 %3591 }
 0x541   :  { %v3616_v15 = vsel %vm3613_vm8, %v3590_v33, %v3592_v52  ;;  %4868 = vmatpush3.msra.mxu0 %v3635_v60 }
 0x542   :  { %v3586_v49 = vpop.permute.xlu0 %3585  ;;  %4869 = vmatprep.subr.mxu0 %v3634_v46  ;;  %v3632_v0 = vmax.f32 %v3553_v41, %v3616_v15  ;;  %v4756_v41 = vld [vmem:[%s8214_s5 + $0x88] sm:$0xff] }
 0x543   :  { %4870 = vmatpush3.msra.mxu0 %v3634_v46  ;;  %4908 = vmatpush3.msra.mxu1 %v4756_v41 }
 0x544   :  { %4871 = vmatprep.subr.mxu0 %v3633_v22  ;;  %v3588_v23 = vpop.permute.xlu1 %3587  ;;  %4909 = vmatprep.subr.mxu1 %v8427_v25 }
 0x545   :  { %v3615_v40 = vsel %vm3613_vm8, %v3586_v49, %v3588_v23  ;;  %4872 = vmatpush3.msra.mxu0 %v3633_v22  ;;  %4910 = vmatpush3.msra.mxu1 %v4755_v36 }
 0x546   :  { %v3631_v24 = vmax.f32 %v3551_v45, %v3615_v40  ;;  %4873 = vmatprep.subr.mxu0 %v3632_v0  ;;  %v3582_v3 = vpop.permute.xlu0 %3581  ;;  %4911 = vmatprep.subr.mxu1 %v8427_v25  ;;  %v4753_v45 = vld [vmem:[%s8214_s5 + $0x70] sm:$0xff] }
 0x547   :  { %4874 = vmatpush3.msra.mxu0 %v3632_v0  ;;  %4912 = vmatpush3.msra.mxu1 %v4754_v16 }
 0x548   :  { %4875 = vmatprep.subr.mxu0 %v3631_v24  ;;  %v3584_v17 = vpop.permute.xlu1 %3583  ;;  %4913 = vmatprep.subr.mxu1 %v8427_v25 }
 0x549   :  { %v3614_v11 = vsel %vm3613_vm8, %v3582_v3, %v3584_v17  ;;  %4876 = vmatpush3.msra.mxu0 %v3631_v24  ;;  %4914 = vmatpush3.msra.mxu1 %v4753_v45 }
 0x54a   :  { %v3630_v2 = vmax.f32 %v3549_v50, %v3614_v11  ;;  %4915 = vmatprep.subr.mxu1 %v8427_v25  ;;  %v4751_v50 = vld [vmem:[%s8214_s5 + $0x60] sm:$0xff] }
 0x54b   :  { %4916 = vmatpush3.msra.mxu1 %v4752_v27 }
 0x54c   :  { %4877 = vmatprep.subr.mxu0 %v3630_v2  ;;  %4917 = vmatprep.subr.mxu1 %v8427_v25 }
 0x54d   :  { %4878 = vmatpush3.msra.mxu0 %v3630_v2  ;;  %4918 = vmatpush3.msra.mxu1 %v4751_v50  ;;  %v3861_v50 = vld [vmem:[%s8214_s5 + $0x30] sm:$0xff] }
 0x54e   :  { %4880 = vmatmul.mubr.msk.f32.vlgmr.msra.gmra.mxu0 %vm2223_vm5, %v3639_v43  ;;  %4949 = vmatprep.subr.mxu0 %v8427_v25 }
 0x54f   :  { %4882 = vmatprep.mubr.msk.f32.mxu0 %vm2223_vm5, %v3640_v9  ;;  %4950 = vmatpush3.msra.mxu0 %v4770_v54 }
 0x550   :  { %4951 = vmatprep.subr.mxu0 %v8427_v25  ;;  %4919 = vmatprep.subr.mxu1 %v8427_v25 }
 0x551   :  { %4952 = vmatpush3.msra.mxu0 %v4769_v12  ;;  %4920 = vmatpush3.msra.mxu1 %v4750_v53 }
 0x552   :  { %4883 = vmatmul.mubr.msk.f32.gmra.mxu0 %vm2223_vm5, %v3641_v19  ;;  %4953 = vmatprep.subr.mxu0 %v8427_v25 }
 0x553   :  { %4885 = vmatprep.mubr.msk.f32.mxu0 %vm2223_vm5, %v3642_v35  ;;  %4954 = vmatpush3.msra.mxu0 %v4768_v57  ;;  %v3864_v57 = vld [vmem:[%s8214_s5 + $0x48] sm:$0xff] }
 0x554   :  { %4955 = vmatprep.subr.mxu0 %v8427_v25  ;;  %4921 = vmatprep.subr.mxu1 %v8427_v25 }
 0x555   :  { %4956 = vmatpush3.msra.mxu0 %v4767_v1  ;;  %4922 = vmatpush3.msra.mxu1 %v4749_v63 }
 0x556   :  { %4886 = vmatmul.mubr.msk.f32.gmra.mxu0 %vm2223_vm5, %v3643_v6  ;;  %4957 = vmatprep.subr.mxu0 %v8427_v25 }
 0x557   :  { %4888 = vmatprep.mubr.msk.f32.mxu0 %vm2223_vm5, %v3644_v61  ;;  %4958 = vmatpush3.msra.mxu0 %v4766_v18  ;;  %v3863_v18 = vld [vmem:[%s8214_s5 + $0x40] sm:$0xff] }
 0x558   :  { %4959 = vmatprep.subr.mxu0 %v8427_v25  ;;  %4926 = vmatprep.subr.mxu1 %v8427_v25 }
 0x559   :  { %4960 = vmatpush3.msra.mxu0 %v4765_v20  ;;  %v3862_v20 = vld [vmem:[%s8214_s5 + $0x38] sm:$0xff] }
 0x55a   :  { %4889 = vmatmul.mubr.msk.f32.gmra.mxu0 %vm2223_vm5, %v3645_v62  ;;  %4961 = vmatprep.subr.mxu0 %v8427_v25 }
 0x55b   :  { %4891 = vmatprep.mubr.msk.f32.mxu0 %vm2223_vm5, %v3646_v42  ;;  %4962 = vmatpush3.msra.mxu0 %v4764_v44 }
 0x55c   :  { %4963 = vmatprep.subr.mxu0 %v8427_v25 }
 0x55d   :  { %4964 = vmatpush3.msra.mxu0 %v4763_v7  ;;  %v3860_v7 = vld [vmem:[%s8214_s5 + $0x28] sm:$0xff] }
 0x55e   :  { %4892 = vmatmul.mubr.msk.f32.gmra.mxu0 %vm2223_vm5, %v3647_v10  ;;  %4965 = vmatprep.subr.mxu0 %v8427_v25 }
 0x55f   :  { %4894 = vmatprep.mubr.msk.f32.mxu0 %vm2223_vm5, %v3648_v31  ;;  %4966 = vmatpush3.msra.mxu0 %v4762_v37 }
 0x560   :  { %4967 = vmatprep.subr.mxu0 %v8427_v25 }
 0x561   :  { %4968 = vmatpush3.msra.mxu0 %v4761_v21  ;;  %v3859_v21 = vld [vmem:[%s8214_s5 + $0x20] sm:$0xff] }
 0x562   :  { %4895 = vmatmul.mubr.msk.f32.gmra.mxu0 %vm2223_vm5, %v3649_v13  ;;  %4995 = vmatprep.subr.mxu0 %v8427_v25 }
 0x563   :  { %4897 = vmatprep.mubr.msk.f32.mxu0 %vm2223_vm5, %v3650_v55 }
 0x566   :  { %4898 = vmatmul.mubr.msk.f32.gmra.mxu0 %vm2223_vm5, %v3651_v4 }
 0x567   :  { %4900 = vmatprep.mubr.msk.f32.mxu0 %vm2223_vm5, %v3652_v26 }
 0x56a   :  { %4901 = vmatmul.mubr.msk.f32.gmra.mxu0 %vm2223_vm5, %v3653_v51 }
 0x56b   :  { %4969 = vmatprep.mubr.msk.f32.mxu0 %vm5023_vm9, %v8427_v25 }
 0x60e   :  { %v4881_v29 = vpop.f32.mrf.mxu0 }
 0x610   :  { %v3768_v8 = vpop.f32.mrf.mxu0 }
 0x612   :  { %v4884_v30 = vpop.f32.mrf.mxu0 }
 0x614   :  { %v3778_v32 = vpop.f32.mrf.mxu0 }
 0x616   :  { %v4887_v47 = vpop.f32.mrf.mxu0 }
 0x618   :  { %v3788_v14 = vpop.f32.mrf.mxu0 }
 0x61a   :  { %v4890_v48 = vpop.f32.mrf.mxu0 }
 0x61c   :  { %v3798_v39 = vpop.f32.mrf.mxu0 }
 0x61e   :  { %v4893_v59 = vpop.f32.mrf.mxu0 }
 0x61f   :  { %v8003_v56 = vmax.f32 %v4881_v29, %v4893_v59 }
 0x620   :  { %v3808_v34 = vpop.f32.mrf.mxu0 }
 0x621   :  { %v8005_v5 = vmax.f32 %v3768_v8, %v3808_v34  ;;  %v4076_v52 = vrot.slane %v8003_v56, 1  ;;  %v3978_v27 = vrot.slane %v8003_v56, 7  ;;  %v3858_v8 = vld [vmem:[%s8214_s5 + $0x18] sm:$0xff]  ;;  %v3855_v34 = vld [vmem:[%s8214_s5] sm:$0xff] }
 0x622   :  { %v4896_v60 = vpop.f32.mrf.mxu0 }
 0x623   :  { %v4075_v33 = vrot.slane %v8005_v5, 2  ;;  %v3884_v58 = vrot.slane %v8005_v5, 1  ;;  %v8010_v15 = vmax.f32 %v4884_v30, %v4896_v60  ;;  %v3979_v53 = vsel %vm3885_vm10, %v3978_v27, %v8005_v5 }
 0x624   :  { %v3818_v46 = vpop.f32.mrf.mxu0 }
 0x625   :  { %v8012_v22 = vmax.f32 %v3778_v32, %v3818_v46  ;;  %v4077_v23 = vsel %vm3885_vm10, %v4076_v52, %v4075_v33  ;;  %v3886_v40 = vsel %vm3885_vm10, %v8003_v56, %v3884_v58  ;;  %v4079_v3 = vrot.slane %v8010_v15, 7  ;;  %v4781_v58 = vld [vmem:[%s8214_s5 + $0x138] sm:$0xff]  ;;  %v4780_v52 = vld [vmem:[%s8214_s5 + $0x130] sm:$0xff] }
 0x626   :  { %v4899_v49 = vpop.f32.mrf.mxu0  ;;  %v3890_v2 = vrot.slane %v8010_v15, 6  ;;  %v3982_v29 = vrot.slane %v8010_v15, 5 }
 0x627   :  { %v3887_v0 = vrot.slane %v8012_v22, 7  ;;  %v4078_v43 = vsel %vm3888_vm11, %v8012_v22, %v4077_v23  ;;  %v8025_v9 = vmax.f32 %v4887_v47, %v4899_v49  ;;  %v3980_v44 = vrot.slane %v8012_v22, 6  ;;  %v4779_v49 = vld [vmem:[%s8214_s5 + $0x128] sm:$0xff] }
 0x628   :  { %v3828_v24 = vpop.f32.mrf.mxu0  ;;  %v4080_v10 = vsel %vm3891_vm12, %v4079_v3, %v4078_v43  ;;  %v4176_v23 = vrot.slane %v8012_v22, 1  ;;  %v4777_v3 = vld [vmem:[%s8214_s5 + $0x118] sm:$0xff] }
 0x629   :  { %v3889_v17 = vsel %vm3888_vm11, %v3887_v0, %v3886_v40  ;;  %v8020_v11 = vmax.f32 %v3788_v14, %v3828_v24  ;;  %v3896_v55 = vrot.slane %v8025_v9, 4  ;;  %v4083_v26 = vrot.slane %v8025_v9, 5  ;;  %v3857_v14 = vld [vmem:[%s8214_s5 + $0x10] sm:$0xff]  ;;  %v4778_v40 = vld [vmem:[%s8214_s5 + $0x120] sm:$0xff] }
 0x62a   :  { %v4902_v19 = vpop.f32.mrf.mxu0  ;;  %v3892_v6 = vsel %vm3891_vm12, %v3890_v2, %v3889_v17  ;;  %v3981_v37 = vsel %vm3888_vm11, %v3980_v44, %v3979_v53  ;;  %v4173_v0 = vrot.slane %v8005_v5, 3  ;;  %v4174_v24 = vrot.slane %v8003_v56, 2  ;;  %v4776_v56 = vld [vmem:[%s8214_s5 + $0x110] sm:$0xff]  ;;  %v4775_v2 = vld [vmem:[%s8214_s5 + $0x108] sm:$0xff] }
 0x62b   :  { %v3893_v35 = vrot.slane %v8020_v11, 5  ;;  %v4081_v61 = vrot.slane %v8020_v11, 6  ;;  %v8030_v62 = vmax.f32 %v4890_v48, %v4902_v19  ;;  %v3984_v63 = vrot.slane %v8020_v11, 4 }
 0x62c   :  { %v3838_v42 = vpop.f32.mrf.mxu0  ;;  %v3983_v30 = vsel %vm3891_vm12, %v3982_v29, %v3981_v37  ;;  %v3986_v48 = vrot.slane %v8025_v9, 3  ;;  %v4175_v5 = vsel %vm3885_vm10, %v4174_v24, %v4173_v0  ;;  %v4179_v17 = vrot.slane %v8020_v11, 7 }
 0x62d   :  { %v3895_v31 = vsel %vm3894_vm13, %v3893_v35, %v3892_v6  ;;  %v8034_v13 = vmax.f32 %v3798_v39, %v3838_v42  ;;  %v4082_v4 = vsel %vm3894_vm13, %v4081_v61, %v4080_v10  ;;  %v3902_v28 = vrot.slane %v8030_v62, 2  ;;  %v3856_v39 = vld [vmem:[%s8214_s5 + $0x8] sm:$0xff]  ;;  %v4774_v35 = vld [vmem:[%s8214_s5 + $0x100] sm:$0xff]  ;;  %v4772_v42 = vld [vmem:[%s8214_s5 + $0xf0] sm:$0xff] }
 0x62e   :  { %v3898_v38 = vsel %vm3897_vm14, %v3896_v55, %v3895_v31  ;;  %v4087_v41 = vrot.slane %v8030_v62, 3  ;;  %v4084_v36 = vsel %vm3897_vm14, %v4083_v26, %v4082_v4  ;;  %v3985_v32 = vsel %vm3894_vm13, %v3984_v63, %v3983_v30  ;;  %v4274_v55 = vld [vmem:[%s8215_s7 + $0x28] sm:$0xff]  ;;  %v4272_v4 = vld [vmem:[%s8215_s7 + $0x18] sm:$0xff]  ;;  %v4271_v26 = vld [vmem:[%s8215_s7 + $0x10] sm:$0xff] }
 0x62f   :  { %v3899_v51 = vrot.slane %v8034_v13, 3  ;;  %v4085_v54 = vrot.slane %v8034_v13, 4  ;;  %v3988_v47 = vrot.slane %v8034_v13, 2  ;;  %v3987_v59 = vsel %vm3897_vm14, %v3986_v48, %v3985_v32 }
 0x630   :  { %v3990_v33 = vrot.slane %v8030_v62, 1  ;;  %v4177_v22 = vsel %vm3888_vm11, %v4176_v23, %v4175_v5  ;;  %v4183_v11 = vrot.slane %v8034_v13, 5  ;;  %v4181_v6 = vrot.slane %v8025_v9, 6  ;;  %v4275_v13 = vld [vmem:[%s8215_s7 + $0x30] sm:$0x3] }
 0x631   :  { %v3901_v12 = vsel %vm3900_vm15, %v3899_v51, %v3898_v38  ;;  %v4086_v16 = vsel %vm3900_vm15, %v4085_v54, %v4084_v36  ;;  %v3989_v60 = vsel %vm3900_vm15, %v3988_v47, %v3987_v59  ;;  %v4178_v43 = vsel %vm3891_vm12, %v8010_v15, %v4177_v22  ;;  %v4773_v15 = vld [vmem:[%s8214_s5 + $0xf8] sm:$0xff]  ;;  %v4270_v51 = vld [vmem:[%s8215_s7 + $0x8] sm:$0xff] }
 0x632   :  { %v3904_v1 = vsel %vm3903_vm0, %v3902_v28, %v3901_v12  ;;  %v4088_v45 = vsel %vm3903_vm0, %v4087_v41, %v4086_v16  ;;  %v3991_v46 = vsel %vm3903_vm0, %v3990_v33, %v3989_v60  ;;  %v4180_v19 = vsel %vm3894_vm13, %v4179_v17, %v4178_v43  ;;  %v4269_v28 = vld [vmem:[%s8215_s7] sm:$0xff] }
 0x633   :  { %4924 = vmatmul.mubr.msk.f32.vlgmr.msra.gmra.mxu1 %vm3905_vm1, %v3904_v1  ;;  %4970 = vmatmul.mubr.msk.f32.vlgmr.msra.gmra.mxu0 %vm3905_vm1, %v4088_v45  ;;  %v4182_v61 = vsel %vm3897_vm14, %v4181_v6, %v4180_v19  ;;  %v4185_v9 = vrot.slane %v8030_v62, 4  ;;  %v4273_v62 = vld [vmem:[%s8215_s7 + $0x20] sm:$0xff] }
 0x634   :  { %4927 = vmatpush3.msra.mxu1 %v3864_v57  ;;  %4946 = vmatprep.mubr.msk.f32.mxu1 %vm5023_vm9, %v8427_v25  ;;  %v4184_v10 = vsel %vm3900_vm15, %v4183_v11, %v4182_v61  ;;  %v4783_v45 = vld [vmem:[%s8216_s6] ss:$0 sm:$0xff] }
 0x635   :  { %4928 = vmatprep.subr.mxu1 %v8427_v25  ;;  %5009 = vmatprep.mubr.msk.f32.mxu0 %vm5023_vm9, %v8427_v25  ;;  %v4186_v31 = vsel %vm3903_vm0, %v4185_v9, %v4184_v10 }
 0x636   :  { %4929 = vmatpush3.msra.mxu1 %v3863_v18  ;;  %4996 = vmatpush3.msk.msra.mxu0 %vm4287_vm2, %v4275_v13 }
 0x637   :  { %4930 = vmatprep.subr.mxu1 %v8427_v25  ;;  %4997 = vmatprep.subr.mxu0 %v8427_v25 }
 0x638   :  { %4931 = vmatpush3.msra.mxu1 %v3862_v20  ;;  %4998 = vmatpush3.msra.mxu0 %v4274_v55 }
 0x639   :  { %4932 = vmatprep.subr.mxu1 %v8427_v25  ;;  %4999 = vmatprep.subr.mxu0 %v8427_v25 }
 0x63a   :  { %4933 = vmatpush3.msra.mxu1 %v3861_v50  ;;  %5000 = vmatpush3.msra.mxu0 %v4273_v62 }
 0x63b   :  { %4934 = vmatprep.subr.mxu1 %v8427_v25  ;;  %5001 = vmatprep.subr.mxu0 %v8427_v25 }
 0x63c   :  { %4935 = vmatpush3.msra.mxu1 %v3860_v7  ;;  %5002 = vmatpush3.msra.mxu0 %v4272_v4 }
 0x63d   :  { %4936 = vmatprep.subr.mxu1 %v8427_v25  ;;  %5003 = vmatprep.subr.mxu0 %v8427_v25 }
 0x63e   :  { %4937 = vmatpush3.msra.mxu1 %v3859_v21  ;;  %5004 = vmatpush3.msra.mxu0 %v4271_v26 }
 0x63f   :  { %4938 = vmatprep.subr.mxu1 %v8427_v25  ;;  %5005 = vmatprep.subr.mxu0 %v8427_v25 }
 0x640   :  { %4939 = vmatpush3.msra.mxu1 %v3858_v8  ;;  %5006 = vmatpush3.msra.mxu0 %v4270_v51 }
 0x641   :  { %4940 = vmatprep.subr.mxu1 %v8427_v25  ;;  %5007 = vmatprep.subr.mxu0 %v8427_v25 }
 0x642   :  { %4941 = vmatpush3.msra.mxu1 %v3857_v14  ;;  %5008 = vmatpush3.msra.mxu0 %v4269_v28 }
 0x643   :  { %4942 = vmatprep.subr.mxu1 %v8427_v25 }
 0x644   :  { %4943 = vmatpush3.msra.mxu1 %v3856_v39 }
 0x645   :  { %4944 = vmatprep.subr.mxu1 %v8427_v25 }
 0x646   :  { %4945 = vmatpush3.msra.mxu1 %v3855_v34 }
 0x647   :  { %4947 = vmatmul.mubr.msk.f32.vlgmr.msra.gmra.mxu1 %vm3905_vm1, %v3991_v46  ;;  %4972 = vmatprep.subr.mxu1 %v8427_v25 }
 0x648   :  { %4973 = vmatpush3.msra.mxu1 %v4781_v58  ;;  %4992 = vmatprep.mubr.msk.f32.mxu1 %vm5023_vm9, %v8427_v25 }
 0x649   :  { %4974 = vmatprep.subr.mxu1 %v8427_v25 }
 0x64a   :  { %4975 = vmatpush3.msra.mxu1 %v4780_v52 }
 0x64b   :  { %4976 = vmatprep.subr.mxu1 %v8427_v25 }
 0x64c   :  { %4977 = vmatpush3.msra.mxu1 %v4779_v49 }
 0x64d   :  { %4978 = vmatprep.subr.mxu1 %v8427_v25 }
 0x64e   :  { %4979 = vmatpush3.msra.mxu1 %v4778_v40 }
 0x64f   :  { %4980 = vmatprep.subr.mxu1 %v8427_v25 }
 0x650   :  { %4981 = vmatpush3.msra.mxu1 %v4777_v3 }
 0x651   :  { %4982 = vmatprep.subr.mxu1 %v8427_v25 }
 0x652   :  { %4983 = vmatpush3.msra.mxu1 %v4776_v56 }
 0x653   :  { %4984 = vmatprep.subr.mxu1 %v8427_v25 }
 0x654   :  { %4985 = vmatpush3.msra.mxu1 %v4775_v2 }
 0x655   :  { %4986 = vmatprep.subr.mxu1 %v8427_v25 }
 0x656   :  { %4987 = vmatpush3.msra.mxu1 %v4774_v35 }
 0x657   :  { %4988 = vmatprep.subr.mxu1 %v8427_v25 }
 0x658   :  { %4989 = vmatpush3.msra.mxu1 %v4773_v15 }
 0x659   :  { %4990 = vmatprep.subr.mxu1 %v8427_v25  ;;  %v4784_v25 = vld [vmem:[%s8217_s8] ss:$0 sm:$0xff] }
 0x65a   :  { %4991 = vmatpush3.msra.mxu1 %v4772_v42 }
 0x65b   :  { %4993 = vmatmul.mubr.msk.f32.vlgmr.msra.gmra.mxu1 %vm3905_vm1, %v4186_v31 }
 0x6f3   :  { %v3974_v38 = vpop.f32.mrf.mxu1  ;;  %v4157_v41 = vpop.f32.mrf.mxu0 }
 0x6f5   :  { %v4925_v54 = vpop.f32.mrf.mxu1  ;;  %v4971_v12 = vpop.f32.mrf.mxu0 }
 0x707   :  { %v4060_v36 = vpop.f32.mrf.mxu1 }
 0x708   :  { %v4061_v16 = vadd.f32 %v4060_v36, %v3974_v38 }
 0x709   :  { %v4948_v57 = vpop.f32.mrf.mxu1 }
 0x70a   :  { %v4161_v1 = vadd.f32 %v4157_v41, %v4061_v16 }
 0x71b   :  { %v4255_v18 = vpop.f32.mrf.mxu1 }
 0x71c   :  { %v4259_v20 = vadd.f32 %v4255_v18, %v4161_v1 }
 0x71d   :  { %v4994_v27 = vpop.f32.mrf.mxu1 }
 0x71e   :  { %v4267_v44 = vadd.f32 %v4783_v45, %v4259_v20 }
 0x720   :  { %v4268_v50 = vmax.f32 %v4267_v44, 0.0 }
 0x722   :  { %5010 = vmatmul.mubr.msk.f32.vlgmr.msra.gmra.mxu0 %vm4283_vm3, %v4268_v50 }
 0x7e2   :  { %v4357_v7 = vpop.f32.mrf.mxu0 }
 0x7e3   :  { %v4358_v53 = vadd.f32 %v4784_v25, %v4357_v7 }
 0x7e4   :  { %v5011_v37 = vpop.f32.mrf.mxu0 }
 0x7e5   :  { %v4362_v63 = vsel %vm4361_vm4, %v4358_v53, -inf }
 0x7e6   :  { %4363 = vmax.xlane.f32.xlu0 %v4362_v63 }
 0x86f   :  { %v4364_v21 = vpop.xlane.xlu0 %4363 }
 0x870   :  { %v4365_v29 = vsub.f32 %v4358_v53, %v4364_v21 }
 0x872   :  { %v4366_v8 = vmul.f32 1.442695, %v4365_v29 }
 0x874   :  { %5016 = vpow2.f32 %v4366_v8 }
 0x881   :  { %v5017_v30 = vpop.eup %5016 }
 0x882   :  { %v4368_v32 = vsel %vm4361_vm4, %v5017_v30, 0.0 }
 0x883   :  { %4369 = vadd.xlane.f32.xlu1 %v4368_v32 }
 0x90c   :  { %v4370_v47 = vpop.xlane.xlu1 %4369 }
 0x90d   :  { %5018 = vlog2.f32 %v4370_v47 }
 0x91a   :  { %v5019_v14 = vpop.eup %5018 }
 0x91b   :  { %v4372_v48 = vmul.f32 0.6931472, %v5019_v14 }
 0x91d   :  { %v4373_v39 = vsub.f32 %v4365_v29, %v4372_v48 }
 0x91f   :  { %4374 = vst.msk [vmem:[%s8218_s11] sm:$0xff] %vm4361_vm4, %v4373_v39 }

</bundles_post_ra>
